<compile_context>
chip_gen: v7x
topology: tpu7x:2x2x1
jax: 0.10.0
libtpu: 0.0.40
codegen_flags: <defaults>
</compile_context>

<pallas_src>
import jax
import jax.numpy as jnp
from jax.experimental import pallas as pl
from jax.experimental.pallas import tpu as pltpu

D_MODEL = 32
N_HEAD = 4
HEAD_DIM = D_MODEL // N_HEAD
DIM_FF = 64
NUM_LAYERS = 2
EPS = 1e-5                      # PyTorch LayerNorm default

LANES = 128                     # weight/bias slab lane width (= VMEM tile width)
W_ROWS_PER_LAYER = 5 * D_MODEL + DIM_FF     # sa_w, sa_wo, ca_w, ca_wo, ff_w1, ff_w2
VEC_ROWS_PER_LAYER = 12                     # 6 biases + 6 LayerNorm vectors


# ------------------------- fused decoder kernel -------------------------

def _decoder_kernel(tgt_ref, mem_ref, pos_ref, qpos_ref, w_ref, v_ref, out_ref):
    SQ, B, D = tgt_ref.shape
    SK = mem_ref.shape[0]
    NQ, NK = SQ * B, SK * B
    FF = DIM_FF
    L = w_ref.shape[0] // W_ROWS_PER_LAYER
    f32 = jnp.float32

    # Activations stay in the native (S, B, D) row order, flattened to (S*B, D):
    # only leading-dim merges/splits, never a transpose.
    x = tgt_ref[...].reshape(NQ, D)                  # decoder state
    qpos = qpos_ref[...].reshape(NQ, D)              # query positional embedding
    memf = mem_ref[...].reshape(NK, D)               # memory (attention values)
    kmem = memf + pos_ref[...].reshape(NK, D)        # memory + pos (key input)

    # Same-batch masks, built once and reused by every layer.  Row r of a flat
    # slab belongs to batch (r mod B); the mask comes from the outer product of
    # batch one-hots (only 2-D iota / broadcast / leading-dim reshape / a tiny
    # MXU matmul — all safe to lower).
    eye_b = jnp.eye(B, dtype=f32)
    oh_q = jnp.broadcast_to(eye_b[None], (SQ, B, B)).reshape(NQ, B)
    oh_k = jnp.broadcast_to(eye_b[None], (SK, B, B)).reshape(NK, B)
    mask_self = jnp.einsum('ib,jb->ij', oh_q, oh_q, preferred_element_type=f32) > 0.5
    mask_cross = jnp.einsum('ib,jb->ij', oh_q, oh_k, preferred_element_type=f32) > 0.5
    NEG = jnp.float32(-1e30)

    def vec(i, width):                               # one packed bias/LN row
        return v_ref[i:i + 1, 0:width]               # (1, width), broadcasts over rows

    def layernorm(y, g, b):
        mu = jnp.mean(y, axis=-1, keepdims=True)
        var = jnp.mean((y - mu) * (y - mu), axis=-1, keepdims=True)
        return (y - mu) * jax.lax.rsqrt(var + EPS) * g + b

    def mha(q, k, v, mask):
        # 1/sqrt(HEAD_DIM) is already folded into the packed Q weights/bias.
        # Batch is folded into the matmul rows; cross-batch scores are masked,
        # so each head is exactly 2 two-dimensional MXU matmuls.
        outs = []
        for h in range(N_HEAD):
            sl = slice(h * HEAD_DIM, (h + 1) * HEAD_DIM)
            s = jnp.einsum('qd,kd->qk', q[:, sl], k[:, sl],
                           preferred_element_type=f32)
            s = jnp.where(mask, s, NEG)
            s = s - jnp.max(s, axis=-1, keepdims=True)
            p = jnp.exp(s)
            # approx=True -> EUP reciprocal (~2^-12 rel error in the denominator).
            p = p * pl.reciprocal(jnp.sum(p, axis=-1, keepdims=True), approx=True)
            outs.append(jnp.dot(p, v[:, sl], preferred_element_type=f32))
        return jnp.concatenate(outs, axis=-1)

    for l in range(L):
        r = l * W_ROWS_PER_LAYER                      # static slab row offsets
        sa_w = w_ref[r:r + D, 0:3 * D]                # (D, 3D) packed [Wq|Wk|Wv]
        sa_wo = w_ref[r + D:r + 2 * D, 0:D]
        ca_w = w_ref[r + 2 * D:r + 3 * D, 0:3 * D]
        ca_wo = w_ref[r + 3 * D:r + 4 * D, 0:D]
        ff_w1 = w_ref[r + 4 * D:r + 5 * D, 0:FF]
        ff_w2 = w_ref[r + 5 * D:r + 5 * D + FF, 0:D]
        vb = l * VEC_ROWS_PER_LAYER
        sa_b, sa_bo = vec(vb + 0, 3 * D), vec(vb + 1, D)
        ca_b, ca_bo = vec(vb + 2, 3 * D), vec(vb + 3, D)
        ff_b1, ff_b2 = vec(vb + 4, FF), vec(vb + 5, D)
        n1g, n1b = vec(vb + 6, D), vec(vb + 7, D)
        n2g, n2b = vec(vb + 8, D), vec(vb + 9, D)
        n3g, n3b = vec(vb + 10, D), vec(vb + 11, D)

        # ---- self-attention: q = k = x + query_pos, v = x  (one fused QKV matmul) ----
        qk_in = x + qpos
        proj = jnp.dot(jnp.concatenate([qk_in, x], axis=0), sa_w,
                       preferred_element_type=f32)                    # (2*NQ, 3D)
        q = proj[:NQ, 0:D] + sa_b[:, 0:D]
        k = proj[:NQ, D:2 * D] + sa_b[:, D:2 * D]
        v = proj[NQ:, 2 * D:3 * D] + sa_b[:, 2 * D:3 * D]
        attn = mha(q, k, v, mask_self)
        x = layernorm(x + jnp.dot(attn, sa_wo, preferred_element_type=f32) + sa_bo,
                      n1g, n1b)

        # ---- cross-attention: q = x + query_pos, k = memory + pos, v = memory ----
        proj = jnp.dot(jnp.concatenate([x + qpos, kmem, memf], axis=0), ca_w,
                       preferred_element_type=f32)                    # (NQ+2*NK, 3D)
        q = proj[0:NQ, 0:D] + ca_b[:, 0:D]
        k = proj[NQ:NQ + NK, D:2 * D] + ca_b[:, D:2 * D]
        v = proj[NQ + NK:, 2 * D:3 * D] + ca_b[:, 2 * D:3 * D]
        attn = mha(q, k, v, mask_cross)
        x = layernorm(x + jnp.dot(attn, ca_wo, preferred_element_type=f32) + ca_bo,
                      n2g, n2b)

        # ---- FFN: linear1 -> ReLU -> linear2, residual + LayerNorm ----
        h1 = jnp.maximum(jnp.dot(x, ff_w1, preferred_element_type=f32) + ff_b1, 0.0)
        f = jnp.dot(h1, ff_w2, preferred_element_type=f32) + ff_b2
        x = layernorm(x + f, n3g, n3b)

    # final decoder LayerNorm, then store the `.unsqueeze(0)` output directly.
    fin = L * VEC_ROWS_PER_LAYER
    x = layernorm(x, vec(fin, D), vec(fin + 1, D))
    out_ref[...] = x.reshape(1, SQ, B, D).astype(out_ref.dtype)


# ------------------------- wrapper (no extra XLA ops) -------------------------

def transformer_decoder(w_slab, vec_slab, tgt, memory, pos, query_pos):
    # tgt/query_pos: (SQ, B, D); memory/pos: (SK, B, D). return_intermediate=False.
    sq, b, d = tgt.shape
    vmem = pl.BlockSpec(memory_space=pltpu.MemorySpace.VMEM)
    return pl.pallas_call(
        _decoder_kernel,
        out_shape=jax.ShapeDtypeStruct((1, sq, b, d), tgt.dtype),
        in_specs=[vmem] * 6,
        out_specs=vmem,
    )(tgt, memory, pos, query_pos, w_slab, vec_slab)


# ------------------------- parameter init & one-time packing -------------------------

def init_params(key):
    """Random parameters in PyTorch layout (in_proj_weight (3D,D), linear (out,in), ...)."""
    def w(k, shape, scale=0.02):
        return (scale * jax.random.normal(k, shape)).astype(jnp.float32)
    D, FF = D_MODEL, DIM_FF
    layers = []
    keys = jax.random.split(key, NUM_LAYERS * 6)
    for l in range(NUM_LAYERS):
        k0, k1, k2, k3, k4, k5 = keys[6 * l:6 * l + 6]
        layers.append(dict(
            sa_in_w=w(k0, (3 * D, D)), sa_in_b=jnp.zeros((3 * D,), jnp.float32),
            sa_out_w=w(k1, (D, D)),    sa_out_b=jnp.zeros((D,), jnp.float32),
            ca_in_w=w(k2, (3 * D, D)), ca_in_b=jnp.zeros((3 * D,), jnp.float32),
            ca_out_w=w(k3, (D, D)),    ca_out_b=jnp.zeros((D,), jnp.float32),
            lin1_w=w(k4, (FF, D)),     lin1_b=jnp.zeros((FF,), jnp.float32),
            lin2_w=w(k5, (D, FF)),     lin2_b=jnp.zeros((D,), jnp.float32),
            n1_g=jnp.ones((D,), jnp.float32), n1_b=jnp.zeros((D,), jnp.float32),
            n2_g=jnp.ones((D,), jnp.float32), n2_b=jnp.zeros((D,), jnp.float32),
            n3_g=jnp.ones((D,), jnp.float32), n3_b=jnp.zeros((D,), jnp.float32),
        ))
    final = dict(g=jnp.ones((D_MODEL,), jnp.float32), b=jnp.zeros((D_MODEL,), jnp.float32))
    return layers, final


def _pad_cols(a, width=LANES):
    return jnp.pad(a, ((0, 0), (0, width - a.shape[1])))


def pack_params(layers, final):
    """Transpose PyTorch (out,in) weights to (in,out), pack QKV along columns,
    fold the 1/sqrt(head_dim) softmax scale into the Q block, and concatenate
    everything into one weight slab + one bias/LayerNorm slab (done ONCE)."""
    D = D_MODEL
    scale = 1.0 / (HEAD_DIM ** 0.5)
    w_rows, v_rows = [], []

    def qkv(in_w, in_b):
        wq, wk, wv = in_w[:D], in_w[D:2 * D], in_w[2 * D:]
        bq, bk, bv = in_b[:D], in_b[D:2 * D], in_b[2 * D:]
        wmat = jnp.concatenate([wq.T * scale, wk.T, wv.T], axis=1)   # (D, 3D)
        bvec = jnp.concatenate([bq * scale, bk, bv])[None, :]        # (1, 3D)
        return wmat, bvec

    for p in layers:
        sa_w, sa_b = qkv(p["sa_in_w"], p["sa_in_b"])
        ca_w, ca_b = qkv(p["ca_in_w"], p["ca_in_b"])
        w_rows += [_pad_cols(sa_w), _pad_cols(p["sa_out_w"].T),
                   _pad_cols(ca_w), _pad_cols(p["ca_out_w"].T),
                   _pad_cols(p["lin1_w"].T), _pad_cols(p["lin2_w"].T)]
        v_rows += [sa_b, p["sa_out_b"][None], ca_b, p["ca_out_b"][None],
                   p["lin1_b"][None], p["lin2_b"][None],
                   p["n1_g"][None], p["n1_b"][None],
                   p["n2_g"][None], p["n2_b"][None],
                   p["n3_g"][None], p["n3_b"][None]]
    v_rows += [final["g"][None], final["b"][None]]

    w_slab = jnp.concatenate(w_rows, axis=0)                         # (L*224, 128)
    vec_slab = jnp.concatenate([_pad_cols(r) for r in v_rows], axis=0)  # (12L+2, 128)
    return w_slab, vec_slab


if __name__ == "__main__":
    key = jax.random.PRNGKey(0)
    kp, kt, km, kpos, kqp = jax.random.split(key, 5)
    layers, final = init_params(kp)
    w_slab, vec_slab = pack_params(layers, final)

    SQ, SK, B = 8, 16, 2          # num queries, memory length, batch
    tgt = jax.random.normal(kt, (SQ, B, D_MODEL), jnp.float32)
    memory = jax.random.normal(km, (SK, B, D_MODEL), jnp.float32)
    pos = jax.random.normal(kpos, (SK, B, D_MODEL), jnp.float32)
    query_pos = jax.random.normal(kqp, (SQ, B, D_MODEL), jnp.float32)

    fwd = jax.jit(transformer_decoder)
    out = jax.block_until_ready(fwd(w_slab, vec_slab, tgt, memory, pos, query_pos))
    assert out.shape == (1, SQ, B, D_MODEL), out.shape
    assert bool(jnp.all(jnp.isfinite(out)))
    print("KERNEL_OK")
</pallas_src>

<mosaic_0001>
module attributes {stable_mosaic.version = 11 : i64} {
  func.func @_decoder_kernel(%arg0: memref<8x2x32xf32, #tpu.memory_space<vmem>>, %arg1: memref<16x2x32xf32, #tpu.memory_space<vmem>>, %arg2: memref<16x2x32xf32, #tpu.memory_space<vmem>>, %arg3: memref<8x2x32xf32, #tpu.memory_space<vmem>>, %arg4: memref<448x128xf32, #tpu.memory_space<vmem>>, %arg5: memref<26x128xf32, #tpu.memory_space<vmem>>, %arg6: memref<1x8x2x32xf32, #tpu.memory_space<vmem>>) attributes {dimension_semantics = [], scalar_prefetch = 0 : i64, scratch_operands = 0 : i64, tpu.core_type = #tpu.core_type<tc>} {
    %c0 = arith.constant 0 : index
    %c0_0 = arith.constant 0 : index
    %c0_1 = arith.constant 0 : index
    %0 = vector.load %arg0[%c0, %c0_0, %c0_1] : memref<8x2x32xf32, #tpu.memory_space<vmem>>, vector<8x2x32xf32>
    %1 = vector.shape_cast %0 : vector<8x2x32xf32> to vector<16x32xf32>
    %c0_2 = arith.constant 0 : index
    %c0_3 = arith.constant 0 : index
    %c0_4 = arith.constant 0 : index
    %2 = vector.load %arg3[%c0_2, %c0_3, %c0_4] : memref<8x2x32xf32, #tpu.memory_space<vmem>>, vector<8x2x32xf32>
    %3 = vector.shape_cast %2 : vector<8x2x32xf32> to vector<16x32xf32>
    %c0_5 = arith.constant 0 : index
    %c0_6 = arith.constant 0 : index
    %c0_7 = arith.constant 0 : index
    %4 = vector.load %arg1[%c0_5, %c0_6, %c0_7] : memref<16x2x32xf32, #tpu.memory_space<vmem>>, vector<16x2x32xf32>
    %5 = vector.shape_cast %4 : vector<16x2x32xf32> to vector<32x32xf32>
    %c0_8 = arith.constant 0 : index
    %c0_9 = arith.constant 0 : index
    %c0_10 = arith.constant 0 : index
    %6 = vector.load %arg2[%c0_8, %c0_9, %c0_10] : memref<16x2x32xf32, #tpu.memory_space<vmem>>, vector<16x2x32xf32>
    %7 = vector.shape_cast %6 : vector<16x2x32xf32> to vector<32x32xf32>
    %8 = arith.addf %5, %7 : vector<32x32xf32>
    %9 = tpu.iota {dimensions = array<i32: 0>} : vector<2x2xi32>
    %10 = tpu.iota {dimensions = array<i32: 1>} : vector<2x2xi32>
    %c0_i32 = arith.constant 0 : i32
    %11 = vector.broadcast %c0_i32 : i32 to vector<2x2xi32>
    %12 = arith.addi %9, %11 : vector<2x2xi32>
    %13 = arith.cmpi eq, %12, %10 : vector<2x2xi32>
    %14 = arith.extui %13 : vector<2x2xi1> to vector<2x2xi32>
    %15 = arith.sitofp %14 : vector<2x2xi32> to vector<2x2xf32>
    %16 = vector.shape_cast %15 : vector<2x2xf32> to vector<1x2x2xf32>
    %17 = vector.shape_cast %16 : vector<1x2x2xf32> to vector<1x2x2xf32>
    %18 = vector.broadcast %17 : vector<1x2x2xf32> to vector<8x2x2xf32>
    %19 = vector.shape_cast %18 : vector<8x2x2xf32> to vector<16x2xf32>
    %20 = vector.shape_cast %15 : vector<2x2xf32> to vector<1x2x2xf32>
    %21 = vector.shape_cast %20 : vector<1x2x2xf32> to vector<1x2x2xf32>
    %22 = vector.broadcast %21 : vector<1x2x2xf32> to vector<16x2x2xf32>
    %23 = vector.shape_cast %22 : vector<16x2x2xf32> to vector<32x2xf32>
    "tpu.trace_start"() <{level = 10 : i32, message = "ib,jb->ij"}> : () -> ()
    %cst = arith.constant dense<0.000000e+00> : vector<16x16xf32>
    %24 = tpu.matmul %19, %19, %cst {dimension_numbers = #tpu.dot_dimension_numbers<[1], [1], [0], [0], [0, 0, 1, 0], [], []>} : vector<16x2xf32>, vector<16x2xf32>, vector<16x16xf32> -> vector<16x16xf32>
    %cst_11 = arith.constant 5.000000e-01 : f32
    "tpu.trace_stop"() : () -> ()
    %25 = vector.broadcast %cst_11 : f32 to vector<16x16xf32>
    %26 = arith.cmpf ogt, %24, %25 : vector<16x16xf32>
    "tpu.trace_start"() <{level = 10 : i32, message = "ib,jb->ij"}> : () -> ()
    %cst_12 = arith.constant dense<0.000000e+00> : vector<16x32xf32>
    %27 = tpu.matmul %19, %23, %cst_12 {dimension_numbers = #tpu.dot_dimension_numbers<[1], [1], [0], [0], [0, 0, 1, 0], [], []>} : vector<16x2xf32>, vector<32x2xf32>, vector<16x32xf32> -> vector<16x32xf32>
    %cst_13 = arith.constant 5.000000e-01 : f32
    "tpu.trace_stop"() : () -> ()
    %28 = vector.broadcast %cst_13 : f32 to vector<16x32xf32>
    %29 = arith.cmpf ogt, %27, %28 : vector<16x32xf32>
    %c0_14 = arith.constant 0 : index
    %c0_15 = arith.constant 0 : index
    %30 = vector.load %arg4[%c0_14, %c0_15] : memref<448x128xf32, #tpu.memory_space<vmem>>, vector<32x96xf32>
    %c32 = arith.constant 32 : index
    %c0_16 = arith.constant 0 : index
    %31 = vector.load %arg4[%c32, %c0_16] : memref<448x128xf32, #tpu.memory_space<vmem>>, vector<32x32xf32>
    %c64 = arith.constant 64 : index
    %c0_17 = arith.constant 0 : index
    %32 = vector.load %arg4[%c64, %c0_17] : memref<448x128xf32, #tpu.memory_space<vmem>>, vector<32x96xf32>
    %c96 = arith.constant 96 : index
    %c0_18 = arith.constant 0 : index
    %33 = vector.load %arg4[%c96, %c0_18] : memref<448x128xf32, #tpu.memory_space<vmem>>, vector<32x32xf32>
    %c128 = arith.constant 128 : index
    %c0_19 = arith.constant 0 : index
    %34 = vector.load %arg4[%c128, %c0_19] : memref<448x128xf32, #tpu.memory_space<vmem>>, vector<32x64xf32>
    %c160 = arith.constant 160 : index
    %c0_20 = arith.constant 0 : index
    %35 = vector.load %arg4[%c160, %c0_20] : memref<448x128xf32, #tpu.memory_space<vmem>>, vector<64x32xf32>
    %c0_21 = arith.constant 0 : index
    %c0_22 = arith.constant 0 : index
    %36 = vector.load %arg5[%c0_21, %c0_22] : memref<26x128xf32, #tpu.memory_space<vmem>>, vector<1x96xf32>
    %c1 = arith.constant 1 : index
    %c0_23 = arith.constant 0 : index
    %37 = vector.load %arg5[%c1, %c0_23] : memref<26x128xf32, #tpu.memory_space<vmem>>, vector<1x32xf32>
    %c2 = arith.constant 2 : index
    %c0_24 = arith.constant 0 : index
    %38 = vector.load %arg5[%c2, %c0_24] : memref<26x128xf32, #tpu.memory_space<vmem>>, vector<1x96xf32>
    %c3 = arith.constant 3 : index
    %c0_25 = arith.constant 0 : index
    %39 = vector.load %arg5[%c3, %c0_25] : memref<26x128xf32, #tpu.memory_space<vmem>>, vector<1x32xf32>
    %c4 = arith.constant 4 : index
    %c0_26 = arith.constant 0 : index
    %40 = vector.load %arg5[%c4, %c0_26] : memref<26x128xf32, #tpu.memory_space<vmem>>, vector<1x64xf32>
    %c5 = arith.constant 5 : index
    %c0_27 = arith.constant 0 : index
    %41 = vector.load %arg5[%c5, %c0_27] : memref<26x128xf32, #tpu.memory_space<vmem>>, vector<1x32xf32>
    %c6 = arith.constant 6 : index
    %c0_28 = arith.constant 0 : index
    %42 = vector.load %arg5[%c6, %c0_28] : memref<26x128xf32, #tpu.memory_space<vmem>>, vector<1x32xf32>
    %c7 = arith.constant 7 : index
    %c0_29 = arith.constant 0 : index
    %43 = vector.load %arg5[%c7, %c0_29] : memref<26x128xf32, #tpu.memory_space<vmem>>, vector<1x32xf32>
    %c8 = arith.constant 8 : index
    %c0_30 = arith.constant 0 : index
    %44 = vector.load %arg5[%c8, %c0_30] : memref<26x128xf32, #tpu.memory_space<vmem>>, vector<1x32xf32>
    %c9 = arith.constant 9 : index
    %c0_31 = arith.constant 0 : index
    %45 = vector.load %arg5[%c9, %c0_31] : memref<26x128xf32, #tpu.memory_space<vmem>>, vector<1x32xf32>
    %c10 = arith.constant 10 : index
    %c0_32 = arith.constant 0 : index
    %46 = vector.load %arg5[%c10, %c0_32] : memref<26x128xf32, #tpu.memory_space<vmem>>, vector<1x32xf32>
    %c11 = arith.constant 11 : index
    %c0_33 = arith.constant 0 : index
    %47 = vector.load %arg5[%c11, %c0_33] : memref<26x128xf32, #tpu.memory_space<vmem>>, vector<1x32xf32>
    %48 = arith.addf %1, %3 : vector<16x32xf32>
    %49 = tpu.concatenate %48, %1 in 0 : vector<16x32xf32>, vector<16x32xf32> -> vector<32x32xf32>
    %cst_34 = arith.constant dense<0.000000e+00> : vector<32x96xf32>
    %50 = tpu.matmul %49, %30, %cst_34 {dimension_numbers = #tpu.dot_dimension_numbers<[1], [0], [0], [1], [0, 0, 1, 1], [], []>} : vector<32x32xf32>, vector<32x96xf32>, vector<32x96xf32> -> vector<32x96xf32>
    %51 = vector.extract_strided_slice %50 {offsets = [0, 0], sizes = [16, 32], strides = [1, 1]} : vector<32x96xf32> to vector<16x32xf32>
    %52 = vector.extract_strided_slice %36 {offsets = [0, 0], sizes = [1, 32], strides = [1, 1]} : vector<1x96xf32> to vector<1x32xf32>
    %53 = vector.broadcast %52 : vector<1x32xf32> to vector<16x32xf32>
    %54 = arith.addf %51, %53 : vector<16x32xf32>
    %55 = vector.extract_strided_slice %50 {offsets = [0, 32], sizes = [16, 32], strides = [1, 1]} : vector<32x96xf32> to vector<16x32xf32>
    %56 = vector.extract_strided_slice %36 {offsets = [0, 32], sizes = [1, 32], strides = [1, 1]} : vector<1x96xf32> to vector<1x32xf32>
    %57 = vector.broadcast %56 : vector<1x32xf32> to vector<16x32xf32>
    %58 = arith.addf %55, %57 : vector<16x32xf32>
    %59 = vector.extract_strided_slice %50 {offsets = [16, 64], sizes = [16, 32], strides = [1, 1]} : vector<32x96xf32> to vector<16x32xf32>
    %60 = vector.extract_strided_slice %36 {offsets = [0, 64], sizes = [1, 32], strides = [1, 1]} : vector<1x96xf32> to vector<1x32xf32>
    %61 = vector.broadcast %60 : vector<1x32xf32> to vector<16x32xf32>
    %62 = arith.addf %59, %61 : vector<16x32xf32>
    %63 = vector.extract_strided_slice %54 {offsets = [0, 0], sizes = [16, 8], strides = [1, 1]} : vector<16x32xf32> to vector<16x8xf32>
    %64 = vector.extract_strided_slice %58 {offsets = [0, 0], sizes = [16, 8], strides = [1, 1]} : vector<16x32xf32> to vector<16x8xf32>
    "tpu.trace_start"() <{level = 10 : i32, message = "qd,kd->qk"}> : () -> ()
    %cst_35 = arith.constant dense<0.000000e+00> : vector<16x16xf32>
    %65 = tpu.matmul %63, %64, %cst_35 {dimension_numbers = #tpu.dot_dimension_numbers<[1], [1], [0], [0], [0, 0, 1, 0], [], []>} : vector<16x8xf32>, vector<16x8xf32>, vector<16x16xf32> -> vector<16x16xf32>
    %cst_36 = arith.constant -1.000000e+30 : f32
    "tpu.trace_stop"() : () -> ()
    %66 = vector.broadcast %cst_36 : f32 to vector<16x16xf32>
    %67 = arith.select %26, %65, %66 : vector<16x16xi1>, vector<16x16xf32>
    %cst_37 = arith.constant dense<0xFF800000> : vector<16xf32>
    %68 = vector.multi_reduction <maximumf>, %67, %cst_37 [1] : vector<16x16xf32> to vector<16xf32>
    %69 = vector.shape_cast %68 : vector<16xf32> to vector<16x1xf32>
    %70 = vector.broadcast %69 : vector<16x1xf32> to vector<16x16xf32>
    %71 = arith.subf %67, %70 : vector<16x16xf32>
    %72 = math.exp %71 : vector<16x16xf32>
    %cst_38 = arith.constant dense<0.000000e+00> : vector<16xf32>
    %73 = vector.multi_reduction <add>, %72, %cst_38 [1] : vector<16x16xf32> to vector<16xf32>
    %74 = vector.shape_cast %73 : vector<16xf32> to vector<16x1xf32>
    %75 = tpu.reciprocal %74 {approx = true} : vector<16x1xf32> -> vector<16x1xf32>
    %76 = vector.broadcast %75 : vector<16x1xf32> to vector<16x16xf32>
    %77 = arith.mulf %72, %76 : vector<16x16xf32>
    %78 = vector.extract_strided_slice %62 {offsets = [0, 0], sizes = [16, 8], strides = [1, 1]} : vector<16x32xf32> to vector<16x8xf32>
    %cst_39 = arith.constant dense<0.000000e+00> : vector<16x8xf32>
    %79 = tpu.matmul %77, %78, %cst_39 {dimension_numbers = #tpu.dot_dimension_numbers<[1], [0], [0], [1], [0, 0, 1, 1], [], []>} : vector<16x16xf32>, vector<16x8xf32>, vector<16x8xf32> -> vector<16x8xf32>
    %80 = vector.extract_strided_slice %54 {offsets = [0, 8], sizes = [16, 8], strides = [1, 1]} : vector<16x32xf32> to vector<16x8xf32>
    %81 = vector.extract_strided_slice %58 {offsets = [0, 8], sizes = [16, 8], strides = [1, 1]} : vector<16x32xf32> to vector<16x8xf32>
    "tpu.trace_start"() <{level = 10 : i32, message = "qd,kd->qk"}> : () -> ()
    %cst_40 = arith.constant dense<0.000000e+00> : vector<16x16xf32>
    %82 = tpu.matmul %80, %81, %cst_40 {dimension_numbers = #tpu.dot_dimension_numbers<[1], [1], [0], [0], [0, 0, 1, 0], [], []>} : vector<16x8xf32>, vector<16x8xf32>, vector<16x16xf32> -> vector<16x16xf32>
    %cst_41 = arith.constant -1.000000e+30 : f32
    "tpu.trace_stop"() : () -> ()
    %83 = vector.broadcast %cst_41 : f32 to vector<16x16xf32>
    %84 = arith.select %26, %82, %83 : vector<16x16xi1>, vector<16x16xf32>
    %cst_42 = arith.constant dense<0xFF800000> : vector<16xf32>
    %85 = vector.multi_reduction <maximumf>, %84, %cst_42 [1] : vector<16x16xf32> to vector<16xf32>
    %86 = vector.shape_cast %85 : vector<16xf32> to vector<16x1xf32>
    %87 = vector.broadcast %86 : vector<16x1xf32> to vector<16x16xf32>
    %88 = arith.subf %84, %87 : vector<16x16xf32>
    %89 = math.exp %88 : vector<16x16xf32>
    %cst_43 = arith.constant dense<0.000000e+00> : vector<16xf32>
    %90 = vector.multi_reduction <add>, %89, %cst_43 [1] : vector<16x16xf32> to vector<16xf32>
    %91 = vector.shape_cast %90 : vector<16xf32> to vector<16x1xf32>
    %92 = tpu.reciprocal %91 {approx = true} : vector<16x1xf32> -> vector<16x1xf32>
    %93 = vector.broadcast %92 : vector<16x1xf32> to vector<16x16xf32>
    %94 = arith.mulf %89, %93 : vector<16x16xf32>
    %95 = vector.extract_strided_slice %62 {offsets = [0, 8], sizes = [16, 8], strides = [1, 1]} : vector<16x32xf32> to vector<16x8xf32>
    %cst_44 = arith.constant dense<0.000000e+00> : vector<16x8xf32>
    %96 = tpu.matmul %94, %95, %cst_44 {dimension_numbers = #tpu.dot_dimension_numbers<[1], [0], [0], [1], [0, 0, 1, 1], [], []>} : vector<16x16xf32>, vector<16x8xf32>, vector<16x8xf32> -> vector<16x8xf32>
    %97 = vector.extract_strided_slice %54 {offsets = [0, 16], sizes = [16, 8], strides = [1, 1]} : vector<16x32xf32> to vector<16x8xf32>
    %98 = vector.extract_strided_slice %58 {offsets = [0, 16], sizes = [16, 8], strides = [1, 1]} : vector<16x32xf32> to vector<16x8xf32>
    "tpu.trace_start"() <{level = 10 : i32, message = "qd,kd->qk"}> : () -> ()
    %cst_45 = arith.constant dense<0.000000e+00> : vector<16x16xf32>
    %99 = tpu.matmul %97, %98, %cst_45 {dimension_numbers = #tpu.dot_dimension_numbers<[1], [1], [0], [0], [0, 0, 1, 0], [], []>} : vector<16x8xf32>, vector<16x8xf32>, vector<16x16xf32> -> vector<16x16xf32>
    %cst_46 = arith.constant -1.000000e+30 : f32
    "tpu.trace_stop"() : () -> ()
    %100 = vector.broadcast %cst_46 : f32 to vector<16x16xf32>
    %101 = arith.select %26, %99, %100 : vector<16x16xi1>, vector<16x16xf32>
    %cst_47 = arith.constant dense<0xFF800000> : vector<16xf32>
    %102 = vector.multi_reduction <maximumf>, %101, %cst_47 [1] : vector<16x16xf32> to vector<16xf32>
    %103 = vector.shape_cast %102 : vector<16xf32> to vector<16x1xf32>
    %104 = vector.broadcast %103 : vector<16x1xf32> to vector<16x16xf32>
    %105 = arith.subf %101, %104 : vector<16x16xf32>
    %106 = math.exp %105 : vector<16x16xf32>
    %cst_48 = arith.constant dense<0.000000e+00> : vector<16xf32>
    %107 = vector.multi_reduction <add>, %106, %cst_48 [1] : vector<16x16xf32> to vector<16xf32>
    %108 = vector.shape_cast %107 : vector<16xf32> to vector<16x1xf32>
    %109 = tpu.reciprocal %108 {approx = true} : vector<16x1xf32> -> vector<16x1xf32>
    %110 = vector.broadcast %109 : vector<16x1xf32> to vector<16x16xf32>
    %111 = arith.mulf %106, %110 : vector<16x16xf32>
    %112 = vector.extract_strided_slice %62 {offsets = [0, 16], sizes = [16, 8], strides = [1, 1]} : vector<16x32xf32> to vector<16x8xf32>
    %cst_49 = arith.constant dense<0.000000e+00> : vector<16x8xf32>
    %113 = tpu.matmul %111, %112, %cst_49 {dimension_numbers = #tpu.dot_dimension_numbers<[1], [0], [0], [1], [0, 0, 1, 1], [], []>} : vector<16x16xf32>, vector<16x8xf32>, vector<16x8xf32> -> vector<16x8xf32>
    %114 = vector.extract_strided_slice %54 {offsets = [0, 24], sizes = [16, 8], strides = [1, 1]} : vector<16x32xf32> to vector<16x8xf32>
    %115 = vector.extract_strided_slice %58 {offsets = [0, 24], sizes = [16, 8], strides = [1, 1]} : vector<16x32xf32> to vector<16x8xf32>
    "tpu.trace_start"() <{level = 10 : i32, message = "qd,kd->qk"}> : () -> ()
    %cst_50 = arith.constant dense<0.000000e+00> : vector<16x16xf32>
    %116 = tpu.matmul %114, %115, %cst_50 {dimension_numbers = #tpu.dot_dimension_numbers<[1], [1], [0], [0], [0, 0, 1, 0], [], []>} : vector<16x8xf32>, vector<16x8xf32>, vector<16x16xf32> -> vector<16x16xf32>
    %cst_51 = arith.constant -1.000000e+30 : f32
    "tpu.trace_stop"() : () -> ()
    %117 = vector.broadcast %cst_51 : f32 to vector<16x16xf32>
    %118 = arith.select %26, %116, %117 : vector<16x16xi1>, vector<16x16xf32>
    %cst_52 = arith.constant dense<0xFF800000> : vector<16xf32>
    %119 = vector.multi_reduction <maximumf>, %118, %cst_52 [1] : vector<16x16xf32> to vector<16xf32>
    %120 = vector.shape_cast %119 : vector<16xf32> to vector<16x1xf32>
    %121 = vector.broadcast %120 : vector<16x1xf32> to vector<16x16xf32>
    %122 = arith.subf %118, %121 : vector<16x16xf32>
    %123 = math.exp %122 : vector<16x16xf32>
    %cst_53 = arith.constant dense<0.000000e+00> : vector<16xf32>
    %124 = vector.multi_reduction <add>, %123, %cst_53 [1] : vector<16x16xf32> to vector<16xf32>
    %125 = vector.shape_cast %124 : vector<16xf32> to vector<16x1xf32>
    %126 = tpu.reciprocal %125 {approx = true} : vector<16x1xf32> -> vector<16x1xf32>
    %127 = vector.broadcast %126 : vector<16x1xf32> to vector<16x16xf32>
    %128 = arith.mulf %123, %127 : vector<16x16xf32>
    %129 = vector.extract_strided_slice %62 {offsets = [0, 24], sizes = [16, 8], strides = [1, 1]} : vector<16x32xf32> to vector<16x8xf32>
    %cst_54 = arith.constant dense<0.000000e+00> : vector<16x8xf32>
    %130 = tpu.matmul %128, %129, %cst_54 {dimension_numbers = #tpu.dot_dimension_numbers<[1], [0], [0], [1], [0, 0, 1, 1], [], []>} : vector<16x16xf32>, vector<16x8xf32>, vector<16x8xf32> -> vector<16x8xf32>
    %131 = tpu.concatenate %79, %96, %113, %130 in 1 : vector<16x8xf32>, vector<16x8xf32>, vector<16x8xf32>, vector<16x8xf32> -> vector<16x32xf32>
    %cst_55 = arith.constant dense<0.000000e+00> : vector<16x32xf32>
    %132 = tpu.matmul %131, %31, %cst_55 {dimension_numbers = #tpu.dot_dimension_numbers<[1], [0], [0], [1], [0, 0, 1, 1], [], []>} : vector<16x32xf32>, vector<32x32xf32>, vector<16x32xf32> -> vector<16x32xf32>
    %133 = arith.addf %1, %132 : vector<16x32xf32>
    %134 = vector.broadcast %37 : vector<1x32xf32> to vector<16x32xf32>
    %135 = arith.addf %133, %134 : vector<16x32xf32>
    %cst_56 = arith.constant dense<0.000000e+00> : vector<16xf32>
    %136 = vector.multi_reduction <add>, %135, %cst_56 [1] : vector<16x32xf32> to vector<16xf32>
    %137 = vector.shape_cast %136 : vector<16xf32> to vector<16x1xf32>
    %cst_57 = arith.constant 3.200000e+01 : f32
    %138 = vector.broadcast %cst_57 : f32 to vector<16x1xf32>
    %139 = arith.divf %137, %138 : vector<16x1xf32>
    %140 = vector.broadcast %139 : vector<16x1xf32> to vector<16x32xf32>
    %141 = arith.subf %135, %140 : vector<16x32xf32>
    %142 = vector.broadcast %139 : vector<16x1xf32> to vector<16x32xf32>
    %143 = arith.subf %135, %142 : vector<16x32xf32>
    %144 = arith.mulf %141, %143 : vector<16x32xf32>
    %cst_58 = arith.constant dense<0.000000e+00> : vector<16xf32>
    %145 = vector.multi_reduction <add>, %144, %cst_58 [1] : vector<16x32xf32> to vector<16xf32>
    %146 = vector.shape_cast %145 : vector<16xf32> to vector<16x1xf32>
    %cst_59 = arith.constant 3.200000e+01 : f32
    %147 = vector.broadcast %cst_59 : f32 to vector<16x1xf32>
    %148 = arith.divf %146, %147 : vector<16x1xf32>
    %149 = vector.broadcast %139 : vector<16x1xf32> to vector<16x32xf32>
    %150 = arith.subf %135, %149 : vector<16x32xf32>
    %cst_60 = arith.constant 9.99999974E-6 : f32
    %151 = vector.broadcast %cst_60 : f32 to vector<16x1xf32>
    %152 = arith.addf %148, %151 : vector<16x1xf32>
    %153 = math.rsqrt %152 : vector<16x1xf32>
    %154 = vector.broadcast %153 : vector<16x1xf32> to vector<16x32xf32>
    %155 = arith.mulf %150, %154 : vector<16x32xf32>
    %156 = vector.broadcast %42 : vector<1x32xf32> to vector<16x32xf32>
    %157 = arith.mulf %155, %156 : vector<16x32xf32>
    %158 = vector.broadcast %43 : vector<1x32xf32> to vector<16x32xf32>
    %159 = arith.addf %157, %158 : vector<16x32xf32>
    %160 = arith.addf %159, %3 : vector<16x32xf32>
    %161 = tpu.concatenate %160, %8, %5 in 0 : vector<16x32xf32>, vector<32x32xf32>, vector<32x32xf32> -> vector<80x32xf32>
    %cst_61 = arith.constant dense<0.000000e+00> : vector<80x96xf32>
    %162 = tpu.matmul %161, %32, %cst_61 {dimension_numbers = #tpu.dot_dimension_numbers<[1], [0], [0], [1], [0, 0, 1, 1], [], []>} : vector<80x32xf32>, vector<32x96xf32>, vector<80x96xf32> -> vector<80x96xf32>
    %163 = vector.extract_strided_slice %162 {offsets = [0, 0], sizes = [16, 32], strides = [1, 1]} : vector<80x96xf32> to vector<16x32xf32>
    %164 = vector.extract_strided_slice %38 {offsets = [0, 0], sizes = [1, 32], strides = [1, 1]} : vector<1x96xf32> to vector<1x32xf32>
    %165 = vector.broadcast %164 : vector<1x32xf32> to vector<16x32xf32>
    %166 = arith.addf %163, %165 : vector<16x32xf32>
    %167 = vector.extract_strided_slice %162 {offsets = [16, 32], sizes = [32, 32], strides = [1, 1]} : vector<80x96xf32> to vector<32x32xf32>
    %168 = vector.extract_strided_slice %38 {offsets = [0, 32], sizes = [1, 32], strides = [1, 1]} : vector<1x96xf32> to vector<1x32xf32>
    %169 = vector.broadcast %168 : vector<1x32xf32> to vector<32x32xf32>
    %170 = arith.addf %167, %169 : vector<32x32xf32>
    %171 = vector.extract_strided_slice %162 {offsets = [48, 64], sizes = [32, 32], strides = [1, 1]} : vector<80x96xf32> to vector<32x32xf32>
    %172 = vector.extract_strided_slice %38 {offsets = [0, 64], sizes = [1, 32], strides = [1, 1]} : vector<1x96xf32> to vector<1x32xf32>
    %173 = vector.broadcast %172 : vector<1x32xf32> to vector<32x32xf32>
    %174 = arith.addf %171, %173 : vector<32x32xf32>
    %175 = vector.extract_strided_slice %166 {offsets = [0, 0], sizes = [16, 8], strides = [1, 1]} : vector<16x32xf32> to vector<16x8xf32>
    %176 = vector.extract_strided_slice %170 {offsets = [0, 0], sizes = [32, 8], strides = [1, 1]} : vector<32x32xf32> to vector<32x8xf32>
    "tpu.trace_start"() <{level = 10 : i32, message = "qd,kd->qk"}> : () -> ()
    %cst_62 = arith.constant dense<0.000000e+00> : vector<16x32xf32>
    %177 = tpu.matmul %175, %176, %cst_62 {dimension_numbers = #tpu.dot_dimension_numbers<[1], [1], [0], [0], [0, 0, 1, 0], [], []>} : vector<16x8xf32>, vector<32x8xf32>, vector<16x32xf32> -> vector<16x32xf32>
    %cst_63 = arith.constant -1.000000e+30 : f32
    "tpu.trace_stop"() : () -> ()
    %178 = vector.broadcast %cst_63 : f32 to vector<16x32xf32>
    %179 = arith.select %29, %177, %178 : vector<16x32xi1>, vector<16x32xf32>
    %cst_64 = arith.constant dense<0xFF800000> : vector<16xf32>
    %180 = vector.multi_reduction <maximumf>, %179, %cst_64 [1] : vector<16x32xf32> to vector<16xf32>
    %181 = vector.shape_cast %180 : vector<16xf32> to vector<16x1xf32>
    %182 = vector.broadcast %181 : vector<16x1xf32> to vector<16x32xf32>
    %183 = arith.subf %179, %182 : vector<16x32xf32>
    %184 = math.exp %183 : vector<16x32xf32>
    %cst_65 = arith.constant dense<0.000000e+00> : vector<16xf32>
    %185 = vector.multi_reduction <add>, %184, %cst_65 [1] : vector<16x32xf32> to vector<16xf32>
    %186 = vector.shape_cast %185 : vector<16xf32> to vector<16x1xf32>
    %187 = tpu.reciprocal %186 {approx = true} : vector<16x1xf32> -> vector<16x1xf32>
    %188 = vector.broadcast %187 : vector<16x1xf32> to vector<16x32xf32>
    %189 = arith.mulf %184, %188 : vector<16x32xf32>
    %190 = vector.extract_strided_slice %174 {offsets = [0, 0], sizes = [32, 8], strides = [1, 1]} : vector<32x32xf32> to vector<32x8xf32>
    %cst_66 = arith.constant dense<0.000000e+00> : vector<16x8xf32>
    %191 = tpu.matmul %189, %190, %cst_66 {dimension_numbers = #tpu.dot_dimension_numbers<[1], [0], [0], [1], [0, 0, 1, 1], [], []>} : vector<16x32xf32>, vector<32x8xf32>, vector<16x8xf32> -> vector<16x8xf32>
    %192 = vector.extract_strided_slice %166 {offsets = [0, 8], sizes = [16, 8], strides = [1, 1]} : vector<16x32xf32> to vector<16x8xf32>
    %193 = vector.extract_strided_slice %170 {offsets = [0, 8], sizes = [32, 8], strides = [1, 1]} : vector<32x32xf32> to vector<32x8xf32>
    "tpu.trace_start"() <{level = 10 : i32, message = "qd,kd->qk"}> : () -> ()
    %cst_67 = arith.constant dense<0.000000e+00> : vector<16x32xf32>
    %194 = tpu.matmul %192, %193, %cst_67 {dimension_numbers = #tpu.dot_dimension_numbers<[1], [1], [0], [0], [0, 0, 1, 0], [], []>} : vector<16x8xf32>, vector<32x8xf32>, vector<16x32xf32> -> vector<16x32xf32>
    %cst_68 = arith.constant -1.000000e+30 : f32
    "tpu.trace_stop"() : () -> ()
    %195 = vector.broadcast %cst_68 : f32 to vector<16x32xf32>
    %196 = arith.select %29, %194, %195 : vector<16x32xi1>, vector<16x32xf32>
    %cst_69 = arith.constant dense<0xFF800000> : vector<16xf32>
    %197 = vector.multi_reduction <maximumf>, %196, %cst_69 [1] : vector<16x32xf32> to vector<16xf32>
    %198 = vector.shape_cast %197 : vector<16xf32> to vector<16x1xf32>
    %199 = vector.broadcast %198 : vector<16x1xf32> to vector<16x32xf32>
    %200 = arith.subf %196, %199 : vector<16x32xf32>
    %201 = math.exp %200 : vector<16x32xf32>
    %cst_70 = arith.constant dense<0.000000e+00> : vector<16xf32>
    %202 = vector.multi_reduction <add>, %201, %cst_70 [1] : vector<16x32xf32> to vector<16xf32>
    %203 = vector.shape_cast %202 : vector<16xf32> to vector<16x1xf32>
    %204 = tpu.reciprocal %203 {approx = true} : vector<16x1xf32> -> vector<16x1xf32>
    %205 = vector.broadcast %204 : vector<16x1xf32> to vector<16x32xf32>
    %206 = arith.mulf %201, %205 : vector<16x32xf32>
    %207 = vector.extract_strided_slice %174 {offsets = [0, 8], sizes = [32, 8], strides = [1, 1]} : vector<32x32xf32> to vector<32x8xf32>
    %cst_71 = arith.constant dense<0.000000e+00> : vector<16x8xf32>
    %208 = tpu.matmul %206, %207, %cst_71 {dimension_numbers = #tpu.dot_dimension_numbers<[1], [0], [0], [1], [0, 0, 1, 1], [], []>} : vector<16x32xf32>, vector<32x8xf32>, vector<16x8xf32> -> vector<16x8xf32>
    %209 = vector.extract_strided_slice %166 {offsets = [0, 16], sizes = [16, 8], strides = [1, 1]} : vector<16x32xf32> to vector<16x8xf32>
    %210 = vector.extract_strided_slice %170 {offsets = [0, 16], sizes = [32, 8], strides = [1, 1]} : vector<32x32xf32> to vector<32x8xf32>
    "tpu.trace_start"() <{level = 10 : i32, message = "qd,kd->qk"}> : () -> ()
    %cst_72 = arith.constant dense<0.000000e+00> : vector<16x32xf32>
    %211 = tpu.matmul %209, %210, %cst_72 {dimension_numbers = #tpu.dot_dimension_numbers<[1], [1], [0], [0], [0, 0, 1, 0], [], []>} : vector<16x8xf32>, vector<32x8xf32>, vector<16x32xf32> -> vector<16x32xf32>
    %cst_73 = arith.constant -1.000000e+30 : f32
    "tpu.trace_stop"() : () -> ()
    %212 = vector.broadcast %cst_73 : f32 to vector<16x32xf32>
    %213 = arith.select %29, %211, %212 : vector<16x32xi1>, vector<16x32xf32>
    %cst_74 = arith.constant dense<0xFF800000> : vector<16xf32>
    %214 = vector.multi_reduction <maximumf>, %213, %cst_74 [1] : vector<16x32xf32> to vector<16xf32>
    %215 = vector.shape_cast %214 : vector<16xf32> to vector<16x1xf32>
    %216 = vector.broadcast %215 : vector<16x1xf32> to vector<16x32xf32>
    %217 = arith.subf %213, %216 : vector<16x32xf32>
    %218 = math.exp %217 : vector<16x32xf32>
    %cst_75 = arith.constant dense<0.000000e+00> : vector<16xf32>
    %219 = vector.multi_reduction <add>, %218, %cst_75 [1] : vector<16x32xf32> to vector<16xf32>
    %220 = vector.shape_cast %219 : vector<16xf32> to vector<16x1xf32>
    %221 = tpu.reciprocal %220 {approx = true} : vector<16x1xf32> -> vector<16x1xf32>
    %222 = vector.broadcast %221 : vector<16x1xf32> to vector<16x32xf32>
    %223 = arith.mulf %218, %222 : vector<16x32xf32>
    %224 = vector.extract_strided_slice %174 {offsets = [0, 16], sizes = [32, 8], strides = [1, 1]} : vector<32x32xf32> to vector<32x8xf32>
    %cst_76 = arith.constant dense<0.000000e+00> : vector<16x8xf32>
    %225 = tpu.matmul %223, %224, %cst_76 {dimension_numbers = #tpu.dot_dimension_numbers<[1], [0], [0], [1], [0, 0, 1, 1], [], []>} : vector<16x32xf32>, vector<32x8xf32>, vector<16x8xf32> -> vector<16x8xf32>
    %226 = vector.extract_strided_slice %166 {offsets = [0, 24], sizes = [16, 8], strides = [1, 1]} : vector<16x32xf32> to vector<16x8xf32>
    %227 = vector.extract_strided_slice %170 {offsets = [0, 24], sizes = [32, 8], strides = [1, 1]} : vector<32x32xf32> to vector<32x8xf32>
    "tpu.trace_start"() <{level = 10 : i32, message = "qd,kd->qk"}> : () -> ()
    %cst_77 = arith.constant dense<0.000000e+00> : vector<16x32xf32>
    %228 = tpu.matmul %226, %227, %cst_77 {dimension_numbers = #tpu.dot_dimension_numbers<[1], [1], [0], [0], [0, 0, 1, 0], [], []>} : vector<16x8xf32>, vector<32x8xf32>, vector<16x32xf32> -> vector<16x32xf32>
    %cst_78 = arith.constant -1.000000e+30 : f32
    "tpu.trace_stop"() : () -> ()
    %229 = vector.broadcast %cst_78 : f32 to vector<16x32xf32>
    %230 = arith.select %29, %228, %229 : vector<16x32xi1>, vector<16x32xf32>
    %cst_79 = arith.constant dense<0xFF800000> : vector<16xf32>
    %231 = vector.multi_reduction <maximumf>, %230, %cst_79 [1] : vector<16x32xf32> to vector<16xf32>
    %232 = vector.shape_cast %231 : vector<16xf32> to vector<16x1xf32>
    %233 = vector.broadcast %232 : vector<16x1xf32> to vector<16x32xf32>
    %234 = arith.subf %230, %233 : vector<16x32xf32>
    %235 = math.exp %234 : vector<16x32xf32>
    %cst_80 = arith.constant dense<0.000000e+00> : vector<16xf32>
    %236 = vector.multi_reduction <add>, %235, %cst_80 [1] : vector<16x32xf32> to vector<16xf32>
    %237 = vector.shape_cast %236 : vector<16xf32> to vector<16x1xf32>
    %238 = tpu.reciprocal %237 {approx = true} : vector<16x1xf32> -> vector<16x1xf32>
    %239 = vector.broadcast %238 : vector<16x1xf32> to vector<16x32xf32>
    %240 = arith.mulf %235, %239 : vector<16x32xf32>
    %241 = vector.extract_strided_slice %174 {offsets = [0, 24], sizes = [32, 8], strides = [1, 1]} : vector<32x32xf32> to vector<32x8xf32>
    %cst_81 = arith.constant dense<0.000000e+00> : vector<16x8xf32>
    %242 = tpu.matmul %240, %241, %cst_81 {dimension_numbers = #tpu.dot_dimension_numbers<[1], [0], [0], [1], [0, 0, 1, 1], [], []>} : vector<16x32xf32>, vector<32x8xf32>, vector<16x8xf32> -> vector<16x8xf32>
    %243 = tpu.concatenate %191, %208, %225, %242 in 1 : vector<16x8xf32>, vector<16x8xf32>, vector<16x8xf32>, vector<16x8xf32> -> vector<16x32xf32>
    %cst_82 = arith.constant dense<0.000000e+00> : vector<16x32xf32>
    %244 = tpu.matmul %243, %33, %cst_82 {dimension_numbers = #tpu.dot_dimension_numbers<[1], [0], [0], [1], [0, 0, 1, 1], [], []>} : vector<16x32xf32>, vector<32x32xf32>, vector<16x32xf32> -> vector<16x32xf32>
    %245 = arith.addf %159, %244 : vector<16x32xf32>
    %246 = vector.broadcast %39 : vector<1x32xf32> to vector<16x32xf32>
    %247 = arith.addf %245, %246 : vector<16x32xf32>
    %cst_83 = arith.constant dense<0.000000e+00> : vector<16xf32>
    %248 = vector.multi_reduction <add>, %247, %cst_83 [1] : vector<16x32xf32> to vector<16xf32>
    %249 = vector.shape_cast %248 : vector<16xf32> to vector<16x1xf32>
    %cst_84 = arith.constant 3.200000e+01 : f32
    %250 = vector.broadcast %cst_84 : f32 to vector<16x1xf32>
    %251 = arith.divf %249, %250 : vector<16x1xf32>
    %252 = vector.broadcast %251 : vector<16x1xf32> to vector<16x32xf32>
    %253 = arith.subf %247, %252 : vector<16x32xf32>
    %254 = vector.broadcast %251 : vector<16x1xf32> to vector<16x32xf32>
    %255 = arith.subf %247, %254 : vector<16x32xf32>
    %256 = arith.mulf %253, %255 : vector<16x32xf32>
    %cst_85 = arith.constant dense<0.000000e+00> : vector<16xf32>
    %257 = vector.multi_reduction <add>, %256, %cst_85 [1] : vector<16x32xf32> to vector<16xf32>
    %258 = vector.shape_cast %257 : vector<16xf32> to vector<16x1xf32>
    %cst_86 = arith.constant 3.200000e+01 : f32
    %259 = vector.broadcast %cst_86 : f32 to vector<16x1xf32>
    %260 = arith.divf %258, %259 : vector<16x1xf32>
    %261 = vector.broadcast %251 : vector<16x1xf32> to vector<16x32xf32>
    %262 = arith.subf %247, %261 : vector<16x32xf32>
    %cst_87 = arith.constant 9.99999974E-6 : f32
    %263 = vector.broadcast %cst_87 : f32 to vector<16x1xf32>
    %264 = arith.addf %260, %263 : vector<16x1xf32>
    %265 = math.rsqrt %264 : vector<16x1xf32>
    %266 = vector.broadcast %265 : vector<16x1xf32> to vector<16x32xf32>
    %267 = arith.mulf %262, %266 : vector<16x32xf32>
    %268 = vector.broadcast %44 : vector<1x32xf32> to vector<16x32xf32>
    %269 = arith.mulf %267, %268 : vector<16x32xf32>
    %270 = vector.broadcast %45 : vector<1x32xf32> to vector<16x32xf32>
    %271 = arith.addf %269, %270 : vector<16x32xf32>
    %cst_88 = arith.constant dense<0.000000e+00> : vector<16x64xf32>
    %272 = tpu.matmul %271, %34, %cst_88 {dimension_numbers = #tpu.dot_dimension_numbers<[1], [0], [0], [1], [0, 0, 1, 1], [], []>} : vector<16x32xf32>, vector<32x64xf32>, vector<16x64xf32> -> vector<16x64xf32>
    %273 = vector.broadcast %40 : vector<1x64xf32> to vector<16x64xf32>
    %274 = arith.addf %272, %273 : vector<16x64xf32>
    %cst_89 = arith.constant 0.000000e+00 : f32
    %275 = vector.broadcast %cst_89 : f32 to vector<16x64xf32>
    %276 = arith.maximumf %274, %275 : vector<16x64xf32>
    %cst_90 = arith.constant dense<0.000000e+00> : vector<16x32xf32>
    %277 = tpu.matmul %276, %35, %cst_90 {dimension_numbers = #tpu.dot_dimension_numbers<[1], [0], [0], [1], [0, 0, 1, 1], [], []>} : vector<16x64xf32>, vector<64x32xf32>, vector<16x32xf32> -> vector<16x32xf32>
    %278 = vector.broadcast %41 : vector<1x32xf32> to vector<16x32xf32>
    %279 = arith.addf %277, %278 : vector<16x32xf32>
    %280 = arith.addf %271, %279 : vector<16x32xf32>
    %cst_91 = arith.constant dense<0.000000e+00> : vector<16xf32>
    %281 = vector.multi_reduction <add>, %280, %cst_91 [1] : vector<16x32xf32> to vector<16xf32>
    %282 = vector.shape_cast %281 : vector<16xf32> to vector<16x1xf32>
    %cst_92 = arith.constant 3.200000e+01 : f32
    %283 = vector.broadcast %cst_92 : f32 to vector<16x1xf32>
    %284 = arith.divf %282, %283 : vector<16x1xf32>
    %285 = vector.broadcast %284 : vector<16x1xf32> to vector<16x32xf32>
    %286 = arith.subf %280, %285 : vector<16x32xf32>
    %287 = vector.broadcast %284 : vector<16x1xf32> to vector<16x32xf32>
    %288 = arith.subf %280, %287 : vector<16x32xf32>
    %289 = arith.mulf %286, %288 : vector<16x32xf32>
    %cst_93 = arith.constant dense<0.000000e+00> : vector<16xf32>
    %290 = vector.multi_reduction <add>, %289, %cst_93 [1] : vector<16x32xf32> to vector<16xf32>
    %291 = vector.shape_cast %290 : vector<16xf32> to vector<16x1xf32>
    %cst_94 = arith.constant 3.200000e+01 : f32
    %292 = vector.broadcast %cst_94 : f32 to vector<16x1xf32>
    %293 = arith.divf %291, %292 : vector<16x1xf32>
    %294 = vector.broadcast %284 : vector<16x1xf32> to vector<16x32xf32>
    %295 = arith.subf %280, %294 : vector<16x32xf32>
    %cst_95 = arith.constant 9.99999974E-6 : f32
    %296 = vector.broadcast %cst_95 : f32 to vector<16x1xf32>
    %297 = arith.addf %293, %296 : vector<16x1xf32>
    %298 = math.rsqrt %297 : vector<16x1xf32>
    %299 = vector.broadcast %298 : vector<16x1xf32> to vector<16x32xf32>
    %300 = arith.mulf %295, %299 : vector<16x32xf32>
    %301 = vector.broadcast %46 : vector<1x32xf32> to vector<16x32xf32>
    %302 = arith.mulf %300, %301 : vector<16x32xf32>
    %303 = vector.broadcast %47 : vector<1x32xf32> to vector<16x32xf32>
    %304 = arith.addf %302, %303 : vector<16x32xf32>
    %c224 = arith.constant 224 : index
    %c0_96 = arith.constant 0 : index
    %305 = vector.load %arg4[%c224, %c0_96] : memref<448x128xf32, #tpu.memory_space<vmem>>, vector<32x96xf32>
    %c256 = arith.constant 256 : index
    %c0_97 = arith.constant 0 : index
    %306 = vector.load %arg4[%c256, %c0_97] : memref<448x128xf32, #tpu.memory_space<vmem>>, vector<32x32xf32>
    %c288 = arith.constant 288 : index
    %c0_98 = arith.constant 0 : index
    %307 = vector.load %arg4[%c288, %c0_98] : memref<448x128xf32, #tpu.memory_space<vmem>>, vector<32x96xf32>
    %c320 = arith.constant 320 : index
    %c0_99 = arith.constant 0 : index
    %308 = vector.load %arg4[%c320, %c0_99] : memref<448x128xf32, #tpu.memory_space<vmem>>, vector<32x32xf32>
    %c352 = arith.constant 352 : index
    %c0_100 = arith.constant 0 : index
    %309 = vector.load %arg4[%c352, %c0_100] : memref<448x128xf32, #tpu.memory_space<vmem>>, vector<32x64xf32>
    %c384 = arith.constant 384 : index
    %c0_101 = arith.constant 0 : index
    %310 = vector.load %arg4[%c384, %c0_101] : memref<448x128xf32, #tpu.memory_space<vmem>>, vector<64x32xf32>
    %c12 = arith.constant 12 : index
    %c0_102 = arith.constant 0 : index
    %311 = vector.load %arg5[%c12, %c0_102] : memref<26x128xf32, #tpu.memory_space<vmem>>, vector<1x96xf32>
    %c13 = arith.constant 13 : index
    %c0_103 = arith.constant 0 : index
    %312 = vector.load %arg5[%c13, %c0_103] : memref<26x128xf32, #tpu.memory_space<vmem>>, vector<1x32xf32>
    %c14 = arith.constant 14 : index
    %c0_104 = arith.constant 0 : index
    %313 = vector.load %arg5[%c14, %c0_104] : memref<26x128xf32, #tpu.memory_space<vmem>>, vector<1x96xf32>
    %c15 = arith.constant 15 : index
    %c0_105 = arith.constant 0 : index
    %314 = vector.load %arg5[%c15, %c0_105] : memref<26x128xf32, #tpu.memory_space<vmem>>, vector<1x32xf32>
    %c16 = arith.constant 16 : index
    %c0_106 = arith.constant 0 : index
    %315 = vector.load %arg5[%c16, %c0_106] : memref<26x128xf32, #tpu.memory_space<vmem>>, vector<1x64xf32>
    %c17 = arith.constant 17 : index
    %c0_107 = arith.constant 0 : index
    %316 = vector.load %arg5[%c17, %c0_107] : memref<26x128xf32, #tpu.memory_space<vmem>>, vector<1x32xf32>
    %c18 = arith.constant 18 : index
    %c0_108 = arith.constant 0 : index
    %317 = vector.load %arg5[%c18, %c0_108] : memref<26x128xf32, #tpu.memory_space<vmem>>, vector<1x32xf32>
    %c19 = arith.constant 19 : index
    %c0_109 = arith.constant 0 : index
    %318 = vector.load %arg5[%c19, %c0_109] : memref<26x128xf32, #tpu.memory_space<vmem>>, vector<1x32xf32>
    %c20 = arith.constant 20 : index
    %c0_110 = arith.constant 0 : index
    %319 = vector.load %arg5[%c20, %c0_110] : memref<26x128xf32, #tpu.memory_space<vmem>>, vector<1x32xf32>
    %c21 = arith.constant 21 : index
    %c0_111 = arith.constant 0 : index
    %320 = vector.load %arg5[%c21, %c0_111] : memref<26x128xf32, #tpu.memory_space<vmem>>, vector<1x32xf32>
    %c22 = arith.constant 22 : index
    %c0_112 = arith.constant 0 : index
    %321 = vector.load %arg5[%c22, %c0_112] : memref<26x128xf32, #tpu.memory_space<vmem>>, vector<1x32xf32>
    %c23 = arith.constant 23 : index
    %c0_113 = arith.constant 0 : index
    %322 = vector.load %arg5[%c23, %c0_113] : memref<26x128xf32, #tpu.memory_space<vmem>>, vector<1x32xf32>
    %323 = arith.addf %304, %3 : vector<16x32xf32>
    %324 = tpu.concatenate %323, %304 in 0 : vector<16x32xf32>, vector<16x32xf32> -> vector<32x32xf32>
    %cst_114 = arith.constant dense<0.000000e+00> : vector<32x96xf32>
    %325 = tpu.matmul %324, %305, %cst_114 {dimension_numbers = #tpu.dot_dimension_numbers<[1], [0], [0], [1], [0, 0, 1, 1], [], []>} : vector<32x32xf32>, vector<32x96xf32>, vector<32x96xf32> -> vector<32x96xf32>
    %326 = vector.extract_strided_slice %325 {offsets = [0, 0], sizes = [16, 32], strides = [1, 1]} : vector<32x96xf32> to vector<16x32xf32>
    %327 = vector.extract_strided_slice %311 {offsets = [0, 0], sizes = [1, 32], strides = [1, 1]} : vector<1x96xf32> to vector<1x32xf32>
    %328 = vector.broadcast %327 : vector<1x32xf32> to vector<16x32xf32>
    %329 = arith.addf %326, %328 : vector<16x32xf32>
    %330 = vector.extract_strided_slice %325 {offsets = [0, 32], sizes = [16, 32], strides = [1, 1]} : vector<32x96xf32> to vector<16x32xf32>
    %331 = vector.extract_strided_slice %311 {offsets = [0, 32], sizes = [1, 32], strides = [1, 1]} : vector<1x96xf32> to vector<1x32xf32>
    %332 = vector.broadcast %331 : vector<1x32xf32> to vector<16x32xf32>
    %333 = arith.addf %330, %332 : vector<16x32xf32>
    %334 = vector.extract_strided_slice %325 {offsets = [16, 64], sizes = [16, 32], strides = [1, 1]} : vector<32x96xf32> to vector<16x32xf32>
    %335 = vector.extract_strided_slice %311 {offsets = [0, 64], sizes = [1, 32], strides = [1, 1]} : vector<1x96xf32> to vector<1x32xf32>
    %336 = vector.broadcast %335 : vector<1x32xf32> to vector<16x32xf32>
    %337 = arith.addf %334, %336 : vector<16x32xf32>
    %338 = vector.extract_strided_slice %329 {offsets = [0, 0], sizes = [16, 8], strides = [1, 1]} : vector<16x32xf32> to vector<16x8xf32>
    %339 = vector.extract_strided_slice %333 {offsets = [0, 0], sizes = [16, 8], strides = [1, 1]} : vector<16x32xf32> to vector<16x8xf32>
    "tpu.trace_start"() <{level = 10 : i32, message = "qd,kd->qk"}> : () -> ()
    %cst_115 = arith.constant dense<0.000000e+00> : vector<16x16xf32>
    %340 = tpu.matmul %338, %339, %cst_115 {dimension_numbers = #tpu.dot_dimension_numbers<[1], [1], [0], [0], [0, 0, 1, 0], [], []>} : vector<16x8xf32>, vector<16x8xf32>, vector<16x16xf32> -> vector<16x16xf32>
    %cst_116 = arith.constant -1.000000e+30 : f32
    "tpu.trace_stop"() : () -> ()
    %341 = vector.broadcast %cst_116 : f32 to vector<16x16xf32>
    %342 = arith.select %26, %340, %341 : vector<16x16xi1>, vector<16x16xf32>
    %cst_117 = arith.constant dense<0xFF800000> : vector<16xf32>
    %343 = vector.multi_reduction <maximumf>, %342, %cst_117 [1] : vector<16x16xf32> to vector<16xf32>
    %344 = vector.shape_cast %343 : vector<16xf32> to vector<16x1xf32>
    %345 = vector.broadcast %344 : vector<16x1xf32> to vector<16x16xf32>
    %346 = arith.subf %342, %345 : vector<16x16xf32>
    %347 = math.exp %346 : vector<16x16xf32>
    %cst_118 = arith.constant dense<0.000000e+00> : vector<16xf32>
    %348 = vector.multi_reduction <add>, %347, %cst_118 [1] : vector<16x16xf32> to vector<16xf32>
    %349 = vector.shape_cast %348 : vector<16xf32> to vector<16x1xf32>
    %350 = tpu.reciprocal %349 {approx = true} : vector<16x1xf32> -> vector<16x1xf32>
    %351 = vector.broadcast %350 : vector<16x1xf32> to vector<16x16xf32>
    %352 = arith.mulf %347, %351 : vector<16x16xf32>
    %353 = vector.extract_strided_slice %337 {offsets = [0, 0], sizes = [16, 8], strides = [1, 1]} : vector<16x32xf32> to vector<16x8xf32>
    %cst_119 = arith.constant dense<0.000000e+00> : vector<16x8xf32>
    %354 = tpu.matmul %352, %353, %cst_119 {dimension_numbers = #tpu.dot_dimension_numbers<[1], [0], [0], [1], [0, 0, 1, 1], [], []>} : vector<16x16xf32>, vector<16x8xf32>, vector<16x8xf32> -> vector<16x8xf32>
    %355 = vector.extract_strided_slice %329 {offsets = [0, 8], sizes = [16, 8], strides = [1, 1]} : vector<16x32xf32> to vector<16x8xf32>
    %356 = vector.extract_strided_slice %333 {offsets = [0, 8], sizes = [16, 8], strides = [1, 1]} : vector<16x32xf32> to vector<16x8xf32>
    "tpu.trace_start"() <{level = 10 : i32, message = "qd,kd->qk"}> : () -> ()
    %cst_120 = arith.constant dense<0.000000e+00> : vector<16x16xf32>
    %357 = tpu.matmul %355, %356, %cst_120 {dimension_numbers = #tpu.dot_dimension_numbers<[1], [1], [0], [0], [0, 0, 1, 0], [], []>} : vector<16x8xf32>, vector<16x8xf32>, vector<16x16xf32> -> vector<16x16xf32>
    %cst_121 = arith.constant -1.000000e+30 : f32
    "tpu.trace_stop"() : () -> ()
    %358 = vector.broadcast %cst_121 : f32 to vector<16x16xf32>
    %359 = arith.select %26, %357, %358 : vector<16x16xi1>, vector<16x16xf32>
    %cst_122 = arith.constant dense<0xFF800000> : vector<16xf32>
    %360 = vector.multi_reduction <maximumf>, %359, %cst_122 [1] : vector<16x16xf32> to vector<16xf32>
    %361 = vector.shape_cast %360 : vector<16xf32> to vector<16x1xf32>
    %362 = vector.broadcast %361 : vector<16x1xf32> to vector<16x16xf32>
    %363 = arith.subf %359, %362 : vector<16x16xf32>
    %364 = math.exp %363 : vector<16x16xf32>
    %cst_123 = arith.constant dense<0.000000e+00> : vector<16xf32>
    %365 = vector.multi_reduction <add>, %364, %cst_123 [1] : vector<16x16xf32> to vector<16xf32>
    %366 = vector.shape_cast %365 : vector<16xf32> to vector<16x1xf32>
    %367 = tpu.reciprocal %366 {approx = true} : vector<16x1xf32> -> vector<16x1xf32>
    %368 = vector.broadcast %367 : vector<16x1xf32> to vector<16x16xf32>
    %369 = arith.mulf %364, %368 : vector<16x16xf32>
    %370 = vector.extract_strided_slice %337 {offsets = [0, 8], sizes = [16, 8], strides = [1, 1]} : vector<16x32xf32> to vector<16x8xf32>
    %cst_124 = arith.constant dense<0.000000e+00> : vector<16x8xf32>
    %371 = tpu.matmul %369, %370, %cst_124 {dimension_numbers = #tpu.dot_dimension_numbers<[1], [0], [0], [1], [0, 0, 1, 1], [], []>} : vector<16x16xf32>, vector<16x8xf32>, vector<16x8xf32> -> vector<16x8xf32>
    %372 = vector.extract_strided_slice %329 {offsets = [0, 16], sizes = [16, 8], strides = [1, 1]} : vector<16x32xf32> to vector<16x8xf32>
    %373 = vector.extract_strided_slice %333 {offsets = [0, 16], sizes = [16, 8], strides = [1, 1]} : vector<16x32xf32> to vector<16x8xf32>
    "tpu.trace_start"() <{level = 10 : i32, message = "qd,kd->qk"}> : () -> ()
    %cst_125 = arith.constant dense<0.000000e+00> : vector<16x16xf32>
    %374 = tpu.matmul %372, %373, %cst_125 {dimension_numbers = #tpu.dot_dimension_numbers<[1], [1], [0], [0], [0, 0, 1, 0], [], []>} : vector<16x8xf32>, vector<16x8xf32>, vector<16x16xf32> -> vector<16x16xf32>
    %cst_126 = arith.constant -1.000000e+30 : f32
    "tpu.trace_stop"() : () -> ()
    %375 = vector.broadcast %cst_126 : f32 to vector<16x16xf32>
    %376 = arith.select %26, %374, %375 : vector<16x16xi1>, vector<16x16xf32>
    %cst_127 = arith.constant dense<0xFF800000> : vector<16xf32>
    %377 = vector.multi_reduction <maximumf>, %376, %cst_127 [1] : vector<16x16xf32> to vector<16xf32>
    %378 = vector.shape_cast %377 : vector<16xf32> to vector<16x1xf32>
    %379 = vector.broadcast %378 : vector<16x1xf32> to vector<16x16xf32>
    %380 = arith.subf %376, %379 : vector<16x16xf32>
    %381 = math.exp %380 : vector<16x16xf32>
    %cst_128 = arith.constant dense<0.000000e+00> : vector<16xf32>
    %382 = vector.multi_reduction <add>, %381, %cst_128 [1] : vector<16x16xf32> to vector<16xf32>
    %383 = vector.shape_cast %382 : vector<16xf32> to vector<16x1xf32>
    %384 = tpu.reciprocal %383 {approx = true} : vector<16x1xf32> -> vector<16x1xf32>
    %385 = vector.broadcast %384 : vector<16x1xf32> to vector<16x16xf32>
    %386 = arith.mulf %381, %385 : vector<16x16xf32>
    %387 = vector.extract_strided_slice %337 {offsets = [0, 16], sizes = [16, 8], strides = [1, 1]} : vector<16x32xf32> to vector<16x8xf32>
    %cst_129 = arith.constant dense<0.000000e+00> : vector<16x8xf32>
    %388 = tpu.matmul %386, %387, %cst_129 {dimension_numbers = #tpu.dot_dimension_numbers<[1], [0], [0], [1], [0, 0, 1, 1], [], []>} : vector<16x16xf32>, vector<16x8xf32>, vector<16x8xf32> -> vector<16x8xf32>
    %389 = vector.extract_strided_slice %329 {offsets = [0, 24], sizes = [16, 8], strides = [1, 1]} : vector<16x32xf32> to vector<16x8xf32>
    %390 = vector.extract_strided_slice %333 {offsets = [0, 24], sizes = [16, 8], strides = [1, 1]} : vector<16x32xf32> to vector<16x8xf32>
    "tpu.trace_start"() <{level = 10 : i32, message = "qd,kd->qk"}> : () -> ()
    %cst_130 = arith.constant dense<0.000000e+00> : vector<16x16xf32>
    %391 = tpu.matmul %389, %390, %cst_130 {dimension_numbers = #tpu.dot_dimension_numbers<[1], [1], [0], [0], [0, 0, 1, 0], [], []>} : vector<16x8xf32>, vector<16x8xf32>, vector<16x16xf32> -> vector<16x16xf32>
    %cst_131 = arith.constant -1.000000e+30 : f32
    "tpu.trace_stop"() : () -> ()
    %392 = vector.broadcast %cst_131 : f32 to vector<16x16xf32>
    %393 = arith.select %26, %391, %392 : vector<16x16xi1>, vector<16x16xf32>
    %cst_132 = arith.constant dense<0xFF800000> : vector<16xf32>
    %394 = vector.multi_reduction <maximumf>, %393, %cst_132 [1] : vector<16x16xf32> to vector<16xf32>
    %395 = vector.shape_cast %394 : vector<16xf32> to vector<16x1xf32>
    %396 = vector.broadcast %395 : vector<16x1xf32> to vector<16x16xf32>
    %397 = arith.subf %393, %396 : vector<16x16xf32>
    %398 = math.exp %397 : vector<16x16xf32>
    %cst_133 = arith.constant dense<0.000000e+00> : vector<16xf32>
    %399 = vector.multi_reduction <add>, %398, %cst_133 [1] : vector<16x16xf32> to vector<16xf32>
    %400 = vector.shape_cast %399 : vector<16xf32> to vector<16x1xf32>
    %401 = tpu.reciprocal %400 {approx = true} : vector<16x1xf32> -> vector<16x1xf32>
    %402 = vector.broadcast %401 : vector<16x1xf32> to vector<16x16xf32>
    %403 = arith.mulf %398, %402 : vector<16x16xf32>
    %404 = vector.extract_strided_slice %337 {offsets = [0, 24], sizes = [16, 8], strides = [1, 1]} : vector<16x32xf32> to vector<16x8xf32>
    %cst_134 = arith.constant dense<0.000000e+00> : vector<16x8xf32>
    %405 = tpu.matmul %403, %404, %cst_134 {dimension_numbers = #tpu.dot_dimension_numbers<[1], [0], [0], [1], [0, 0, 1, 1], [], []>} : vector<16x16xf32>, vector<16x8xf32>, vector<16x8xf32> -> vector<16x8xf32>
    %406 = tpu.concatenate %354, %371, %388, %405 in 1 : vector<16x8xf32>, vector<16x8xf32>, vector<16x8xf32>, vector<16x8xf32> -> vector<16x32xf32>
    %cst_135 = arith.constant dense<0.000000e+00> : vector<16x32xf32>
    %407 = tpu.matmul %406, %306, %cst_135 {dimension_numbers = #tpu.dot_dimension_numbers<[1], [0], [0], [1], [0, 0, 1, 1], [], []>} : vector<16x32xf32>, vector<32x32xf32>, vector<16x32xf32> -> vector<16x32xf32>
    %408 = arith.addf %304, %407 : vector<16x32xf32>
    %409 = vector.broadcast %312 : vector<1x32xf32> to vector<16x32xf32>
    %410 = arith.addf %408, %409 : vector<16x32xf32>
    %cst_136 = arith.constant dense<0.000000e+00> : vector<16xf32>
    %411 = vector.multi_reduction <add>, %410, %cst_136 [1] : vector<16x32xf32> to vector<16xf32>
    %412 = vector.shape_cast %411 : vector<16xf32> to vector<16x1xf32>
    %cst_137 = arith.constant 3.200000e+01 : f32
    %413 = vector.broadcast %cst_137 : f32 to vector<16x1xf32>
    %414 = arith.divf %412, %413 : vector<16x1xf32>
    %415 = vector.broadcast %414 : vector<16x1xf32> to vector<16x32xf32>
    %416 = arith.subf %410, %415 : vector<16x32xf32>
    %417 = vector.broadcast %414 : vector<16x1xf32> to vector<16x32xf32>
    %418 = arith.subf %410, %417 : vector<16x32xf32>
    %419 = arith.mulf %416, %418 : vector<16x32xf32>
    %cst_138 = arith.constant dense<0.000000e+00> : vector<16xf32>
    %420 = vector.multi_reduction <add>, %419, %cst_138 [1] : vector<16x32xf32> to vector<16xf32>
    %421 = vector.shape_cast %420 : vector<16xf32> to vector<16x1xf32>
    %cst_139 = arith.constant 3.200000e+01 : f32
    %422 = vector.broadcast %cst_139 : f32 to vector<16x1xf32>
    %423 = arith.divf %421, %422 : vector<16x1xf32>
    %424 = vector.broadcast %414 : vector<16x1xf32> to vector<16x32xf32>
    %425 = arith.subf %410, %424 : vector<16x32xf32>
    %cst_140 = arith.constant 9.99999974E-6 : f32
    %426 = vector.broadcast %cst_140 : f32 to vector<16x1xf32>
    %427 = arith.addf %423, %426 : vector<16x1xf32>
    %428 = math.rsqrt %427 : vector<16x1xf32>
    %429 = vector.broadcast %428 : vector<16x1xf32> to vector<16x32xf32>
    %430 = arith.mulf %425, %429 : vector<16x32xf32>
    %431 = vector.broadcast %317 : vector<1x32xf32> to vector<16x32xf32>
    %432 = arith.mulf %430, %431 : vector<16x32xf32>
    %433 = vector.broadcast %318 : vector<1x32xf32> to vector<16x32xf32>
    %434 = arith.addf %432, %433 : vector<16x32xf32>
    %435 = arith.addf %434, %3 : vector<16x32xf32>
    %436 = tpu.concatenate %435, %8, %5 in 0 : vector<16x32xf32>, vector<32x32xf32>, vector<32x32xf32> -> vector<80x32xf32>
    %cst_141 = arith.constant dense<0.000000e+00> : vector<80x96xf32>
    %437 = tpu.matmul %436, %307, %cst_141 {dimension_numbers = #tpu.dot_dimension_numbers<[1], [0], [0], [1], [0, 0, 1, 1], [], []>} : vector<80x32xf32>, vector<32x96xf32>, vector<80x96xf32> -> vector<80x96xf32>
    %438 = vector.extract_strided_slice %437 {offsets = [0, 0], sizes = [16, 32], strides = [1, 1]} : vector<80x96xf32> to vector<16x32xf32>
    %439 = vector.extract_strided_slice %313 {offsets = [0, 0], sizes = [1, 32], strides = [1, 1]} : vector<1x96xf32> to vector<1x32xf32>
    %440 = vector.broadcast %439 : vector<1x32xf32> to vector<16x32xf32>
    %441 = arith.addf %438, %440 : vector<16x32xf32>
    %442 = vector.extract_strided_slice %437 {offsets = [16, 32], sizes = [32, 32], strides = [1, 1]} : vector<80x96xf32> to vector<32x32xf32>
    %443 = vector.extract_strided_slice %313 {offsets = [0, 32], sizes = [1, 32], strides = [1, 1]} : vector<1x96xf32> to vector<1x32xf32>
    %444 = vector.broadcast %443 : vector<1x32xf32> to vector<32x32xf32>
    %445 = arith.addf %442, %444 : vector<32x32xf32>
    %446 = vector.extract_strided_slice %437 {offsets = [48, 64], sizes = [32, 32], strides = [1, 1]} : vector<80x96xf32> to vector<32x32xf32>
    %447 = vector.extract_strided_slice %313 {offsets = [0, 64], sizes = [1, 32], strides = [1, 1]} : vector<1x96xf32> to vector<1x32xf32>
    %448 = vector.broadcast %447 : vector<1x32xf32> to vector<32x32xf32>
    %449 = arith.addf %446, %448 : vector<32x32xf32>
    %450 = vector.extract_strided_slice %441 {offsets = [0, 0], sizes = [16, 8], strides = [1, 1]} : vector<16x32xf32> to vector<16x8xf32>
    %451 = vector.extract_strided_slice %445 {offsets = [0, 0], sizes = [32, 8], strides = [1, 1]} : vector<32x32xf32> to vector<32x8xf32>
    "tpu.trace_start"() <{level = 10 : i32, message = "qd,kd->qk"}> : () -> ()
    %cst_142 = arith.constant dense<0.000000e+00> : vector<16x32xf32>
    %452 = tpu.matmul %450, %451, %cst_142 {dimension_numbers = #tpu.dot_dimension_numbers<[1], [1], [0], [0], [0, 0, 1, 0], [], []>} : vector<16x8xf32>, vector<32x8xf32>, vector<16x32xf32> -> vector<16x32xf32>
    %cst_143 = arith.constant -1.000000e+30 : f32
    "tpu.trace_stop"() : () -> ()
    %453 = vector.broadcast %cst_143 : f32 to vector<16x32xf32>
    %454 = arith.select %29, %452, %453 : vector<16x32xi1>, vector<16x32xf32>
    %cst_144 = arith.constant dense<0xFF800000> : vector<16xf32>
    %455 = vector.multi_reduction <maximumf>, %454, %cst_144 [1] : vector<16x32xf32> to vector<16xf32>
    %456 = vector.shape_cast %455 : vector<16xf32> to vector<16x1xf32>
    %457 = vector.broadcast %456 : vector<16x1xf32> to vector<16x32xf32>
    %458 = arith.subf %454, %457 : vector<16x32xf32>
    %459 = math.exp %458 : vector<16x32xf32>
    %cst_145 = arith.constant dense<0.000000e+00> : vector<16xf32>
    %460 = vector.multi_reduction <add>, %459, %cst_145 [1] : vector<16x32xf32> to vector<16xf32>
    %461 = vector.shape_cast %460 : vector<16xf32> to vector<16x1xf32>
    %462 = tpu.reciprocal %461 {approx = true} : vector<16x1xf32> -> vector<16x1xf32>
    %463 = vector.broadcast %462 : vector<16x1xf32> to vector<16x32xf32>
    %464 = arith.mulf %459, %463 : vector<16x32xf32>
    %465 = vector.extract_strided_slice %449 {offsets = [0, 0], sizes = [32, 8], strides = [1, 1]} : vector<32x32xf32> to vector<32x8xf32>
    %cst_146 = arith.constant dense<0.000000e+00> : vector<16x8xf32>
    %466 = tpu.matmul %464, %465, %cst_146 {dimension_numbers = #tpu.dot_dimension_numbers<[1], [0], [0], [1], [0, 0, 1, 1], [], []>} : vector<16x32xf32>, vector<32x8xf32>, vector<16x8xf32> -> vector<16x8xf32>
    %467 = vector.extract_strided_slice %441 {offsets = [0, 8], sizes = [16, 8], strides = [1, 1]} : vector<16x32xf32> to vector<16x8xf32>
    %468 = vector.extract_strided_slice %445 {offsets = [0, 8], sizes = [32, 8], strides = [1, 1]} : vector<32x32xf32> to vector<32x8xf32>
    "tpu.trace_start"() <{level = 10 : i32, message = "qd,kd->qk"}> : () -> ()
    %cst_147 = arith.constant dense<0.000000e+00> : vector<16x32xf32>
    %469 = tpu.matmul %467, %468, %cst_147 {dimension_numbers = #tpu.dot_dimension_numbers<[1], [1], [0], [0], [0, 0, 1, 0], [], []>} : vector<16x8xf32>, vector<32x8xf32>, vector<16x32xf32> -> vector<16x32xf32>
    %cst_148 = arith.constant -1.000000e+30 : f32
    "tpu.trace_stop"() : () -> ()
    %470 = vector.broadcast %cst_148 : f32 to vector<16x32xf32>
    %471 = arith.select %29, %469, %470 : vector<16x32xi1>, vector<16x32xf32>
    %cst_149 = arith.constant dense<0xFF800000> : vector<16xf32>
    %472 = vector.multi_reduction <maximumf>, %471, %cst_149 [1] : vector<16x32xf32> to vector<16xf32>
    %473 = vector.shape_cast %472 : vector<16xf32> to vector<16x1xf32>
    %474 = vector.broadcast %473 : vector<16x1xf32> to vector<16x32xf32>
    %475 = arith.subf %471, %474 : vector<16x32xf32>
    %476 = math.exp %475 : vector<16x32xf32>
    %cst_150 = arith.constant dense<0.000000e+00> : vector<16xf32>
    %477 = vector.multi_reduction <add>, %476, %cst_150 [1] : vector<16x32xf32> to vector<16xf32>
    %478 = vector.shape_cast %477 : vector<16xf32> to vector<16x1xf32>
    %479 = tpu.reciprocal %478 {approx = true} : vector<16x1xf32> -> vector<16x1xf32>
    %480 = vector.broadcast %479 : vector<16x1xf32> to vector<16x32xf32>
    %481 = arith.mulf %476, %480 : vector<16x32xf32>
    %482 = vector.extract_strided_slice %449 {offsets = [0, 8], sizes = [32, 8], strides = [1, 1]} : vector<32x32xf32> to vector<32x8xf32>
    %cst_151 = arith.constant dense<0.000000e+00> : vector<16x8xf32>
    %483 = tpu.matmul %481, %482, %cst_151 {dimension_numbers = #tpu.dot_dimension_numbers<[1], [0], [0], [1], [0, 0, 1, 1], [], []>} : vector<16x32xf32>, vector<32x8xf32>, vector<16x8xf32> -> vector<16x8xf32>
    %484 = vector.extract_strided_slice %441 {offsets = [0, 16], sizes = [16, 8], strides = [1, 1]} : vector<16x32xf32> to vector<16x8xf32>
    %485 = vector.extract_strided_slice %445 {offsets = [0, 16], sizes = [32, 8], strides = [1, 1]} : vector<32x32xf32> to vector<32x8xf32>
    "tpu.trace_start"() <{level = 10 : i32, message = "qd,kd->qk"}> : () -> ()
    %cst_152 = arith.constant dense<0.000000e+00> : vector<16x32xf32>
    %486 = tpu.matmul %484, %485, %cst_152 {dimension_numbers = #tpu.dot_dimension_numbers<[1], [1], [0], [0], [0, 0, 1, 0], [], []>} : vector<16x8xf32>, vector<32x8xf32>, vector<16x32xf32> -> vector<16x32xf32>
    %cst_153 = arith.constant -1.000000e+30 : f32
    "tpu.trace_stop"() : () -> ()
    %487 = vector.broadcast %cst_153 : f32 to vector<16x32xf32>
    %488 = arith.select %29, %486, %487 : vector<16x32xi1>, vector<16x32xf32>
    %cst_154 = arith.constant dense<0xFF800000> : vector<16xf32>
    %489 = vector.multi_reduction <maximumf>, %488, %cst_154 [1] : vector<16x32xf32> to vector<16xf32>
    %490 = vector.shape_cast %489 : vector<16xf32> to vector<16x1xf32>
    %491 = vector.broadcast %490 : vector<16x1xf32> to vector<16x32xf32>
    %492 = arith.subf %488, %491 : vector<16x32xf32>
    %493 = math.exp %492 : vector<16x32xf32>
    %cst_155 = arith.constant dense<0.000000e+00> : vector<16xf32>
    %494 = vector.multi_reduction <add>, %493, %cst_155 [1] : vector<16x32xf32> to vector<16xf32>
    %495 = vector.shape_cast %494 : vector<16xf32> to vector<16x1xf32>
    %496 = tpu.reciprocal %495 {approx = true} : vector<16x1xf32> -> vector<16x1xf32>
    %497 = vector.broadcast %496 : vector<16x1xf32> to vector<16x32xf32>
    %498 = arith.mulf %493, %497 : vector<16x32xf32>
    %499 = vector.extract_strided_slice %449 {offsets = [0, 16], sizes = [32, 8], strides = [1, 1]} : vector<32x32xf32> to vector<32x8xf32>
    %cst_156 = arith.constant dense<0.000000e+00> : vector<16x8xf32>
    %500 = tpu.matmul %498, %499, %cst_156 {dimension_numbers = #tpu.dot_dimension_numbers<[1], [0], [0], [1], [0, 0, 1, 1], [], []>} : vector<16x32xf32>, vector<32x8xf32>, vector<16x8xf32> -> vector<16x8xf32>
    %501 = vector.extract_strided_slice %441 {offsets = [0, 24], sizes = [16, 8], strides = [1, 1]} : vector<16x32xf32> to vector<16x8xf32>
    %502 = vector.extract_strided_slice %445 {offsets = [0, 24], sizes = [32, 8], strides = [1, 1]} : vector<32x32xf32> to vector<32x8xf32>
    "tpu.trace_start"() <{level = 10 : i32, message = "qd,kd->qk"}> : () -> ()
    %cst_157 = arith.constant dense<0.000000e+00> : vector<16x32xf32>
    %503 = tpu.matmul %501, %502, %cst_157 {dimension_numbers = #tpu.dot_dimension_numbers<[1], [1], [0], [0], [0, 0, 1, 0], [], []>} : vector<16x8xf32>, vector<32x8xf32>, vector<16x32xf32> -> vector<16x32xf32>
    %cst_158 = arith.constant -1.000000e+30 : f32
    "tpu.trace_stop"() : () -> ()
    %504 = vector.broadcast %cst_158 : f32 to vector<16x32xf32>
    %505 = arith.select %29, %503, %504 : vector<16x32xi1>, vector<16x32xf32>
    %cst_159 = arith.constant dense<0xFF800000> : vector<16xf32>
    %506 = vector.multi_reduction <maximumf>, %505, %cst_159 [1] : vector<16x32xf32> to vector<16xf32>
    %507 = vector.shape_cast %506 : vector<16xf32> to vector<16x1xf32>
    %508 = vector.broadcast %507 : vector<16x1xf32> to vector<16x32xf32>
    %509 = arith.subf %505, %508 : vector<16x32xf32>
    %510 = math.exp %509 : vector<16x32xf32>
    %cst_160 = arith.constant dense<0.000000e+00> : vector<16xf32>
    %511 = vector.multi_reduction <add>, %510, %cst_160 [1] : vector<16x32xf32> to vector<16xf32>
    %512 = vector.shape_cast %511 : vector<16xf32> to vector<16x1xf32>
    %513 = tpu.reciprocal %512 {approx = true} : vector<16x1xf32> -> vector<16x1xf32>
    %514 = vector.broadcast %513 : vector<16x1xf32> to vector<16x32xf32>
    %515 = arith.mulf %510, %514 : vector<16x32xf32>
    %516 = vector.extract_strided_slice %449 {offsets = [0, 24], sizes = [32, 8], strides = [1, 1]} : vector<32x32xf32> to vector<32x8xf32>
    %cst_161 = arith.constant dense<0.000000e+00> : vector<16x8xf32>
    %517 = tpu.matmul %515, %516, %cst_161 {dimension_numbers = #tpu.dot_dimension_numbers<[1], [0], [0], [1], [0, 0, 1, 1], [], []>} : vector<16x32xf32>, vector<32x8xf32>, vector<16x8xf32> -> vector<16x8xf32>
    %518 = tpu.concatenate %466, %483, %500, %517 in 1 : vector<16x8xf32>, vector<16x8xf32>, vector<16x8xf32>, vector<16x8xf32> -> vector<16x32xf32>
    %cst_162 = arith.constant dense<0.000000e+00> : vector<16x32xf32>
    %519 = tpu.matmul %518, %308, %cst_162 {dimension_numbers = #tpu.dot_dimension_numbers<[1], [0], [0], [1], [0, 0, 1, 1], [], []>} : vector<16x32xf32>, vector<32x32xf32>, vector<16x32xf32> -> vector<16x32xf32>
    %520 = arith.addf %434, %519 : vector<16x32xf32>
    %521 = vector.broadcast %314 : vector<1x32xf32> to vector<16x32xf32>
    %522 = arith.addf %520, %521 : vector<16x32xf32>
    %cst_163 = arith.constant dense<0.000000e+00> : vector<16xf32>
    %523 = vector.multi_reduction <add>, %522, %cst_163 [1] : vector<16x32xf32> to vector<16xf32>
    %524 = vector.shape_cast %523 : vector<16xf32> to vector<16x1xf32>
    %cst_164 = arith.constant 3.200000e+01 : f32
    %525 = vector.broadcast %cst_164 : f32 to vector<16x1xf32>
    %526 = arith.divf %524, %525 : vector<16x1xf32>
    %527 = vector.broadcast %526 : vector<16x1xf32> to vector<16x32xf32>
    %528 = arith.subf %522, %527 : vector<16x32xf32>
    %529 = vector.broadcast %526 : vector<16x1xf32> to vector<16x32xf32>
    %530 = arith.subf %522, %529 : vector<16x32xf32>
    %531 = arith.mulf %528, %530 : vector<16x32xf32>
    %cst_165 = arith.constant dense<0.000000e+00> : vector<16xf32>
    %532 = vector.multi_reduction <add>, %531, %cst_165 [1] : vector<16x32xf32> to vector<16xf32>
    %533 = vector.shape_cast %532 : vector<16xf32> to vector<16x1xf32>
    %cst_166 = arith.constant 3.200000e+01 : f32
    %534 = vector.broadcast %cst_166 : f32 to vector<16x1xf32>
    %535 = arith.divf %533, %534 : vector<16x1xf32>
    %536 = vector.broadcast %526 : vector<16x1xf32> to vector<16x32xf32>
    %537 = arith.subf %522, %536 : vector<16x32xf32>
    %cst_167 = arith.constant 9.99999974E-6 : f32
    %538 = vector.broadcast %cst_167 : f32 to vector<16x1xf32>
    %539 = arith.addf %535, %538 : vector<16x1xf32>
    %540 = math.rsqrt %539 : vector<16x1xf32>
    %541 = vector.broadcast %540 : vector<16x1xf32> to vector<16x32xf32>
    %542 = arith.mulf %537, %541 : vector<16x32xf32>
    %543 = vector.broadcast %319 : vector<1x32xf32> to vector<16x32xf32>
    %544 = arith.mulf %542, %543 : vector<16x32xf32>
    %545 = vector.broadcast %320 : vector<1x32xf32> to vector<16x32xf32>
    %546 = arith.addf %544, %545 : vector<16x32xf32>
    %cst_168 = arith.constant dense<0.000000e+00> : vector<16x64xf32>
    %547 = tpu.matmul %546, %309, %cst_168 {dimension_numbers = #tpu.dot_dimension_numbers<[1], [0], [0], [1], [0, 0, 1, 1], [], []>} : vector<16x32xf32>, vector<32x64xf32>, vector<16x64xf32> -> vector<16x64xf32>
    %548 = vector.broadcast %315 : vector<1x64xf32> to vector<16x64xf32>
    %549 = arith.addf %547, %548 : vector<16x64xf32>
    %cst_169 = arith.constant 0.000000e+00 : f32
    %550 = vector.broadcast %cst_169 : f32 to vector<16x64xf32>
    %551 = arith.maximumf %549, %550 : vector<16x64xf32>
    %cst_170 = arith.constant dense<0.000000e+00> : vector<16x32xf32>
    %552 = tpu.matmul %551, %310, %cst_170 {dimension_numbers = #tpu.dot_dimension_numbers<[1], [0], [0], [1], [0, 0, 1, 1], [], []>} : vector<16x64xf32>, vector<64x32xf32>, vector<16x32xf32> -> vector<16x32xf32>
    %553 = vector.broadcast %316 : vector<1x32xf32> to vector<16x32xf32>
    %554 = arith.addf %552, %553 : vector<16x32xf32>
    %555 = arith.addf %546, %554 : vector<16x32xf32>
    %cst_171 = arith.constant dense<0.000000e+00> : vector<16xf32>
    %556 = vector.multi_reduction <add>, %555, %cst_171 [1] : vector<16x32xf32> to vector<16xf32>
    %557 = vector.shape_cast %556 : vector<16xf32> to vector<16x1xf32>
    %cst_172 = arith.constant 3.200000e+01 : f32
    %558 = vector.broadcast %cst_172 : f32 to vector<16x1xf32>
    %559 = arith.divf %557, %558 : vector<16x1xf32>
    %560 = vector.broadcast %559 : vector<16x1xf32> to vector<16x32xf32>
    %561 = arith.subf %555, %560 : vector<16x32xf32>
    %562 = vector.broadcast %559 : vector<16x1xf32> to vector<16x32xf32>
    %563 = arith.subf %555, %562 : vector<16x32xf32>
    %564 = arith.mulf %561, %563 : vector<16x32xf32>
    %cst_173 = arith.constant dense<0.000000e+00> : vector<16xf32>
    %565 = vector.multi_reduction <add>, %564, %cst_173 [1] : vector<16x32xf32> to vector<16xf32>
    %566 = vector.shape_cast %565 : vector<16xf32> to vector<16x1xf32>
    %cst_174 = arith.constant 3.200000e+01 : f32
    %567 = vector.broadcast %cst_174 : f32 to vector<16x1xf32>
    %568 = arith.divf %566, %567 : vector<16x1xf32>
    %569 = vector.broadcast %559 : vector<16x1xf32> to vector<16x32xf32>
    %570 = arith.subf %555, %569 : vector<16x32xf32>
    %cst_175 = arith.constant 9.99999974E-6 : f32
    %571 = vector.broadcast %cst_175 : f32 to vector<16x1xf32>
    %572 = arith.addf %568, %571 : vector<16x1xf32>
    %573 = math.rsqrt %572 : vector<16x1xf32>
    %574 = vector.broadcast %573 : vector<16x1xf32> to vector<16x32xf32>
    %575 = arith.mulf %570, %574 : vector<16x32xf32>
    %576 = vector.broadcast %321 : vector<1x32xf32> to vector<16x32xf32>
    %577 = arith.mulf %575, %576 : vector<16x32xf32>
    %578 = vector.broadcast %322 : vector<1x32xf32> to vector<16x32xf32>
    %579 = arith.addf %577, %578 : vector<16x32xf32>
    %c24 = arith.constant 24 : index
    %c0_176 = arith.constant 0 : index
    %580 = vector.load %arg5[%c24, %c0_176] : memref<26x128xf32, #tpu.memory_space<vmem>>, vector<1x32xf32>
    %c25 = arith.constant 25 : index
    %c0_177 = arith.constant 0 : index
    %581 = vector.load %arg5[%c25, %c0_177] : memref<26x128xf32, #tpu.memory_space<vmem>>, vector<1x32xf32>
    %cst_178 = arith.constant dense<0.000000e+00> : vector<16xf32>
    %582 = vector.multi_reduction <add>, %579, %cst_178 [1] : vector<16x32xf32> to vector<16xf32>
    %583 = vector.shape_cast %582 : vector<16xf32> to vector<16x1xf32>
    %cst_179 = arith.constant 3.200000e+01 : f32
    %584 = vector.broadcast %cst_179 : f32 to vector<16x1xf32>
    %585 = arith.divf %583, %584 : vector<16x1xf32>
    %586 = vector.broadcast %585 : vector<16x1xf32> to vector<16x32xf32>
    %587 = arith.subf %579, %586 : vector<16x32xf32>
    %588 = vector.broadcast %585 : vector<16x1xf32> to vector<16x32xf32>
    %589 = arith.subf %579, %588 : vector<16x32xf32>
    %590 = arith.mulf %587, %589 : vector<16x32xf32>
    %cst_180 = arith.constant dense<0.000000e+00> : vector<16xf32>
    %591 = vector.multi_reduction <add>, %590, %cst_180 [1] : vector<16x32xf32> to vector<16xf32>
    %592 = vector.shape_cast %591 : vector<16xf32> to vector<16x1xf32>
    %cst_181 = arith.constant 3.200000e+01 : f32
    %593 = vector.broadcast %cst_181 : f32 to vector<16x1xf32>
    %594 = arith.divf %592, %593 : vector<16x1xf32>
    %595 = vector.broadcast %585 : vector<16x1xf32> to vector<16x32xf32>
    %596 = arith.subf %579, %595 : vector<16x32xf32>
    %cst_182 = arith.constant 9.99999974E-6 : f32
    %597 = vector.broadcast %cst_182 : f32 to vector<16x1xf32>
    %598 = arith.addf %594, %597 : vector<16x1xf32>
    %599 = math.rsqrt %598 : vector<16x1xf32>
    %600 = vector.broadcast %599 : vector<16x1xf32> to vector<16x32xf32>
    %601 = arith.mulf %596, %600 : vector<16x32xf32>
    %602 = vector.broadcast %580 : vector<1x32xf32> to vector<16x32xf32>
    %603 = arith.mulf %601, %602 : vector<16x32xf32>
    %604 = vector.broadcast %581 : vector<1x32xf32> to vector<16x32xf32>
    %605 = arith.addf %603, %604 : vector<16x32xf32>
    %606 = vector.shape_cast %605 : vector<16x32xf32> to vector<1x8x2x32xf32>
    %c0_183 = arith.constant 0 : index
    %c0_184 = arith.constant 0 : index
    %c0_185 = arith.constant 0 : index
    %c0_186 = arith.constant 0 : index
    %607 = vector.load %arg6[%c0_183, %c0_184, %c0_185, %c0_186] : memref<1x8x2x32xf32, #tpu.memory_space<vmem>>, vector<1x8x2x32xf32>
    tpu.vector_store %arg6[%c0_183, %c0_184, %c0_185, %c0_186], %606 {strides = array<i32>} : memref<1x8x2x32xf32, #tpu.memory_space<vmem>>, vector<1x8x2x32xf32>,
    return
  }
}

</mosaic_0001>

<bundles_post_ra>
// kernel: transformer_decoder.1
= control target key start
LH: loop header
LB: loop body
LE: loop exit
PB: predicated region body
PF: predicated region fallthrough
CT: control target
= control target key end

     0   :  { %11 = vsyncpa [#allocation3], 0  ;;  %s12061_s0 = inlined_call_operand.hbm [shape: f32[8,2,32], index: 0, kind: input, shape index: {}]   ;;  %s12062_s1 = inlined_call_operand.hbm [shape: f32[16,2,32], index: 1, kind: input, shape index: {}]   ;;  %s12063_s2 = inlined_call_operand.hbm [shape: f32[16,2,32], index: 2, kind: input, shape index: {}]   ;;  %s12064_s3 = inlined_call_operand.vmem [shape: f32[8,2,32], index: 3, kind: input, shape index: {}]   ;;  %s12065_s4 = inlined_call_operand.hbm [shape: f32[448,128], index: 4, kind: input, shape index: {}]   ;;  %s12066_s5 = inlined_call_operand.hbm [shape: f32[26,128], index: 5, kind: input, shape index: {}]   ;;  %s12067_s6 = inlined_call_operand.hbm [shape: f32[1,8,2,32], index: 6, kind: output, shape index: {}]  }
   0x1   :  { %12 = vsyncpa [#allocation6], 0 }
   0x2   :  { %13 = vsyncpa [#allocation9], 0 }
   0x3   :  { %14 = vsyncpa [#allocation4], 0  ;;  %s10276_s21 = smov [#allocation5]   ;;  %s10277_s23 = smov [#allocation8]  }
   0x4   :  { %s32_s22 = sshll.u32 %s10276_s21, 4  ;;  %s58_s24 = sshll.u32 %s10277_s23, 4  ;;  %s33_s22 = int_to_ptr.vmem [resolvable:$true] %s32_s22  ;;  %s10340_s24 = int_to_ptr.vmem [resolvable:$true] %s58_s24 }
   0x5   :  { %s10136_s27 = scalar_lea.hbm %s12062_s1, 512 }
   0x6   :  { %p10137_p0 = scmp.ne.s32.totalorder %s12062_s1, %s10136_s27  ;;  %p10140_p1 = scmp.lt.u32.totalorder %s10136_s27, %s12062_s1 }
   0x8   :  { %p10142_p2 = pnand %p10140_p1, %p10137_p0 }
   0xa   :  { %10145 = shalt.err (!%p10142_p2)
}
   0xb   :  { %s10146_s8 = scalar_lea.vmem %s33_s22, 512  ;;  %p10151_p4 = scmp.lt.s32.totalorder %s33_s22, %s33_s22 }
   0xc   :  { %p10147_p3 = scmp.ne.s32.totalorder %s33_s22, %s10146_s8  ;;  %p10152_p5 = scmp.lt.s32.totalorder %s10146_s8, %s10146_s8 }
   0xe   :  { %p10153_p6 = por %p10152_p5, %p10151_p4 }
  0x10   :  { %p10154_p7 = pnand %p10153_p6, %p10147_p3 }
  0x12   :  { %10157 = shalt.err (!%p10154_p7)
}
  0x13   :  { %s10278_s9 = smov 32   ;;  %s10279_s10 = smov 2  }
  0x14   :  { %38 = dma.hbm_to_vmem [thread:$0]  %s12062_s1, 512, %s33_s22, [#allocation6], %s10278_s9, %s10278_s9, %s10279_s10  }
  0x15   :  { %s10158_s15 = scalar_lea.hbm %s12065_s4, 7168 }
  0x16   :  { %p10159_p8 = scmp.ne.s32.totalorder %s12065_s4, %s10158_s15  ;;  %p10162_p9 = scmp.lt.u32.totalorder %s10158_s15, %s12065_s4 }
  0x18   :  { %p10164_p10 = pnand %p10162_p9, %p10159_p8 }
  0x1a   :  { %10167 = shalt.err (!%p10164_p10)
}
  0x1b   :  { %s10168_s20 = scalar_lea.vmem %s10340_s24, 7168  ;;  %p10173_p12 = scmp.lt.s32.totalorder %s10340_s24, %s10340_s24 }
  0x1c   :  { %p10169_p11 = scmp.ne.s32.totalorder %s10340_s24, %s10168_s20  ;;  %p10174_p13 = scmp.lt.s32.totalorder %s10168_s20, %s10168_s20 }
  0x1e   :  { %p10175_p0 = por %p10174_p13, %p10173_p12 }
  0x20   :  { %p10176_p1 = pnand %p10175_p0, %p10169_p11 }
  0x22   :  { %10179 = shalt.err (!%p10176_p1)
}
  0x23   :  { %s10280_s1 = smov 128   ;;  %s10281_s21 = smov 8  }
  0x24   :  { %64 = dma.hbm_to_vmem [thread:$0]  %s12065_s4, 7168, %s10340_s24, [#allocation9], %s10280_s1, %s10280_s1, %s10281_s21  }
  0x25   :  { %s10282_s25 = smov [#allocation2]   ;;  %s10283_s27 = smov [#allocation7]  }
  0x26   :  { %s20_s26 = sshll.u32 %s10282_s25, 4  ;;  %s44_s28 = sshll.u32 %s10283_s27, 4  ;;  %s21_s26 = int_to_ptr.vmem [resolvable:$true] %s20_s26  ;;  %s10377_s28 = int_to_ptr.vmem [resolvable:$true] %s44_s28 }
  0x27   :  { %s10180_s7 = scalar_lea.hbm %s12061_s0, 256 }
  0x28   :  { %p10181_p2 = scmp.ne.s32.totalorder %s12061_s0, %s10180_s7  ;;  %p10184_p3 = scmp.lt.u32.totalorder %s10180_s7, %s12061_s0 }
  0x2a   :  { %p10186_p4 = pnand %p10184_p3, %p10181_p2 }
  0x2c   :  { %10189 = shalt.err (!%p10186_p4)
}
  0x2d   :  { %s10190_s4 = scalar_lea.vmem %s21_s26, 256  ;;  %p10195_p6 = scmp.lt.s32.totalorder %s21_s26, %s21_s26 }
  0x2e   :  { %p10191_p5 = scmp.ne.s32.totalorder %s21_s26, %s10190_s4  ;;  %p10196_p7 = scmp.lt.s32.totalorder %s10190_s4, %s10190_s4 }
  0x30   :  { %p10197_p8 = por %p10196_p7, %p10195_p6 }
  0x32   :  { %p10198_p9 = pnand %p10197_p8, %p10191_p5 }
  0x34   :  { %10201 = shalt.err (!%p10198_p9)
}
  0x35   :  { %26 = dma.hbm_to_vmem [thread:$0]  %s12061_s0, 256, %s21_s26, [#allocation3], %s10278_s9, %s10278_s9, %s10279_s10  }
  0x36   :  { %s10202_s17 = scalar_lea.hbm %s12063_s2, 512 }
  0x37   :  { %p10203_p10 = scmp.ne.s32.totalorder %s12063_s2, %s10202_s17  ;;  %p10206_p11 = scmp.lt.u32.totalorder %s10202_s17, %s12063_s2 }
  0x39   :  { %p10208_p12 = pnand %p10206_p11, %p10203_p10 }
  0x3b   :  { %10211 = shalt.err (!%p10208_p12)
}
  0x3c   :  { %s10212_s23 = scalar_lea.vmem %s10377_s28, 512  ;;  %p10217_p0 = scmp.lt.s32.totalorder %s10377_s28, %s10377_s28 }
  0x3d   :  { %p10213_p13 = scmp.ne.s32.totalorder %s10377_s28, %s10212_s23  ;;  %p10218_p1 = scmp.lt.s32.totalorder %s10212_s23, %s10212_s23 }
  0x3f   :  { %p10219_p2 = por %p10218_p1, %p10217_p0 }
  0x41   :  { %p10220_p3 = pnand %p10219_p2, %p10213_p13 }
  0x43   :  { %10223 = shalt.err (!%p10220_p3)
}
  0x44   :  { %50 = dma.hbm_to_vmem [thread:$0]  %s12063_s2, 512, %s10377_s28, [#allocation6], %s10278_s9, %s10278_s9, %s10279_s10  }
  0x45   :  { %s10284_s26 = smov [#allocation10]   ;;  %s10224_s7 = scalar_lea.hbm %s12066_s5, 512 }
  0x46   :  { %s70_s27 = sshll.u32 %s10284_s26, 4  ;;  %p10225_p4 = scmp.ne.s32.totalorder %s12066_s5, %s10224_s7  ;;  %s71_s27 = int_to_ptr.vmem [resolvable:$true] %s70_s27 }
  0x47   :  { %p10228_p5 = scmp.lt.u32.totalorder %s10224_s7, %s12066_s5 }
  0x49   :  { %p10230_p6 = pnand %p10228_p5, %p10225_p4 }
  0x4b   :  { %10233 = shalt.err (!%p10230_p6)
}
  0x4c   :  { %s10234_s4 = scalar_lea.vmem %s71_s27, 512  ;;  %p10239_p8 = scmp.lt.s32.totalorder %s71_s27, %s71_s27 }
  0x4d   :  { %p10235_p7 = scmp.ne.s32.totalorder %s71_s27, %s10234_s4  ;;  %p10240_p9 = scmp.lt.s32.totalorder %s10234_s4, %s10234_s4 }
  0x4f   :  { %p10241_p10 = por %p10240_p9, %p10239_p8 }
  0x51   :  { %p10242_p11 = pnand %p10241_p10, %p10235_p7 }
  0x53   :  { %10245 = shalt.err (!%p10242_p11)
}
  0x54   :  { %76 = dma.hbm_to_vmem [thread:$0]  %s12066_s5, 512, %s71_s27, [#allocation9], %s10280_s1, %s10280_s1, %s10281_s21  }
  0x55   :  { %10268 = dma.done.wait [#allocation3], 256  }
  0x56   :  { %10269 = vsyncadd [#allocation3], 4294967040 }
  0x57   :  { %10270 = dma.done.wait [#allocation6], 1024  }
  0x58   :  { %10271 = vsyncadd [#allocation6], 4294966272 }
  0x59   :  { %10272 = dma.done.wait [#allocation9], 7680  }
  0x5a   :  { %10273 = vsyncadd [#allocation9], 4294959616  ;;  %v156_v0 = vlaneseq  ;;  %v10285_v1 = vmov 1983009808   ;;  %v330_v3 = vld [vmem:[#allocation8] sm:$0xff]  ;;  %v331_v4 = vld [vmem:[#allocation8 + $0x8] sm:$0xff] }
  0x5b   :  { %v166_v2 = vunpack.c.l.s4 %v10285_v1  ;;  %v332_v5 = vld [vmem:[#allocation8 + $0x10] sm:$0xff]  ;;  %v9343_v8 = vpack.c.bf16 %v331_v4, %v330_v3  ;;  %v333_v9 = vld [vmem:[#allocation8 + $0x18] sm:$0xff]  ;;  %vm462_vm0 = vcmask 261120   ;;  %v10286_v57 = vmov 0.0   ;;  %s10287_s29 = smov 96   ;;  %s10288_s30 = smov 64  }
  0x5c   :  { %v10430_v6 = vshrl.u32 %v156_v0, 7  ;;  %v10432_v10 = vld [vmem:[#allocation2] sm:$0x3]  ;;  %v10434_v11 = vld [vmem:[#allocation2 + $0x2] sm:$0x3]  ;;  %v9347_v12 = vpack.c.bf16 %v333_v9, %v332_v5  ;;  %v159_v56 = vand.u32 127, %v156_v0 }
  0x5d   :  { %v167_v7 = vunpack.c.0.s8 %v166_v2  ;;  %v10436_v13 = vld [vmem:[#allocation2 + $0x4] sm:$0x3]  ;;  %v10438_v14 = vld [vmem:[#allocation2 + $0x6] sm:$0x3]  ;;  %v100_v15 = vld [vmem:[%s12064_s3] sm:$0x3]  ;;  %9344 = vmatprep.subr.bf16.mxu0 %v9343_v8  ;;  %v428_v46 = vcombine.low %v10432_v10, %v10434_v11 }
  0x5e   :  { %v101_v16 = vld [vmem:[%s12064_s3 + $0x2] sm:$0x3]  ;;  %v102_v17 = vld [vmem:[%s12064_s3 + $0x4] sm:$0x3]  ;;  %v103_v18 = vld [vmem:[%s12064_s3 + $0x6] sm:$0x3]  ;;  %v370_v19 = vadd.f32 %v100_v15, %v10432_v10  ;;  %9346 = vmatpush3.bf16.msra.mxu0 %v9343_v8  ;;  %v429_v47 = vcombine.low %v10436_v13, %v10438_v14  ;;  %vm160_vm1 = vcmp.eq.s32.totalorder %v10430_v6, %v159_v56 }
  0x5f   :  { %v10454_v20 = vsub.s32 %v167_v7, %v10430_v6  ;;  %v371_v21 = vadd.f32 %v101_v16, %v10434_v11  ;;  %v372_v22 = vadd.f32 %v102_v17, %v10436_v13  ;;  %v373_v23 = vadd.f32 %v103_v18, %v10438_v14  ;;  %v10459_v24 = vld [vmem:[#allocation2 + $0x8] sm:$0x3]  ;;  %v10461_v25 = vld [vmem:[#allocation2 + $0xa] sm:$0x3]  ;;  %v10463_v26 = vld [vmem:[#allocation2 + $0xc] sm:$0x3]  ;;  %9348 = vmatprep.subr.bf16.mxu0 %v9347_v12 }
  0x60   :  { %v10465_v27 = vld [vmem:[#allocation2 + $0xe] sm:$0x3]  ;;  %v104_v28 = vld [vmem:[%s12064_s3 + $0x8] sm:$0x3]  ;;  %v105_v29 = vld [vmem:[%s12064_s3 + $0xa] sm:$0x3]  ;;  %v445_v48 = vcombine.low %v10459_v24, %v10461_v25 }
  0x61   :  { %v386_v30 = vcombine.low %v370_v19, %v371_v21  ;;  %v387_v31 = vcombine.low %v372_v22, %v373_v23  ;;  %v106_v32 = vld [vmem:[%s12064_s3 + $0xc] sm:$0x3]  ;;  %v107_v33 = vld [vmem:[%s12064_s3 + $0xe] sm:$0x3]  ;;  %v374_v34 = vadd.f32 %v104_v28, %v10459_v24  ;;  %v375_v35 = vadd.f32 %v105_v29, %v10461_v25  ;;  %v8393_v0 = vld [vmem:[#allocation10] ss:$0 sm:$0xff] }
  0x62   :  { %v376_v36 = vadd.f32 %v106_v32, %v10463_v26  ;;  %v377_v37 = vadd.f32 %v107_v33, %v10465_v27  ;;  %9350 = vmatpush3.bf16.msra.mxu0 %v9347_v12  ;;  %v446_v49 = vcombine.low %v10463_v26, %v10465_v27  ;;  %v436_v50 = vrot.slane %v428_v46, %v10454_v20  ;;  %s10289_s7 = smov 88   ;;  %s10290_s8 = smov 120  }
  0x63   :  { %v394_v38 = vrot.slane %v386_v30, %v10454_v20  ;;  %v401_v39 = vrot.slane %v387_v31, %v10454_v20  ;;  %v403_v40 = vcombine.low %v374_v34, %v375_v35  ;;  %v443_v51 = vrot.slane %v429_v47, %v10454_v20  ;;  %s10291_s11 = smov 56   ;;  %s10292_s12 = smov 80  }
  0x64   :  { %v404_v41 = vcombine.low %v376_v36, %v377_v37  ;;  %v453_v52 = vrot.slane %v445_v48, %v10454_v20  ;;  %v460_v53 = vrot.slane %v446_v49, %v10454_v20  ;;  %v8378_v58 = vsel %vm160_vm1, 1.0, %v10286_v57  ;;  %s10293_s13 = smov 112   ;;  %s10294_s4 = smov 72  }
  0x65   :  { %v402_v42 = vcombine.low %v394_v38, %v401_v39  ;;  %v411_v43 = vrot.slane %v403_v40, %v10454_v20  ;;  %v444_v54 = vcombine.low %v436_v50, %v443_v51  ;;  %v164_v59 = vcombine.low %v8378_v58, %v8378_v58  ;;  %s10295_s2 = smov 104   ;;  %s10296_s28 = smov 48  }
  0x66   :  { %v418_v44 = vrot.slane %v404_v41, %v10454_v20  ;;  %v461_v55 = vcombine.low %v453_v52, %v460_v53  ;;  %vm173_vm2 = vcmask 15360   ;;  %vm570_vm4 = vcmask 64512   ;;  %s10297_s5 = smov 40   ;;  %s10298_s1 = smov 16  }
  0x67   :  { %8867 = vmatprep.mubr.msk.f32.mxu0 %vm462_vm0, %v402_v42  ;;  %v171_v60 = vrot.slane %v164_v59, %v10454_v20  ;;  %vm10508_vm3 = vmpackc.low %vm173_vm2, %vm173_vm2  ;;  %vm656_vm8 = vcmask 130048   ;;  %s10299_s24 = smov 24   ;;  %vm1402_vm9 = vcmask 195584   ;;  %vm3802_vm12 = vcmask 523264  }
  0x68   :  { %v419_v45 = vcombine.low %v411_v43, %v418_v44  ;;  %vm10542_vm5 = vmpackc.low %vm570_vm4, %vm570_vm4  ;;  %vm8350_vm13 = vcmask 254976  }
  0x69   :  { %v172_v61 = vcombine.low %v171_v60, %v171_v60 }
  0x6a   :  { %8868 = vmatmul.mubr.msk.f32.vlgmr.msra.gmra.mrb[0].mxu0 %vm462_vm0, %v419_v45 }
  0x6b   :  { %8870 = vmatprep.mubr.msk.f32.mxu0 %vm462_vm0, %v444_v54  ;;  %v9325_v62 = vpack.c.bf16 %v172_v61, %v172_v61  ;;  %8845 = vmatprep.mubr.msk.f32.mxu1 %vm173_vm2, %v172_v61 }
  0x6d   :  { %9327 = vmatprep.subr.msk.bf16.mxu1 %vm10508_vm3, %v9325_v62 }
  0x6e   :  { %8871 = vmatmul.mubr.msk.f32.gmra.mrb[2].mxu0 %vm462_vm0, %v461_v55  ;;  %9330 = vmatpush3.bf16.xpose.msk.msra.mxu1 %vm10508_vm3, %v9325_v62 }
  0x6f   :  { %9333 = vmatprep.subr.msk.bf16.mxu1 %vm10508_vm3, %v9325_v62 }
  0x75   :  { %8846 = vmatmul.mubr.msk.f32.vlgmr.msra.gmra.mrb[0].mxu1 %vm173_vm2, %v172_v61 }
  0x76   :  { %9336 = vmatpush3.bf16.xpose.msk.msra.mxu1 %vm10508_vm3, %v9325_v62  ;;  %8856 = vmatprep.mubr.msk.f32.mxu1 %vm173_vm2, %v172_v61 }
  0x77   :  { %9339 = vmatprep.subr.msk.bf16.mxu1 %vm10508_vm3, %v9325_v62 }
  0x7e   :  { %9342 = vmatpush3.bf16.xpose.msk.msra.mxu1 %vm10508_vm3, %v9325_v62 }
  0x85   :  { %8857 = vmatmul.mubr.msk.f32.vlgmr.msra.gmra.mrb[2].mxu1 %vm173_vm2, %v172_v61 }
 0x13d   :  { %v8869_v1 = vpop.f32.mrb[0].mxu0 }
 0x13e   :  { %v10519_v2 = vadd.f32 %v8869_v1, %v8393_v0  ;;  %v537_v3 = vpop.f32.mrb[1].mxu0 }
 0x13f   :  { %v10521_v4 = vadd.f32 %v8393_v0, %v537_v3 }
 0x141   :  { %8877 = vmatprep.mubr.msk.f32.mxu0 %vm570_vm4, %v10521_v4  ;;  %v10528_v5 = vpack.i.bf16 %v10519_v2, %v10521_v4  ;;  %v8872_v7 = vpop.f32.mrb[2].mxu0 }
 0x142   :  { %v547_v8 = vpop.f32.mrb[3].mxu0  ;;  %v563_v18 = vadd.f32 %v8872_v7, %v8393_v0 }
 0x143   :  { %9725 = vrot.lane.b32.xlu0 %v10528_v5, %s10287_s29  ;;  %v562_v19 = vadd.f32 %v8393_v0, %v547_v8 }
 0x145   :  { %v10556_v23 = vpack.i.bf16 %v563_v18, %v562_v19 }
 0x148   :  { %v10552_v21 = vpop.f32.mrb[0].mxu1 }
 0x149   :  { %12080 = vst [vmem:[#allocation16_spill] sm:$0xff] %v10552_v21  ;;  %v10554_v22 = vpop.f32.mrb[1].mxu1  ;;  %vm252_vm6 = vcmp.gt.f32.partialorder %v10552_v21, 0.5  ;;  %v10896_v21 = vld [vmem:[#allocation5 + $0x1e] sm:$0x3] }
 0x14a   :  { %12081 = vst [vmem:[#allocation17_spill] sm:$0xff] %v10554_v22  ;;  %vm251_vm7 = vcmp.gt.f32.partialorder %v10554_v22, 0.5 }
 0x158   :  { %v10578_v52 = vpop.f32.mrb[2].mxu1 }
 0x159   :  { %v10580_v53 = vpop.f32.mrb[3].mxu1  ;;  %vm329_vm10 = vcmp.gt.f32.partialorder %v10578_v52, 0.5 }
 0x15a   :  { %vm328_vm11 = vcmp.gt.f32.partialorder %v10580_v53, 0.5 }
 0x1b5   :  { %v9726_v9 = vpop.permute.xlu0 %9725 }
 0x1b6   :  { %v9728_v12 = vunpack.i.h.bf16 %v9726_v9  ;;  %v9727_v15 = vunpack.i.l.bf16 %v9726_v9 }
 0x1b8   :  { %v9351_v17 = vpack.c.bf16 %v9728_v12, %v9727_v15 }
 0x1ba   :  { %9353 = vmatprep.subr.msk.bf16.mxu0 %vm10542_vm5, %v9351_v17 }
 0x1bb   :  { %9356 = vmatpush3.bf16.xpose.msk.msra.mxu0 %vm10542_vm5, %v9351_v17 }
 0x1c2   :  { %8878 = vmatmul.mubr.msk.f32.vlgmr.msra.gmra.mrb[4].mxu0 %vm570_vm4, %v10519_v2 }
 0x295   :  { %v8879_v28 = vpop.f32.mrb[4].mxu0 }
 0x296   :  { %v655_v29 = vsel %vm252_vm6, %v8879_v28, -1e+30  ;;  %v645_v30 = vpop.f32.mrb[5].mxu0 }
 0x297   :  { %v654_v31 = vsel %vm251_vm7, %v645_v30, -1e+30  ;;  %v660_v32 = vsel %vm656_vm8, %v655_v29, -inf }
 0x298   :  { %661 = vmax.xlane.f32.xlu1 %v660_v32  ;;  %v657_v33 = vsel %vm656_vm8, %v654_v31, -inf }
 0x299   :  { %658 = vmax.xlane.f32.xlu0 %v657_v33 }
 0x2a9   :  { %9730 = vrot.lane.b32.xlu1 %v10556_v23, %s10288_s30 }
 0x2ad   :  { %9735 = vrot.lane.b32.xlu1 %v10528_v5, %s10289_s7 }
 0x2af   :  { %770 = vrot.lane.b32.xlu0 %v10519_v2, %s10290_s8 }
 0x325   :  { %v662_v34 = vpop.xlane.xlu1 %661 }
 0x326   :  { %v664_v35 = vsub.f32 %v655_v29, %v662_v34  ;;  %v659_v36 = vpop.xlane.xlu0 %658 }
 0x327   :  { %v663_v37 = vsub.f32 %v654_v31, %v659_v36 }
 0x328   :  { %v667_v38 = vmul.f32 1.442695, %v664_v35 }
 0x329   :  { %v665_v39 = vmul.f32 1.442695, %v663_v37  ;;  %v9731_v40 = vpop.permute.xlu1 %9730 }
 0x32a   :  { %9964 = vpow2.f32 %v667_v38  ;;  %v9733_v41 = vunpack.i.h.bf16 %v9731_v40  ;;  %v9732_v42 = vunpack.i.l.bf16 %v9731_v40  ;;  %v771_v61 = vpop.permute.xlu0 %770 }
 0x32b   :  { %9966 = vpow2.f32 %v665_v39 }
 0x32c   :  { %v9357_v43 = vpack.c.bf16 %v9733_v41, %v9732_v42 }
 0x32d   :  { %v9736_v44 = vpop.permute.xlu1 %9735 }
 0x32e   :  { %v9738_v45 = vunpack.i.h.bf16 %v9736_v44  ;;  %v9737_v46 = vunpack.i.l.bf16 %v9736_v44  ;;  %9358 = vmatprep.subr.bf16.mxu1 %v9357_v43 }
 0x32f   :  { %9360 = vmatpush3.bf16.msra.mxu1 %v9357_v43 }
 0x330   :  { %v9361_v47 = vpack.c.bf16 %v9738_v45, %v9737_v46 }
 0x332   :  { %9363 = vmatprep.subr.msk.bf16.mxu1 %vm10542_vm5, %v9361_v47 }
 0x334   :  { %v9965_v48 = vpop.eup %9964 }
 0x335   :  { %v672_v49 = vsel %vm656_vm8, %v9965_v48, 0.0  ;;  %v9967_v50 = vpop.eup %9966 }
 0x336   :  { %673 = vadd.xlane.f32.xlu1 %v672_v49  ;;  %v669_v51 = vsel %vm656_vm8, %v9967_v50, 0.0 }
 0x33a   :  { %670 = vadd.xlane.f32.xlu1 %v669_v51 }
 0x34b   :  { %768 = vrot.lane.b32.xlu1 %v10521_v4, %s10290_s8 }
 0x3c3   :  { %v674_v54 = vpop.xlane.xlu1 %673 }
 0x3c4   :  { %9968 = vrcp.f32 %v674_v54 }
 0x3c7   :  { %v671_v55 = vpop.xlane.xlu1 %670 }
 0x3c8   :  { %9970 = vrcp.f32 %v671_v55 }
 0x3cb   :  { %v769_v60 = vpop.permute.xlu1 %768 }
 0x3ce   :  { %v9969_v56 = vpop.eup %9968 }
 0x3cf   :  { %v678_v59 = vmul.f32 %v9969_v56, %v9965_v48 }
 0x3d2   :  { %v9971_v57 = vpop.eup %9970 }
 0x3d3   :  { %v677_v58 = vmul.f32 %v9971_v57, %v9967_v50 }
 0x3d5   :  { %8884 = vmatprep.mubr.msk.f32.mxu1 %vm656_vm8, %v677_v58 }
 0x3d6   :  { %8885 = vmatmul.mubr.msk.f32.vlgmr.msra.gmra.mrb[4].mxu1 %vm656_vm8, %v678_v59 }
 0x3d7   :  { %9366 = vmatpush3.bf16.xpose.msk.msra.mxu1 %vm10542_vm5, %v9361_v47  ;;  %8891 = vmatprep.mubr.msk.f32.mxu1 %vm570_vm4, %v769_v60 }
 0x3de   :  { %8892 = vmatmul.mubr.msk.f32.vlgmr.msra.gmra.mrb[6].mxu1 %vm570_vm4, %v771_v61 }
 0x4a9   :  { %v10588_v62 = vpop.f32.mrb[4].mxu1 }
 0x4aa   :  { %v10590_v63 = vpop.f32.mrb[5].mxu1 }
 0x4b1   :  { %v8893_v0 = vpop.f32.mrb[6].mxu1 }
 0x4b2   :  { %v860_v1 = vsel %vm252_vm6, %v8893_v0, -1e+30  ;;  %v850_v3 = vpop.f32.mrb[7].mxu1 }
 0x4b3   :  { %v859_v7 = vsel %vm251_vm7, %v850_v3, -1e+30  ;;  %v864_v8 = vsel %vm656_vm8, %v860_v1, -inf }
 0x4b4   :  { %865 = vmax.xlane.f32.xlu0 %v864_v8  ;;  %v861_v9 = vsel %vm656_vm8, %v859_v7, -inf }
 0x4b5   :  { %862 = vmax.xlane.f32.xlu1 %v861_v9 }
 0x4c6   :  { %9740 = vrot.lane.b32.xlu1 %v10556_v23, %s10291_s11 }
 0x4ca   :  { %9745 = vrot.lane.b32.xlu0 %v10528_v5, %s10292_s12  ;;  %970 = vrot.lane.b32.xlu1 %v10521_v4, %s10293_s13 }
 0x541   :  { %v866_v12 = vpop.xlane.xlu0 %865 }
 0x542   :  { %v868_v15 = vsub.f32 %v860_v1, %v866_v12  ;;  %v863_v17 = vpop.xlane.xlu1 %862 }
 0x543   :  { %v867_v18 = vsub.f32 %v859_v7, %v863_v17 }
 0x544   :  { %v871_v19 = vmul.f32 1.442695, %v868_v15 }
 0x545   :  { %v869_v28 = vmul.f32 1.442695, %v867_v18  ;;  %v9746_v29 = vpop.permute.xlu0 %9745 }
 0x546   :  { %9972 = vpow2.f32 %v871_v19  ;;  %v9741_v30 = vpop.permute.xlu1 %9740  ;;  %v9748_v31 = vunpack.i.h.bf16 %v9746_v29  ;;  %v9747_v32 = vunpack.i.l.bf16 %v9746_v29 }
 0x547   :  { %v9743_v33 = vunpack.i.h.bf16 %v9741_v30  ;;  %v9742_v34 = vunpack.i.l.bf16 %v9741_v30  ;;  %9974 = vpow2.f32 %v869_v28 }
 0x548   :  { %v9371_v36 = vpack.c.bf16 %v9748_v31, %v9747_v32 }
 0x549   :  { %v9367_v35 = vpack.c.bf16 %v9743_v33, %v9742_v34 }
 0x54a   :  { %v971_v41 = vpop.permute.xlu1 %970 }
 0x54b   :  { %9368 = vmatprep.subr.bf16.mxu0 %v9367_v35 }
 0x54c   :  { %9370 = vmatpush3.bf16.msra.mxu0 %v9367_v35 }
 0x54d   :  { %9373 = vmatprep.subr.msk.bf16.mxu0 %vm10542_vm5, %v9371_v36 }
 0x550   :  { %v9973_v37 = vpop.eup %9972 }
 0x551   :  { %v876_v38 = vsel %vm656_vm8, %v9973_v37, 0.0  ;;  %v9975_v39 = vpop.eup %9974 }
 0x552   :  { %877 = vadd.xlane.f32.xlu1 %v876_v38  ;;  %v873_v40 = vsel %vm656_vm8, %v9975_v39, 0.0 }
 0x556   :  { %874 = vadd.xlane.f32.xlu1 %v873_v40 }
 0x567   :  { %972 = vrot.lane.b32.xlu1 %v10519_v2, %s10293_s13 }
 0x5df   :  { %v878_v42 = vpop.xlane.xlu1 %877 }
 0x5e0   :  { %9976 = vrcp.f32 %v878_v42 }
 0x5e3   :  { %v875_v43 = vpop.xlane.xlu1 %874 }
 0x5e4   :  { %9978 = vrcp.f32 %v875_v43 }
 0x5e7   :  { %v973_v48 = vpop.permute.xlu1 %972 }
 0x5ea   :  { %v9977_v44 = vpop.eup %9976 }
 0x5eb   :  { %v882_v47 = vmul.f32 %v9977_v44, %v9973_v37 }
 0x5ee   :  { %v9979_v45 = vpop.eup %9978 }
 0x5ef   :  { %v881_v46 = vmul.f32 %v9979_v45, %v9975_v39 }
 0x5f1   :  { %8898 = vmatprep.mubr.msk.f32.mxu0 %vm656_vm8, %v881_v46 }
 0x5f2   :  { %8899 = vmatmul.mubr.msk.f32.vlgmr.msra.gmra.mrb[6].mxu0 %vm656_vm8, %v882_v47 }
 0x5f3   :  { %9376 = vmatpush3.bf16.xpose.msk.msra.mxu0 %vm10542_vm5, %v9371_v36  ;;  %8905 = vmatprep.mubr.msk.f32.mxu0 %vm570_vm4, %v971_v41 }
 0x5fa   :  { %8906 = vmatmul.mubr.msk.f32.vlgmr.msra.gmra.mrb[8].mxu0 %vm570_vm4, %v973_v48 }
 0x6c5   :  { %v10616_v49 = vpop.f32.mrb[6].mxu0 }
 0x6c6   :  { %v10618_v50 = vpop.f32.mrb[7].mxu0 }
 0x6cd   :  { %v8907_v51 = vpop.f32.mrb[8].mxu0 }
 0x6ce   :  { %v1062_v54 = vsel %vm252_vm6, %v8907_v51, -1e+30  ;;  %v1052_v55 = vpop.f32.mrb[9].mxu0 }
 0x6cf   :  { %v1061_v56 = vsel %vm251_vm7, %v1052_v55, -1e+30  ;;  %v1066_v57 = vsel %vm656_vm8, %v1062_v54, -inf }
 0x6d0   :  { %1067 = vmax.xlane.f32.xlu0 %v1066_v57  ;;  %v1063_v58 = vsel %vm656_vm8, %v1061_v56, -inf }
 0x6d1   :  { %1064 = vmax.xlane.f32.xlu1 %v1063_v58 }
 0x75d   :  { %v1068_v59 = vpop.xlane.xlu0 %1067 }
 0x75e   :  { %v1070_v60 = vsub.f32 %v1062_v54, %v1068_v59  ;;  %v1065_v61 = vpop.xlane.xlu1 %1064 }
 0x75f   :  { %v1069_v0 = vsub.f32 %v1061_v56, %v1065_v61 }
 0x760   :  { %v1073_v1 = vmul.f32 1.442695, %v1070_v60 }
 0x761   :  { %v1071_v3 = vmul.f32 1.442695, %v1069_v0 }
 0x762   :  { %9980 = vpow2.f32 %v1073_v1 }
 0x763   :  { %9982 = vpow2.f32 %v1071_v3 }
 0x76c   :  { %v9981_v7 = vpop.eup %9980 }
 0x76d   :  { %v9983_v8 = vpop.eup %9982  ;;  %v1078_v9 = vsel %vm656_vm8, %v9981_v7, 0.0 }
 0x76e   :  { %1079 = vadd.xlane.f32.xlu1 %v1078_v9  ;;  %v1075_v12 = vsel %vm656_vm8, %v9983_v8, 0.0  ;;  %v335_v9 = vld [vmem:[#allocation8 + $0x28] sm:$0xff] }
 0x76f   :  { %1076 = vadd.xlane.f32.xlu0 %v1075_v12  ;;  %v336_v12 = vld [vmem:[#allocation8 + $0x30] sm:$0xff] }
 0x77f   :  { %9755 = vrot.lane.b32.xlu1 %v10528_v5, %s10294_s4 }
 0x783   :  { %1172 = vrot.lane.b32.xlu1 %v10521_v4, %s10295_s2 }
 0x785   :  { %9750 = vrot.lane.b32.xlu0 %v10556_v23, %s10296_s28 }
 0x789   :  { %1174 = vrot.lane.b32.xlu0 %v10519_v2, %s10295_s2 }
 0x7fb   :  { %v1080_v15 = vpop.xlane.xlu1 %1079 }
 0x7fc   :  { %9984 = vrcp.f32 %v1080_v15  ;;  %v1077_v17 = vpop.xlane.xlu0 %1076 }
 0x7fd   :  { %9986 = vrcp.f32 %v1077_v17  ;;  %v337_v17 = vld [vmem:[#allocation8 + $0x38] sm:$0xff] }
 0x7ff   :  { %v9756_v18 = vpop.permute.xlu1 %9755 }
 0x800   :  { %v9751_v19 = vpop.permute.xlu0 %9750  ;;  %v9758_v28 = vunpack.i.h.bf16 %v9756_v18  ;;  %v9757_v29 = vunpack.i.l.bf16 %v9756_v18  ;;  %v9395_v18 = vpack.c.bf16 %v337_v17, %v336_v12 }
 0x801   :  { %v9753_v5 = vunpack.i.h.bf16 %v9751_v19  ;;  %v9752_v30 = vunpack.i.l.bf16 %v9751_v19 }
 0x802   :  { %v9381_v32 = vpack.c.bf16 %v9758_v28, %v9757_v29 }
 0x803   :  { %v9377_v31 = vpack.c.bf16 %v9753_v5, %v9752_v30  ;;  %v1173_v35 = vpop.permute.xlu1 %1172 }
 0x804   :  { %v1175_v36 = vpop.permute.xlu0 %1174 }
 0x805   :  { %9378 = vmatprep.subr.bf16.mxu1 %v9377_v31 }
 0x806   :  { %v9985_v4 = vpop.eup %9984  ;;  %9380 = vmatpush3.bf16.msra.mxu1 %v9377_v31 }
 0x807   :  { %v9987_v33 = vpop.eup %9986  ;;  %9383 = vmatprep.subr.msk.bf16.mxu1 %vm10542_vm5, %v9381_v32  ;;  %v1084_v34 = vmul.f32 %v9985_v4, %v9981_v7 }
 0x808   :  { %v1083_v2 = vmul.f32 %v9987_v33, %v9983_v8 }
 0x80a   :  { %8912 = vmatprep.mubr.msk.f32.mxu1 %vm656_vm8, %v1083_v2 }
 0x80b   :  { %8913 = vmatmul.mubr.msk.f32.vlgmr.msra.gmra.mrb[8].mxu1 %vm656_vm8, %v1084_v34 }
 0x80c   :  { %8919 = vmatprep.mubr.msk.f32.mxu1 %vm570_vm4, %v1173_v35 }
 0x80f   :  { %9386 = vmatpush3.bf16.xpose.msk.msra.mxu1 %vm10542_vm5, %v9381_v32 }
 0x816   :  { %8920 = vmatmul.mubr.msk.f32.vlgmr.msra.gmra.mrb[10].mxu1 %vm570_vm4, %v1175_v36 }
 0x8de   :  { %v8914_v37 = vpop.f32.mrb[8].mxu1 }
 0x8df   :  { %v1163_v38 = vpop.f32.mrb[9].mxu1 }
 0x8e9   :  { %v8921_v39 = vpop.f32.mrb[10].mxu1 }
 0x8ea   :  { %v1264_v40 = vsel %vm252_vm6, %v8921_v39, -1e+30  ;;  %v1254_v41 = vpop.f32.mrb[11].mxu1 }
 0x8eb   :  { %v1263_v42 = vsel %vm251_vm7, %v1254_v41, -1e+30  ;;  %v1268_v43 = vsel %vm656_vm8, %v1264_v40, -inf }
 0x8ec   :  { %1269 = vmax.xlane.f32.xlu0 %v1268_v43  ;;  %v1265_v44 = vsel %vm656_vm8, %v1263_v42, -inf }
 0x8ed   :  { %1266 = vmax.xlane.f32.xlu1 %v1265_v44 }
 0x979   :  { %v1270_v45 = vpop.xlane.xlu0 %1269 }
 0x97a   :  { %v1272_v46 = vsub.f32 %v1264_v40, %v1270_v45  ;;  %v1267_v47 = vpop.xlane.xlu1 %1266 }
 0x97b   :  { %v1271_v48 = vsub.f32 %v1263_v42, %v1267_v47 }
 0x97c   :  { %v1275_v51 = vmul.f32 1.442695, %v1272_v46 }
 0x97d   :  { %v1273_v54 = vmul.f32 1.442695, %v1271_v48 }
 0x97e   :  { %9988 = vpow2.f32 %v1275_v51 }
 0x97f   :  { %9990 = vpow2.f32 %v1273_v54 }
 0x988   :  { %v9989_v55 = vpop.eup %9988 }
 0x989   :  { %v9991_v56 = vpop.eup %9990  ;;  %v1280_v57 = vsel %vm656_vm8, %v9989_v55, 0.0 }
 0x98a   :  { %1281 = vadd.xlane.f32.xlu1 %v1280_v57  ;;  %v1277_v58 = vsel %vm656_vm8, %v9991_v56, 0.0 }
 0x98b   :  { %1278 = vadd.xlane.f32.xlu0 %v1277_v58 }
 0x99b   :  { %1376 = vrot.lane.b32.xlu1 %v10618_v50, %s10281_s21 }
 0x99f   :  { %1378 = vrot.lane.b32.xlu1 %v10616_v49, %s10281_s21 }
 0x9a1   :  { %9760 = vrot.lane.b32.xlu0 %v10556_v23, %s10297_s5  ;;  %v334_v23 = vld [vmem:[#allocation8 + $0x20] sm:$0xff] }
 0x9a2   :  { %v9391_v15 = vpack.c.bf16 %v335_v9, %v334_v23 }
 0x9a3   :  { %1386 = vrot.lane.b32.xlu1 %v8914_v37, %s10298_s1 }
 0x9a5   :  { %1384 = vrot.lane.b32.xlu0 %v1163_v38, %s10298_s1  ;;  %v8420_v38 = vld [vmem:[#allocation10 + $0x1] ss:$0 sm:$0xff] }
 0x9a6   :  { %v1543_v39 = vcombine.high %v8420_v38, %v8420_v38 }
 0x9a8   :  { %v1557_v42 = vrot.slane %v1543_v39, %v10454_v20 }
 0xa17   :  { %v1282_v59 = vpop.xlane.xlu1 %1281 }
 0xa18   :  { %9992 = vrcp.f32 %v1282_v59  ;;  %v1279_v60 = vpop.xlane.xlu0 %1278 }
 0xa19   :  { %9994 = vrcp.f32 %v1279_v60  ;;  %v1559_v60 = vcombine.high %v1557_v42, %v1557_v42 }
 0xa1b   :  { %v1377_v29 = vpop.permute.xlu1 %1376 }
 0xa1c   :  { %v9761_v61 = vpop.permute.xlu0 %9760  ;;  %v1398_v32 = vsel %vm570_vm4, %v10590_v63, %v1377_v29  ;;  %v1550_v63 = vrot.slane %v8420_v38, %v10454_v20 }
 0xa1d   :  { %v9763_v0 = vunpack.i.h.bf16 %v9761_v61  ;;  %v9762_v1 = vunpack.i.l.bf16 %v9761_v61 }
 0xa1e   :  { %v1558_v51 = vcombine.high %v1550_v63, %v1550_v63 }
 0xa1f   :  { %v9387_v50 = vpack.c.bf16 %v9763_v0, %v9762_v1  ;;  %v1379_v5 = vpop.permute.xlu1 %1378 }
 0xa20   :  { %v1385_v31 = vpop.permute.xlu0 %1384  ;;  %v1399_v33 = vsel %vm570_vm4, %v10588_v62, %v1379_v5  ;;  %v10300_v5 = vmov 269488144  }
 0xa21   :  { %9388 = vmatprep.subr.bf16.mxu0 %v9387_v50  ;;  %v1400_v2 = vsel %vm656_vm8, %v1398_v32, %v1385_v31  ;;  %v10301_v31 = vmov 842150450  }
 0xa22   :  { %v9993_v3 = vpop.eup %9992  ;;  %9390 = vmatpush3.bf16.msra.mxu0 %v9387_v50  ;;  %v1635_v32 = vunpack.c.l.s4 %v10301_v31  ;;  %v341_v31 = vld [vmem:[#allocation8 + $0x58] sm:$0xff] }
 0xa23   :  { %v9995_v49 = vpop.eup %9994  ;;  %v1286_v8 = vmul.f32 %v9993_v3, %v9989_v55  ;;  %9392 = vmatprep.subr.bf16.mxu0 %v9391_v15  ;;  %v1387_v30 = vpop.permute.xlu1 %1386 }
 0xa24   :  { %v1285_v7 = vmul.f32 %v9995_v49, %v9991_v56  ;;  %v1401_v35 = vsel %vm656_vm8, %v1399_v33, %v1387_v30  ;;  %v1628_v30 = vunpack.c.l.s4 %v10300_v5  ;;  %v340_v5 = vld [vmem:[#allocation8 + $0x50] sm:$0xff] }
 0xa26   :  { %8926 = vmatprep.mubr.msk.f32.mxu0 %vm656_vm8, %v1285_v7 }
 0xa27   :  { %8927 = vmatmul.mubr.msk.f32.vlgmr.msra.gmra.mrb[10].mxu0 %vm656_vm8, %v1286_v8 }
 0xa28   :  { %9394 = vmatpush3.bf16.msra.mxu0 %v9391_v15 }
 0xa29   :  { %9396 = vmatprep.subr.bf16.mxu0 %v9395_v18 }
 0xa2c   :  { %9398 = vmatpush3.bf16.msra.mxu0 %v9395_v18 }
 0xafa   :  { %v8928_v19 = vpop.f32.mrb[10].mxu0 }
 0xafb   :  { %1394 = vrot.lane.b32.xlu1 %v8928_v19, %s10299_s24  ;;  %v1365_v28 = vpop.f32.mrb[11].mxu0 }
 0xafc   :  { %1392 = vrot.lane.b32.xlu0 %v1365_v28, %s10299_s24 }
 0xb6d   :  { %v1395_v4 = vpop.permute.xlu1 %1394 }
 0xb6e   :  { %v1393_v34 = vpop.permute.xlu0 %1392  ;;  %v1404_v37 = vsel %vm1402_vm9, %v1401_v35, %v1395_v4  ;;  %v10302_v4 = vmov 1414812756   ;;  %v1629_v35 = vunpack.c.0.s8 %v1628_v30 }
 0xb6f   :  { %v1403_v36 = vsel %vm1402_vm9, %v1400_v2, %v1393_v34  ;;  %v1642_v33 = vunpack.c.l.s4 %v10302_v4  ;;  %v10303_v2 = vmov 1987475062  }
 0xb70   :  { %8937 = vmatprep.mubr.msk.f32.mxu0 %vm462_vm0, %v1403_v36  ;;  %v1649_v34 = vunpack.c.l.s4 %v10303_v2  ;;  %v1636_v36 = vunpack.c.0.s8 %v1635_v32  ;;  %v10695_v39 = vsub.s32 %v1629_v35, %v10430_v6  ;;  %v9403_v32 = vpack.c.bf16 %v341_v31, %v340_v5 }
 0xb71   :  { %8938 = vmatmul.mubr.msk.f32.vlgmr.msra.gmra.mrb[12].mxu0 %vm462_vm0, %v1404_v37  ;;  %v1643_v37 = vunpack.c.0.s8 %v1642_v33 }
 0xb72   :  { %v1650_v38 = vunpack.c.0.s8 %v1649_v34  ;;  %v8421_v34 = vld [vmem:[#allocation10 + $0x6] ss:$0 sm:$0xff] }
 0xc44   :  { %v8939_v40 = vpop.f32.mrb[12].mxu0 }
 0xc45   :  { %v1505_v41 = vcombine.high %v8939_v40, %v8939_v40  ;;  %v1512_v62 = vrot.slane %v8939_v40, %v10454_v20  ;;  %v1477_v43 = vpop.f32.mrb[13].mxu0  ;;  %v10701_v40 = vsub.s32 %v1643_v37, %v10430_v6 }
 0xc46   :  { %v1488_v44 = vcombine.high %v1477_v43, %v1477_v43  ;;  %v1495_v45 = vrot.slane %v1477_v43, %v10454_v20 }
 0xc47   :  { %v1519_v46 = vrot.slane %v1505_v41, %v10454_v20  ;;  %v1520_v47 = vcombine.high %v1512_v62, %v1512_v62  ;;  %v1534_v48 = vadd.f32 %v1512_v62, %v10459_v24  ;;  %12082 = vst [vmem:[#allocation18_spill] sm:$0xff] %v10701_v40  ;;  %v10704_v41 = vsub.s32 %v1650_v38, %v10430_v6 }
 0xc48   :  { %v1502_v54 = vrot.slane %v1488_v44, %v10454_v20  ;;  %v1503_v55 = vcombine.high %v1495_v45, %v1495_v45  ;;  %v1530_v56 = vadd.f32 %v1495_v45, %v10432_v10  ;;  %v1842_v38 = vcombine.high %v8421_v34, %v8421_v34 }
 0xc49   :  { %v1521_v57 = vcombine.high %v1519_v46, %v1519_v46  ;;  %v1535_v58 = vadd.f32 %v1520_v47, %v10461_v25  ;;  %v1536_v59 = vadd.f32 %v1519_v46, %v10463_v26  ;;  %v1568_v24 = vadd.f32 %v1550_v63, %v1534_v48  ;;  %12083 = vst [vmem:[#allocation19_spill] sm:$0xff] %v10704_v41 }
 0xc4a   :  { %v1504_v61 = vcombine.high %v1502_v54, %v1502_v54  ;;  %v1531_v0 = vadd.f32 %v1503_v55, %v10434_v11  ;;  %v1532_v1 = vadd.f32 %v1502_v54, %v10436_v13  ;;  %v1564_v7 = vadd.f32 %v1550_v63, %v1530_v56 }
 0xc4b   :  { %v1537_v50 = vadd.f32 %v1521_v57, %v10465_v27  ;;  %v1569_v3 = vadd.f32 %v1558_v51, %v1535_v58  ;;  %v1570_v10 = vadd.f32 %v1557_v42, %v1536_v59  ;;  %v10698_v63 = vsub.s32 %v1636_v36, %v10430_v6  ;;  %v8422_v36 = vld [vmem:[#allocation10 + $0x7] ss:$0 sm:$0xff] }
 0xc4c   :  { %v1533_v49 = vadd.f32 %v1504_v61, %v10438_v14  ;;  %v1565_v8 = vadd.f32 %v1558_v51, %v1531_v0  ;;  %v1566_v25 = vadd.f32 %v1557_v42, %v1532_v1 }
 0xc4d   :  { %v1571_v23 = vadd.f32 %v1559_v60, %v1537_v50  ;;  %v1597_v9 = vcombine.low %v1568_v24, %v1569_v3 }
 0xc4e   :  { %v1567_v12 = vadd.f32 %v1559_v60, %v1533_v49  ;;  %v1580_v26 = vcombine.low %v1564_v7, %v1565_v8 }
 0xc4f   :  { %v1598_v15 = vcombine.low %v1570_v10, %v1571_v23  ;;  %v1605_v11 = vrot.slane %v1597_v9, %v10454_v20 }
 0xc50   :  { %v1581_v17 = vcombine.low %v1566_v25, %v1567_v12  ;;  %v1588_v27 = vrot.slane %v1580_v26, %v10454_v20 }
 0xc51   :  { %v1612_v13 = vrot.slane %v1598_v15, %v10454_v20 }
 0xc52   :  { %v1595_v18 = vrot.slane %v1581_v17, %v10454_v20 }
 0xc53   :  { %v1613_v19 = vcombine.low %v1605_v11, %v1612_v13 }
 0xc54   :  { %v1596_v14 = vcombine.low %v1588_v27, %v1595_v18 }
 0xc55   :  { %v1619_v28 = vsel %vm462_vm0, %v1613_v19, 0.0 }
 0xc56   :  { %1620 = vadd.xlane.f32.xlu1 %v1619_v28  ;;  %v1616_v29 = vsel %vm462_vm0, %v1596_v14, 0.0  ;;  %v338_v28 = vld [vmem:[#allocation8 + $0x40] sm:$0xff] }
 0xc57   :  { %1617 = vadd.xlane.f32.xlu0 %v1616_v29  ;;  %v339_v29 = vld [vmem:[#allocation8 + $0x48] sm:$0xff] }
 0xc58   :  { %v9399_v30 = vpack.c.bf16 %v339_v29, %v338_v28 }
 0xc5a   :  { %9400 = vmatprep.subr.bf16.mxu1 %v9399_v30 }
 0xc5b   :  { %9402 = vmatpush3.bf16.msra.mxu1 %v9399_v30 }
 0xc5c   :  { %9404 = vmatprep.subr.bf16.mxu1 %v9403_v32 }
 0xc5f   :  { %9406 = vmatpush3.bf16.msra.mxu1 %v9403_v32  ;;  %v10814_v32 = vld [vmem:[#allocation5 + $0x12] sm:$0x3] }
 0xce3   :  { %v1621_v62 = vpop.xlane.xlu1 %1620 }
 0xce4   :  { %v1624_v42 = vmul.f32 0.03125, %v1621_v62  ;;  %v1618_v43 = vpop.xlane.xlu0 %1617 }
 0xce5   :  { %v1623_v44 = vmul.f32 0.03125, %v1618_v43  ;;  %v10752_v43 = vld [vmem:[#allocation5] sm:$0x3] }
 0xce6   :  { %v1661_v45 = vrot.slane %v1624_v42, %v10695_v39  ;;  %v1668_v46 = vrot.slane %v1624_v42, %v10698_v63  ;;  %v1675_v47 = vrot.slane %v1624_v42, %v10701_v40  ;;  %v1682_v48 = vrot.slane %v1624_v42, %v10704_v41 }
 0xce7   :  { %v1633_v51 = vrot.slane %v1623_v44, %v10695_v39  ;;  %v1640_v54 = vrot.slane %v1623_v44, %v10698_v63  ;;  %v1647_v55 = vrot.slane %v1623_v44, %v10701_v40  ;;  %v1654_v6 = vrot.slane %v1623_v44, %v10704_v41  ;;  %v10754_v44 = vld [vmem:[#allocation5 + $0x2] sm:$0x3] }
 0xce8   :  { %v10714_v56 = vsub.f32 %v1568_v24, %v1661_v45  ;;  %v10716_v57 = vsub.f32 %v1569_v3, %v1668_v46  ;;  %v10718_v58 = vsub.f32 %v1570_v10, %v1675_v47  ;;  %v10720_v59 = vsub.f32 %v1571_v23, %v1682_v48  ;;  %v10756_v45 = vld [vmem:[#allocation5 + $0x4] sm:$0x3]  ;;  %v10758_v46 = vld [vmem:[#allocation5 + $0x6] sm:$0x3]  ;;  %v124_v47 = vld [vmem:[#allocation7] sm:$0x3] }
 0xce9   :  { %v10722_v60 = vsub.f32 %v1564_v7, %v1633_v51  ;;  %v10724_v61 = vsub.f32 %v1565_v8, %v1640_v54  ;;  %v10726_v0 = vsub.f32 %v1566_v25, %v1647_v55  ;;  %v10728_v1 = vsub.f32 %v1567_v12, %v1654_v6  ;;  %v125_v48 = vld [vmem:[#allocation7 + $0x2] sm:$0x3]  ;;  %v126_v51 = vld [vmem:[#allocation7 + $0x4] sm:$0x3]  ;;  %v127_v54 = vld [vmem:[#allocation7 + $0x6] sm:$0x3] }
 0xcea   :  { %v1703_v50 = vmul.f32 %v10714_v56, %v10714_v56  ;;  %v1704_v24 = vmul.f32 %v10716_v57, %v10716_v57  ;;  %v1705_v3 = vmul.f32 %v10718_v58, %v10718_v58  ;;  %v1706_v49 = vmul.f32 %v10720_v59, %v10720_v59  ;;  %v10760_v55 = vld [vmem:[#allocation5 + $0x8] sm:$0x3] }
 0xceb   :  { %v1699_v7 = vmul.f32 %v10722_v60, %v10722_v60  ;;  %v1700_v8 = vmul.f32 %v10724_v61, %v10724_v61  ;;  %v1701_v10 = vmul.f32 %v10726_v0, %v10726_v0  ;;  %v1702_v23 = vmul.f32 %v10728_v1, %v10728_v1 }
 0xcec   :  { %v1732_v9 = vcombine.low %v1703_v50, %v1704_v24  ;;  %v1733_v25 = vcombine.low %v1705_v3, %v1706_v49  ;;  %v1876_v42 = vcombine.high %v8422_v36, %v8422_v36  ;;  %v10763_v6 = vrot.slane %v8421_v34, %v10454_v20  ;;  %v10768_v24 = vld [vmem:[#allocation5 + $0xa] sm:$0x3]  ;;  %v128_v3 = vld [vmem:[#allocation7 + $0x8] sm:$0x3] }
 0xced   :  { %v1715_v12 = vcombine.low %v1699_v7, %v1700_v8  ;;  %v1716_v26 = vcombine.low %v1701_v10, %v1702_v23  ;;  %v10766_v50 = vrot.slane %v1842_v38, %v10454_v20  ;;  %v129_v49 = vld [vmem:[#allocation7 + $0xa] sm:$0x3]  ;;  %v10771_v7 = vrot.slane %v8422_v36, %v10454_v20  ;;  %v10776_v10 = vld [vmem:[#allocation5 + $0xc] sm:$0x3]  ;;  %v134_v38 = vld [vmem:[#allocation7 + $0x14] sm:$0x3] }
 0xcee   :  { %v1740_v11 = vrot.slane %v1732_v9, %v10454_v20  ;;  %v1747_v13 = vrot.slane %v1733_v25, %v10454_v20  ;;  %v10774_v8 = vrot.slane %v1876_v42, %v10454_v20  ;;  %v10779_v23 = vadd.f32 %v124_v47, %v10752_v43  ;;  %v10784_v25 = vld [vmem:[#allocation5 + $0xe] sm:$0x3] }
 0xcef   :  { %v1723_v15 = vrot.slane %v1715_v12, %v10454_v20  ;;  %v1730_v17 = vrot.slane %v1716_v26, %v10454_v20  ;;  %v10782_v9 = vadd.f32 %v125_v48, %v10754_v44  ;;  %v130_v12 = vld [vmem:[#allocation7 + $0xc] sm:$0x3]  ;;  %v131_v26 = vld [vmem:[#allocation7 + $0xe] sm:$0x3]  ;;  %v1891_v29 = vcombine.high %v10771_v7, %v10771_v7 }
 0xcf0   :  { %v1748_v19 = vcombine.low %v1740_v11, %v1747_v13  ;;  %v10793_v11 = vadd.f32 %v128_v3, %v10760_v55  ;;  %v10796_v13 = vadd.f32 %v129_v49, %v10768_v24  ;;  %v1892_v5 = vcombine.high %v10774_v8, %v10774_v8 }
 0xcf1   :  { %v1731_v27 = vcombine.low %v1723_v15, %v1730_v17  ;;  %v10787_v15 = vadd.f32 %v126_v51, %v10756_v45  ;;  %v10790_v17 = vadd.f32 %v127_v54, %v10758_v46  ;;  %v10809_v30 = vadd.f32 %v130_v12, %v10776_v10 }
 0xcf2   :  { %v1754_v14 = vsel %vm462_vm0, %v1748_v19, 0.0  ;;  %v10802_v19 = vld [vmem:[#allocation5 + $0x10] sm:$0x3]  ;;  %v10812_v31 = vadd.f32 %v131_v26, %v10784_v25 }
 0xcf3   :  { %v1751_v18 = vsel %vm462_vm0, %v1731_v27, 0.0  ;;  %v1857_v27 = vcombine.high %v10763_v6, %v10763_v6 }
 0xcf4   :  { %1752 = vadd.xlane.f32.xlu0 %v1751_v18  ;;  %v1858_v18 = vcombine.high %v10766_v50, %v10766_v50 }
 0xcf8   :  { %1755 = vadd.xlane.f32.xlu0 %v1754_v14  ;;  %v132_v14 = vld [vmem:[#allocation7 + $0x10] sm:$0x3] }
 0xcf9   :  { %v10831_v51 = vadd.f32 %v132_v14, %v10802_v19 }
 0xd81   :  { %v1753_v4 = vpop.xlane.xlu0 %1752 }
 0xd82   :  { %v1757_v33 = vmul.f32 0.03125, %v1753_v4  ;;  %v10816_v4 = vld [vmem:[#allocation5 + $0x14] sm:$0x3] }
 0xd83   :  { %v10843_v48 = vadd.f32 %v134_v38, %v10816_v4 }
 0xd84   :  { %v1759_v2 = vadd.f32 1e-05, %v1757_v33  ;;  %v10818_v33 = vld [vmem:[#allocation5 + $0x16] sm:$0x3] }
 0xd85   :  { %v1756_v35 = vpop.xlane.xlu0 %1755 }
 0xd86   :  { %9996 = vrsqrt.f32 %v1759_v2  ;;  %v1758_v37 = vmul.f32 0.03125, %v1756_v35 }
 0xd88   :  { %v1760_v62 = vadd.f32 1e-05, %v1758_v37  ;;  %v133_v37 = vld [vmem:[#allocation7 + $0x12] sm:$0x3] }
 0xd89   :  { %v10840_v47 = vadd.f32 %v133_v37, %v10814_v32 }
 0xd8a   :  { %9998 = vrsqrt.f32 %v1760_v62  ;;  %v135_v62 = vld [vmem:[#allocation7 + $0x16] sm:$0x3] }
 0xd8b   :  { %v10846_v14 = vadd.f32 %v135_v62, %v10818_v33 }
 0xd90   :  { %v9997_v28 = vpop.eup %9996 }
 0xd91   :  { %v1771_v2 = vrot.slane %v9997_v28, %v10695_v39  ;;  %v1778_v34 = vrot.slane %v9997_v28, %v10698_v63  ;;  %v1785_v35 = vrot.slane %v9997_v28, %v10701_v40  ;;  %v1792_v36 = vrot.slane %v9997_v28, %v10704_v41 }
 0xd93   :  { %v1829_v54 = vmul.f32 %v1771_v2, %v10722_v60  ;;  %v1830_v3 = vmul.f32 %v1778_v34, %v10724_v61  ;;  %v1831_v49 = vmul.f32 %v1785_v35, %v10726_v0  ;;  %v1832_v12 = vmul.f32 %v1792_v36, %v10728_v1 }
 0xd94   :  { %v9999_v26 = vpop.eup %9998 }
 0xd95   :  { %v1806_v60 = vrot.slane %v9999_v26, %v10698_v63  ;;  %v1820_v61 = vrot.slane %v9999_v26, %v10704_v41  ;;  %v1863_v0 = vmul.f32 %v10763_v6, %v1829_v54  ;;  %v1864_v1 = vmul.f32 %v1857_v27, %v1830_v3 }
 0xd96   :  { %v1865_v2 = vmul.f32 %v10766_v50, %v1831_v49  ;;  %v1866_v34 = vmul.f32 %v1858_v18, %v1832_v12  ;;  %v1799_v35 = vrot.slane %v9999_v26, %v10695_v39  ;;  %v1813_v36 = vrot.slane %v9999_v26, %v10701_v40  ;;  %v10868_v12 = vld [vmem:[#allocation5 + $0x18] sm:$0x3] }
 0xd97   :  { %v1834_v37 = vmul.f32 %v1806_v60, %v10716_v57  ;;  %v1836_v38 = vmul.f32 %v1820_v61, %v10720_v59  ;;  %v10857_v62 = vadd.f32 %v10771_v7, %v1863_v0  ;;  %v10859_v28 = vadd.f32 %v1891_v29, %v1864_v1  ;;  %v136_v26 = vld [vmem:[#allocation7 + $0x18] sm:$0x3]  ;;  %v10120_v59 = vld [vmem:[%s12064_s3] sm:$0x3]  ;;  %v10121_v0 = vld [vmem:[%s12064_s3 + $0x2] sm:$0x3] }
 0xd98   :  { %v10862_v42 = vadd.f32 %v10774_v8, %v1865_v2  ;;  %v10864_v54 = vadd.f32 %v1892_v5, %v1866_v34  ;;  %v1833_v3 = vmul.f32 %v1799_v35, %v10714_v56  ;;  %v1835_v49 = vmul.f32 %v1813_v36, %v10718_v58  ;;  %v10878_v56 = vld [vmem:[#allocation5 + $0x1a] sm:$0x3]  ;;  %v10123_v2 = vld [vmem:[%s12064_s3 + $0x6] sm:$0x3] }
 0xd99   :  { %v1868_v57 = vmul.f32 %v1857_v27, %v1834_v37  ;;  %v1870_v60 = vmul.f32 %v1858_v18, %v1836_v38  ;;  %v1905_v61 = vadd.f32 %v10120_v59, %v10857_v62  ;;  %v1906_v1 = vadd.f32 %v10121_v0, %v10859_v28  ;;  %v137_v58 = vld [vmem:[#allocation7 + $0x1a] sm:$0x3]  ;;  %v10122_v27 = vld [vmem:[%s12064_s3 + $0x4] sm:$0x3]  ;;  %v10890_v37 = vld [vmem:[#allocation5 + $0x1c] sm:$0x3] }
 0xd9a   :  { %v1907_v18 = vadd.f32 %v10122_v27, %v10862_v42  ;;  %v1908_v34 = vadd.f32 %v10123_v2, %v10864_v54  ;;  %v1867_v35 = vmul.f32 %v10763_v6, %v1833_v3  ;;  %v1869_v36 = vmul.f32 %v10766_v50, %v1835_v49  ;;  %v138_v38 = vld [vmem:[#allocation7 + $0x1c] sm:$0x3]  ;;  %v139_v27 = vld [vmem:[#allocation7 + $0x1e] sm:$0x3] }
 0xd9b   :  { %v10892_v59 = vadd.f32 %v1891_v29, %v1868_v57  ;;  %v10894_v0 = vadd.f32 %v1892_v5, %v1870_v60  ;;  %v1921_v22 = vcombine.low %v1905_v61, %v1906_v1  ;;  %v152_v41 = vadd.f32 %v136_v26, %v10868_v12  ;;  %v10124_v5 = vld [vmem:[%s12064_s3 + $0xa] sm:$0x3]  ;;  %v10125_v49 = vld [vmem:[%s12064_s3 + $0xe] sm:$0x3]  ;;  %v10127_v60 = vld [vmem:[%s12064_s3 + $0xc] sm:$0x3] }
 0xd9c   :  { %v1922_v40 = vcombine.low %v1907_v18, %v1908_v34  ;;  %v10900_v2 = vadd.f32 %v10771_v7, %v1867_v35  ;;  %v10903_v6 = vadd.f32 %v10774_v8, %v1869_v36  ;;  %v153_v50 = vadd.f32 %v137_v58, %v10878_v56 }
 0xd9d   :  { %v1929_v29 = vrot.slane %v1921_v22, %v10454_v20  ;;  %v1910_v3 = vadd.f32 %v10124_v5, %v10892_v59  ;;  %v1912_v7 = vadd.f32 %v10125_v49, %v10894_v0  ;;  %v154_v26 = vadd.f32 %v138_v38, %v10890_v37  ;;  %v10126_v22 = vld [vmem:[%s12064_s3 + $0x8] sm:$0x3] }
 0xd9e   :  { %v1936_v8 = vrot.slane %v1922_v40, %v10454_v20  ;;  %v1909_v57 = vadd.f32 %v10126_v22, %v10900_v2  ;;  %v1911_v61 = vadd.f32 %v10127_v60, %v10903_v6  ;;  %v155_v1 = vadd.f32 %v139_v27, %v10896_v21 }
 0xd9f   :  { %v12084_v58 = vcombine.low %v10779_v23, %v10782_v9  ;;  %v12085_v40 = vcombine.low %v10787_v15, %v10790_v17  ;;  %v2005_v35 = vcombine.low %v10831_v51, %v10840_v47  ;;  %v2006_v36 = vcombine.low %v10843_v48, %v10846_v14 }
 0xda0   :  { %v1937_v38 = vcombine.low %v1929_v29, %v1936_v8  ;;  %v1938_v5 = vcombine.low %v1909_v57, %v1910_v3  ;;  %v1939_v49 = vcombine.low %v1911_v61, %v1912_v7  ;;  %v12086_v27 = vcombine.low %v10793_v11, %v10796_v13  ;;  %v10970_v7 = vld [vmem:[#allocation10 + $0x2] ss:$0 sm:$0xff] }
 0xda1   :  { %v1979_v18 = vrot.slane %v12084_v58, %v10454_v20  ;;  %v1986_v34 = vrot.slane %v12085_v40, %v10454_v20  ;;  %v12087_v9 = vcombine.low %v10809_v30, %v10812_v31  ;;  %v2022_v48 = vcombine.low %v152_v41, %v153_v50 }
 0xda2   :  { %v1996_v23 = vrot.slane %v12086_v27, %v10454_v20  ;;  %8948 = vmatprep.mubr.msk.f32.mxu1 %vm462_vm0, %v1937_v38  ;;  %v1946_v17 = vrot.slane %v1938_v5, %v10454_v20  ;;  %v1953_v47 = vrot.slane %v1939_v49, %v10454_v20  ;;  %v2023_v51 = vcombine.low %v154_v26, %v155_v1 }
 0xda3   :  { %v2003_v15 = vrot.slane %v12087_v9, %v10454_v20  ;;  %v10949_v14 = vcombine.low %v1979_v18, %v1986_v34  ;;  %v2013_v29 = vrot.slane %v2005_v35, %v10454_v20  ;;  %v2020_v11 = vrot.slane %v2006_v36, %v10454_v20 }
 0xda4   :  { %v1954_v13 = vcombine.low %v1946_v17, %v1953_v47  ;;  %v2030_v30 = vrot.slane %v2022_v48, %v10454_v20  ;;  %v2037_v31 = vrot.slane %v2023_v51, %v10454_v20  ;;  %v2055_v5 = vcombine.low %v10752_v43, %v10754_v44 }
 0xda5   :  { %v10954_v3 = vcombine.low %v1996_v23, %v2003_v15  ;;  %v10960_v41 = vcombine.low %v2013_v29, %v2020_v11  ;;  %v2056_v49 = vcombine.low %v10756_v45, %v10758_v46  ;;  %v2072_v27 = vcombine.low %v10760_v55, %v10768_v24 }
 0xda6   :  { %8949 = vmatmul.mubr.msk.f32.vlgmr.msra.gmra.mrb[12].mxu1 %vm462_vm0, %v1954_v13  ;;  %v10964_v50 = vcombine.low %v2030_v30, %v2037_v31  ;;  %v2073_v23 = vcombine.low %v10776_v10, %v10784_v25  ;;  %v2089_v9 = vcombine.low %v10802_v19, %v10814_v32  ;;  %v2090_v15 = vcombine.low %v10816_v4, %v10818_v33 }
 0xda7   :  { %8951 = vmatprep.mubr.msk.f32.mxu1 %vm462_vm0, %v10949_v14  ;;  %v2106_v17 = vcombine.low %v10868_v12, %v10878_v56  ;;  %v2107_v43 = vcombine.low %v10890_v37, %v10896_v21  ;;  %v2063_v44 = vrot.slane %v2055_v5, %v10454_v20  ;;  %v2070_v45 = vrot.slane %v2056_v49, %v10454_v20 }
 0xda8   :  { %v2080_v46 = vrot.slane %v2072_v27, %v10454_v20  ;;  %v2087_v55 = vrot.slane %v2073_v23, %v10454_v20  ;;  %v2097_v24 = vrot.slane %v2089_v9, %v10454_v20  ;;  %v2104_v10 = vrot.slane %v2090_v15, %v10454_v20 }
 0xda9   :  { %v2114_v25 = vrot.slane %v2106_v17, %v10454_v20  ;;  %v2121_v19 = vrot.slane %v2107_v43, %v10454_v20  ;;  %v11024_v32 = vcombine.low %v2063_v44, %v2070_v45 }
 0xdaa   :  { %8952 = vmatmul.mubr.msk.f32.gmra.mrb[14].mxu1 %vm462_vm0, %v10954_v3  ;;  %v11026_v4 = vcombine.low %v2080_v46, %v2087_v55  ;;  %v11028_v21 = vcombine.low %v2097_v24, %v2104_v10 }
 0xdab   :  { %8954 = vmatprep.mubr.msk.f32.mxu1 %vm462_vm0, %v10960_v41  ;;  %v11034_v33 = vcombine.low %v2114_v25, %v2121_v19 }
 0xdae   :  { %8955 = vmatmul.mubr.msk.f32.gmra.mrb[16].mxu1 %vm462_vm0, %v10964_v50 }
 0xdaf   :  { %8957 = vmatprep.mubr.msk.f32.mxu1 %vm462_vm0, %v11024_v32 }
 0xdb2   :  { %8958 = vmatmul.mubr.msk.f32.gmra.mrb[18].mxu1 %vm462_vm0, %v11026_v4 }
 0xdb3   :  { %8960 = vmatprep.mubr.msk.f32.mxu1 %vm462_vm0, %v11028_v21 }
 0xdb6   :  { %8961 = vmatmul.mubr.msk.f32.gmra.mrb[20].mxu1 %vm462_vm0, %v11034_v33 }
 0xe79   :  { %v8950_v26 = vpop.f32.mrb[12].mxu1 }
 0xe7a   :  { %v2209_v8 = vpop.f32.mrb[13].mxu1  ;;  %v10996_v38 = vadd.f32 %v8950_v26, %v10970_v7 }
 0xe7b   :  { %v10973_v22 = vadd.f32 %v10970_v7, %v2209_v8 }
 0xe7d   :  { %v8953_v57 = vpop.f32.mrb[14].mxu1  ;;  %8971 = vmatprep.mubr.msk.f32.mxu0 %vm570_vm4, %v10973_v22 }
 0xe7e   :  { %v2265_v60 = vadd.f32 %v8953_v57, %v10970_v7  ;;  %v2219_v61 = vpop.f32.mrb[15].mxu1 }
 0xe7f   :  { %v2264_v1 = vadd.f32 %v10970_v7, %v2219_v61 }
 0xe81   :  { %v8956_v58 = vpop.f32.mrb[16].mxu1  ;;  %v10979_v18 = vpack.i.bf16 %v2265_v60, %v2264_v1 }
 0xe82   :  { %v2267_v40 = vadd.f32 %v8956_v58, %v10970_v7  ;;  %v2229_v34 = vpop.f32.mrb[17].mxu1 }
 0xe83   :  { %v2266_v35 = vadd.f32 %v10970_v7, %v2229_v34  ;;  %9765 = vrot.lane.b32.xlu1 %v10979_v18, %s10287_s29 }
 0xe85   :  { %v10985_v36 = vpack.i.bf16 %v2267_v40, %v2266_v35  ;;  %v8959_v40 = vpop.f32.mrb[18].mxu1 }
 0xe86   :  { %v2239_v34 = vpop.f32.mrb[19].mxu1  ;;  %v2269_v15 = vadd.f32 %v8959_v40, %v10970_v7 }
 0xe87   :  { %9775 = vrot.lane.b32.xlu1 %v10979_v18, %s10289_s7  ;;  %9770 = vrot.lane.b32.xlu0 %v10985_v36, %s10287_s29  ;;  %v2268_v17 = vadd.f32 %v10970_v7, %v2239_v34 }
 0xe89   :  { %v11070_v44 = vpack.i.bf16 %v2269_v15, %v2268_v17  ;;  %v8962_v25 = vpop.f32.mrb[20].mxu1 }
 0xe8a   :  { %v2271_v19 = vadd.f32 %v8962_v25, %v10970_v7 }
 0xe8b   :  { %9780 = vrot.lane.b32.xlu1 %v10985_v36, %s10289_s7  ;;  %2494 = vrot.lane.b32.xlu0 %v10973_v22, %s10290_s8 }
 0xe8f   :  { %2496 = vrot.lane.b32.xlu1 %v10996_v38, %s10290_s8 }
 0xef5   :  { %v9766_v12 = vpop.permute.xlu1 %9765 }
 0xef6   :  { %v9768_v56 = vunpack.i.h.bf16 %v9766_v12  ;;  %v9767_v37 = vunpack.i.l.bf16 %v9766_v12  ;;  %v2249_v12 = vpop.f32.mrb[21].mxu1 }
 0xef8   :  { %v9407_v47 = vpack.c.bf16 %v9768_v56, %v9767_v37  ;;  %v2270_v56 = vadd.f32 %v10970_v7, %v2249_v12 }
 0xef9   :  { %v9771_v48 = vpop.permute.xlu0 %9770  ;;  %v9776_v11 = vpop.permute.xlu1 %9775 }
 0xefa   :  { %v9773_v51 = vunpack.i.h.bf16 %v9771_v48  ;;  %v9772_v29 = vunpack.i.l.bf16 %v9771_v48  ;;  %9409 = vmatprep.subr.msk.bf16.mxu0 %vm10542_vm5, %v9407_v47  ;;  %v9778_v30 = vunpack.i.h.bf16 %v9776_v11  ;;  %v9777_v31 = vunpack.i.l.bf16 %v9776_v11 }
 0xefb   :  { %9412 = vmatpush3.bf16.xpose.msk.msra.mxu0 %vm10542_vm5, %v9407_v47  ;;  %v11084_v37 = vpack.i.bf16 %v2271_v19, %v2270_v56 }
 0xefc   :  { %v9413_v13 = vpack.c.bf16 %v9773_v51, %v9772_v29  ;;  %v9427_v26 = vpack.c.bf16 %v9778_v30, %v9777_v31 }
 0xefd   :  { %v9781_v8 = vpop.permute.xlu1 %9780  ;;  %v2495_v1 = vpop.permute.xlu0 %2494 }
 0xefe   :  { %9415 = vmatprep.subr.msk.bf16.mxu0 %vm10542_vm5, %v9413_v13  ;;  %v9783_v57 = vunpack.i.h.bf16 %v9781_v8  ;;  %v9782_v60 = vunpack.i.l.bf16 %v9781_v8 }
 0xf00   :  { %v9433_v61 = vpack.c.bf16 %v9783_v57, %v9782_v60 }
 0xf01   :  { %v2497_v58 = vpop.permute.xlu1 %2496 }
 0xf03   :  { %9418 = vmatpush3.bf16.xpose.msk.msra.mxu0 %vm10542_vm5, %v9413_v13 }
 0xf04   :  { %9429 = vmatprep.subr.msk.bf16.mxu0 %vm10542_vm5, %v9427_v26 }
 0xf0a   :  { %8972 = vmatmul.mubr.msk.f32.vlgmr.msra.gmra.mrb[14].mxu0 %vm570_vm4, %v10996_v38 }
 0xf0b   :  { %9432 = vmatpush3.bf16.xpose.msk.msra.mxu0 %vm10542_vm5, %v9427_v26  ;;  %8993 = vmatprep.mubr.msk.f32.mxu0 %vm570_vm4, %v2495_v1 }
 0xf0c   :  { %9435 = vmatprep.subr.msk.bf16.mxu0 %vm10542_vm5, %v9433_v61 }
 0xf13   :  { %9438 = vmatpush3.bf16.xpose.msk.msra.mxu0 %vm10542_vm5, %v9433_v61 }
 0xf1a   :  { %8994 = vmatmul.mubr.msk.f32.vlgmr.msra.gmra.mrb[16].mxu0 %vm570_vm4, %v2497_v58 }
 0xfdd   :  { %v8973_v35 = vpop.f32.mrb[14].mxu0 }
 0xfde   :  { %v2374_v5 = vsel %vm329_vm10, %v8973_v35, -1e+30  ;;  %v2364_v49 = vpop.f32.mrb[15].mxu0 }
 0xfdf   :  { %v2373_v27 = vsel %vm328_vm11, %v2364_v49, -1e+30  ;;  %v2378_v23 = vsel %vm462_vm0, %v2374_v5, -inf }
 0xfe0   :  { %2379 = vmax.xlane.f32.xlu1 %v2378_v23  ;;  %v2375_v9 = vsel %vm462_vm0, %v2373_v27, -inf }
 0xfe1   :  { %2376 = vmax.xlane.f32.xlu0 %v2375_v9 }
 0xfed   :  { %v8995_v43 = vpop.f32.mrb[16].mxu0 }
 0xfee   :  { %v2584_v45 = vpop.f32.mrb[17].mxu0  ;;  %v2594_v24 = vsel %vm329_vm10, %v8995_v43, -1e+30 }
 0xfef   :  { %v2593_v46 = vsel %vm328_vm11, %v2584_v45, -1e+30  ;;  %v2598_v10 = vsel %vm462_vm0, %v2594_v24, -inf }
 0xff0   :  { %v2595_v55 = vsel %vm462_vm0, %v2593_v46, -inf }
 0xff1   :  { %2596 = vmax.xlane.f32.xlu0 %v2595_v55  ;;  %9785 = vrot.lane.b32.xlu1 %v11070_v44, %s10288_s30 }
 0xff5   :  { %2599 = vmax.xlane.f32.xlu0 %v2598_v10  ;;  %9795 = vrot.lane.b32.xlu1 %v11070_v44, %s10291_s11 }
0x106d   :  { %v2380_v47 = vpop.xlane.xlu1 %2379 }
0x106e   :  { %v2382_v48 = vsub.f32 %v2374_v5, %v2380_v47  ;;  %v2377_v51 = vpop.xlane.xlu0 %2376 }
0x106f   :  { %v2381_v29 = vsub.f32 %v2373_v27, %v2377_v51 }
0x1070   :  { %v2385_v11 = vmul.f32 1.442695, %v2382_v48 }
0x1071   :  { %v2383_v13 = vmul.f32 1.442695, %v2381_v29  ;;  %v9786_v30 = vpop.permute.xlu1 %9785 }
0x1072   :  { %10000 = vpow2.f32 %v2385_v11  ;;  %v9788_v31 = vunpack.i.h.bf16 %v9786_v30  ;;  %v9787_v26 = vunpack.i.l.bf16 %v9786_v30 }
0x1073   :  { %10002 = vpow2.f32 %v2383_v13 }
0x1074   :  { %v9419_v8 = vpack.c.bf16 %v9788_v31, %v9787_v26 }
0x1075   :  { %v9796_v15 = vpop.permute.xlu1 %9795 }
0x1076   :  { %9420 = vmatprep.subr.bf16.mxu1 %v9419_v8  ;;  %v9797_v55 = vunpack.i.l.bf16 %v9796_v15 }
0x1077   :  { %9422 = vmatpush3.bf16.msra.mxu1 %v9419_v8 }
0x107c   :  { %v10001_v57 = vpop.eup %10000 }
0x107d   :  { %v10003_v60 = vpop.eup %10002  ;;  %v2390_v7 = vsel %vm462_vm0, %v10001_v57, 0.0 }
0x107e   :  { %2391 = vadd.xlane.f32.xlu0 %v2390_v7  ;;  %v2387_v61 = vsel %vm462_vm0, %v10003_v60, 0.0  ;;  %v2597_v1 = vpop.xlane.xlu0 %2596 }
0x107f   :  { %2388 = vadd.xlane.f32.xlu1 %v2387_v61  ;;  %v2601_v34 = vsub.f32 %v2593_v46, %v2597_v1  ;;  %v9798_v46 = vunpack.i.h.bf16 %v9796_v15 }
0x1081   :  { %v2603_v5 = vmul.f32 1.442695, %v2601_v34  ;;  %v9439_v12 = vpack.c.bf16 %v9798_v46, %v9797_v55 }
0x1082   :  { %v2600_v58 = vpop.xlane.xlu0 %2599 }
0x1083   :  { %v2602_v40 = vsub.f32 %v2594_v24, %v2600_v58 }
0x1085   :  { %v2605_v35 = vmul.f32 1.442695, %v2602_v40 }
0x1087   :  { %10004 = vpow2.f32 %v2605_v35 }
0x1088   :  { %10006 = vpow2.f32 %v2603_v5 }
0x1090   :  { %9800 = vrot.lane.b32.xlu1 %v11084_v37, %s10291_s11 }
0x1091   :  { %v10005_v49 = vpop.eup %10004 }
0x1092   :  { %v10007_v27 = vpop.eup %10006  ;;  %v2610_v23 = vsel %vm462_vm0, %v10005_v49, 0.0 }
0x1093   :  { %v2607_v9 = vsel %vm462_vm0, %v10007_v27, 0.0 }
0x1094   :  { %9790 = vrot.lane.b32.xlu0 %v11084_v37, %s10288_s30 }
0x10b3   :  { %2611 = vadd.xlane.f32.xlu0 %v2610_v23 }
0x10b4   :  { %2608 = vadd.xlane.f32.xlu1 %v2607_v9 }
0x10c5   :  { %9810 = vrot.lane.b32.xlu1 %v10985_v36, %s10292_s12 }
0x10c9   :  { %2712 = vrot.lane.b32.xlu1 %v10996_v38, %s10293_s13  ;;  %9805 = vrot.lane.b32.xlu0 %v10979_v18, %s10292_s12 }
0x10cd   :  { %2710 = vrot.lane.b32.xlu0 %v10973_v22, %s10293_s13 }
0x110b   :  { %v2392_v17 = vpop.xlane.xlu0 %2391 }
0x110c   :  { %10008 = vrcp.f32 %v2392_v17  ;;  %v2389_v43 = vpop.xlane.xlu1 %2388 }
0x110d   :  { %10010 = vrcp.f32 %v2389_v43 }
0x110f   :  { %v9791_v45 = vpop.permute.xlu0 %9790 }
0x1110   :  { %v9793_v24 = vunpack.i.h.bf16 %v9791_v45  ;;  %v9792_v10 = vunpack.i.l.bf16 %v9791_v45  ;;  %v9801_v19 = vpop.permute.xlu1 %9800 }
0x1111   :  { %v9803_v48 = vunpack.i.h.bf16 %v9801_v19  ;;  %v9802_v51 = vunpack.i.l.bf16 %v9801_v19 }
0x1112   :  { %v9423_v25 = vpack.c.bf16 %v9793_v24, %v9792_v10 }
0x1113   :  { %v9443_v13 = vpack.c.bf16 %v9803_v48, %v9802_v51 }
0x1114   :  { %9424 = vmatprep.subr.bf16.mxu1 %v9423_v25 }
0x1115   :  { %9426 = vmatpush3.bf16.msra.mxu1 %v9423_v25 }
0x1116   :  { %v10009_v56 = vpop.eup %10008  ;;  %9440 = vmatprep.subr.bf16.mxu1 %v9439_v12 }
0x1117   :  { %v10011_v47 = vpop.eup %10010  ;;  %v2396_v11 = vmul.f32 %v10009_v56, %v10001_v57 }
0x1118   :  { %v2395_v29 = vmul.f32 %v10011_v47, %v10003_v60 }
0x111a   :  { %8982 = vmatprep.mubr.msk.f32.mxu1 %vm462_vm0, %v2395_v29 }
0x111b   :  { %8983 = vmatmul.mubr.msk.f32.vlgmr.msra.gmra.mrb[22].mxu1 %vm462_vm0, %v2396_v11 }
0x111c   :  { %9442 = vmatpush3.bf16.msra.mxu1 %v9439_v12 }
0x111d   :  { %9444 = vmatprep.subr.bf16.mxu1 %v9443_v13 }
0x1120   :  { %9446 = vmatpush3.bf16.msra.mxu1 %v9443_v13 }
0x1140   :  { %v2612_v30 = vpop.xlane.xlu0 %2611 }
0x1141   :  { %10012 = vrcp.f32 %v2612_v30  ;;  %v2609_v31 = vpop.xlane.xlu1 %2608 }
0x1142   :  { %10014 = vrcp.f32 %v2609_v31 }
0x1144   :  { %v9806_v26 = vpop.permute.xlu0 %9805 }
0x1145   :  { %v9808_v8 = vunpack.i.h.bf16 %v9806_v26  ;;  %v9807_v7 = vunpack.i.l.bf16 %v9806_v26  ;;  %v9811_v1 = vpop.permute.xlu1 %9810 }
0x1146   :  { %v9813_v58 = vunpack.i.h.bf16 %v9811_v1  ;;  %v9812_v40 = vunpack.i.l.bf16 %v9811_v1 }
0x1147   :  { %v9447_v61 = vpack.c.bf16 %v9808_v8, %v9807_v7 }
0x1148   :  { %v9453_v5 = vpack.c.bf16 %v9813_v58, %v9812_v40  ;;  %v2711_v23 = vpop.permute.xlu0 %2710 }
0x1149   :  { %9449 = vmatprep.subr.msk.bf16.mxu1 %vm10542_vm5, %v9447_v61  ;;  %v2713_v9 = vpop.permute.xlu1 %2712 }
0x114b   :  { %v10013_v57 = vpop.eup %10012 }
0x114c   :  { %v10015_v60 = vpop.eup %10014  ;;  %v2616_v35 = vmul.f32 %v10013_v57, %v10005_v49 }
0x114d   :  { %v2615_v34 = vmul.f32 %v10015_v60, %v10007_v27 }
0x114f   :  { %9004 = vmatprep.mubr.msk.f32.mxu1 %vm462_vm0, %v2615_v34 }
0x1150   :  { %9005 = vmatmul.mubr.msk.f32.vlgmr.msra.gmra.mrb[24].mxu1 %vm462_vm0, %v2616_v35 }
0x1151   :  { %9452 = vmatpush3.bf16.xpose.msk.msra.mxu1 %vm10542_vm5, %v9447_v61  ;;  %9015 = vmatprep.mubr.msk.f32.mxu1 %vm570_vm4, %v2711_v23 }
0x1152   :  { %9455 = vmatprep.subr.msk.bf16.mxu1 %vm10542_vm5, %v9453_v5 }
0x1159   :  { %9458 = vmatpush3.bf16.xpose.msk.msra.mxu1 %vm10542_vm5, %v9453_v5 }
0x1160   :  { %9016 = vmatmul.mubr.msk.f32.vlgmr.msra.gmra.mrb[26].mxu1 %vm570_vm4, %v2713_v9 }
0x11ee   :  { %v11116_v49 = vpop.f32.mrb[22].mxu1 }
0x11ef   :  { %v11118_v27 = vpop.f32.mrb[23].mxu1 }
0x1223   :  { %v11120_v15 = vpop.f32.mrb[24].mxu1 }
0x1224   :  { %v11122_v17 = vpop.f32.mrb[25].mxu1 }
0x1233   :  { %v9017_v43 = vpop.f32.mrb[26].mxu1 }
0x1234   :  { %v2810_v45 = vsel %vm329_vm10, %v9017_v43, -1e+30  ;;  %v2800_v46 = vpop.f32.mrb[27].mxu1 }
0x1235   :  { %v2809_v55 = vsel %vm328_vm11, %v2800_v46, -1e+30  ;;  %v2814_v24 = vsel %vm462_vm0, %v2810_v45, -inf }
0x1236   :  { %2815 = vmax.xlane.f32.xlu1 %v2814_v24  ;;  %v2811_v10 = vsel %vm462_vm0, %v2809_v55, -inf }
0x1237   :  { %2812 = vmax.xlane.f32.xlu0 %v2811_v10 }
0x1247   :  { %9815 = vrot.lane.b32.xlu1 %v11070_v44, %s10296_s28 }
0x124b   :  { %9825 = vrot.lane.b32.xlu1 %v10979_v18, %s10294_s4 }
0x124f   :  { %9830 = vrot.lane.b32.xlu1 %v10985_v36, %s10294_s4 }
0x1253   :  { %2928 = vrot.lane.b32.xlu1 %v10996_v38, %s10295_s2 }
0x12c3   :  { %v2816_v25 = vpop.xlane.xlu1 %2815 }
0x12c4   :  { %v2818_v19 = vsub.f32 %v2810_v45, %v2816_v25  ;;  %v2813_v12 = vpop.xlane.xlu0 %2812 }
0x12c5   :  { %v2817_v56 = vsub.f32 %v2809_v55, %v2813_v12 }
0x12c6   :  { %v2821_v47 = vmul.f32 1.442695, %v2818_v19 }
0x12c7   :  { %v2819_v48 = vmul.f32 1.442695, %v2817_v56  ;;  %v9816_v51 = vpop.permute.xlu1 %9815 }
0x12c8   :  { %10016 = vpow2.f32 %v2821_v47  ;;  %v9818_v29 = vunpack.i.h.bf16 %v9816_v51  ;;  %v9817_v11 = vunpack.i.l.bf16 %v9816_v51 }
0x12c9   :  { %10018 = vpow2.f32 %v2819_v48 }
0x12ca   :  { %v9459_v13 = vpack.c.bf16 %v9818_v29, %v9817_v11 }
0x12cb   :  { %v9826_v8 = vpop.permute.xlu1 %9825 }
0x12cc   :  { %9460 = vmatprep.subr.bf16.mxu0 %v9459_v13  ;;  %v9828_v61 = vunpack.i.h.bf16 %v9826_v8  ;;  %v9827_v1 = vunpack.i.l.bf16 %v9826_v8 }
0x12cd   :  { %9462 = vmatpush3.bf16.msra.mxu0 %v9459_v13 }
0x12ce   :  { %v9467_v40 = vpack.c.bf16 %v9828_v61, %v9827_v1 }
0x12cf   :  { %v9831_v5 = vpop.permute.xlu1 %9830 }
0x12d0   :  { %v9833_v9 = vunpack.i.h.bf16 %v9831_v5  ;;  %v9832_v43 = vunpack.i.l.bf16 %v9831_v5 }
0x12d2   :  { %v10017_v18 = vpop.eup %10016  ;;  %v9473_v46 = vpack.c.bf16 %v9833_v9, %v9832_v43  ;;  %v345_v43 = vld [vmem:[#allocation8 + $0x78] sm:$0xff] }
0x12d3   :  { %v2826_v36 = vsel %vm462_vm0, %v10017_v18, 0.0  ;;  %v10019_v30 = vpop.eup %10018  ;;  %v2929_v55 = vpop.permute.xlu1 %2928 }
0x12d4   :  { %2827 = vadd.xlane.f32.xlu0 %v2826_v36  ;;  %v2823_v38 = vsel %vm462_vm0, %v10019_v30, 0.0 }
0x12d8   :  { %2824 = vadd.xlane.f32.xlu0 %v2823_v38 }
0x12ee   :  { %9820 = vrot.lane.b32.xlu0 %v11084_v37, %s10296_s28 }
0x12f2   :  { %2926 = vrot.lane.b32.xlu0 %v10973_v22, %s10295_s2 }
0x1361   :  { %v2828_v31 = vpop.xlane.xlu0 %2827 }
0x1362   :  { %10020 = vrcp.f32 %v2828_v31 }
0x1365   :  { %v2825_v26 = vpop.xlane.xlu0 %2824 }
0x1366   :  { %10022 = vrcp.f32 %v2825_v26 }
0x1369   :  { %v9821_v7 = vpop.permute.xlu0 %9820 }
0x136a   :  { %v9823_v57 = vunpack.i.h.bf16 %v9821_v7  ;;  %v9822_v60 = vunpack.i.l.bf16 %v9821_v7 }
0x136c   :  { %v9463_v58 = vpack.c.bf16 %v9823_v57, %v9822_v60  ;;  %v10021_v34 = vpop.eup %10020 }
0x136d   :  { %v2832_v23 = vmul.f32 %v10021_v34, %v10017_v18  ;;  %v2927_v45 = vpop.permute.xlu0 %2926 }
0x136e   :  { %9464 = vmatprep.subr.bf16.mxu0 %v9463_v58 }
0x136f   :  { %9466 = vmatpush3.bf16.msra.mxu0 %v9463_v58 }
0x1370   :  { %v10023_v35 = vpop.eup %10022  ;;  %9469 = vmatprep.subr.msk.bf16.mxu0 %vm10542_vm5, %v9467_v40 }
0x1371   :  { %v2831_v22 = vmul.f32 %v10023_v35, %v10019_v30 }
0x1373   :  { %9026 = vmatprep.mubr.msk.f32.mxu0 %vm462_vm0, %v2831_v22  ;;  %v343_v22 = vld [vmem:[#allocation8 + $0x68] sm:$0xff] }
0x1374   :  { %9027 = vmatmul.mubr.msk.f32.vlgmr.msra.gmra.mrb[18].mxu0 %vm462_vm0, %v2832_v23  ;;  %v344_v23 = vld [vmem:[#allocation8 + $0x70] sm:$0xff] }
0x1375   :  { %9037 = vmatprep.mubr.msk.f32.mxu0 %vm570_vm4, %v2927_v45  ;;  %v9491_v45 = vpack.c.bf16 %v345_v43, %v344_v23 }
0x1378   :  { %9472 = vmatpush3.bf16.xpose.msk.msra.mxu0 %vm10542_vm5, %v9467_v40 }
0x1379   :  { %9475 = vmatprep.subr.msk.bf16.mxu0 %vm10542_vm5, %v9473_v46 }
0x1380   :  { %9478 = vmatpush3.bf16.xpose.msk.msra.mxu0 %vm10542_vm5, %v9473_v46 }
0x1387   :  { %9038 = vmatmul.mubr.msk.f32.vlgmr.msra.gmra.mrb[20].mxu0 %vm570_vm4, %v2929_v55 }
0x1447   :  { %v9028_v24 = vpop.f32.mrb[18].mxu0 }
0x1448   :  { %v2917_v10 = vpop.f32.mrb[19].mxu0 }
0x145a   :  { %v9039_v25 = vpop.f32.mrb[20].mxu0 }
0x145b   :  { %v3026_v19 = vsel %vm329_vm10, %v9039_v25, -1e+30  ;;  %v3016_v12 = vpop.f32.mrb[21].mxu0 }
0x145c   :  { %v3025_v56 = vsel %vm328_vm11, %v3016_v12, -1e+30  ;;  %v3030_v47 = vsel %vm462_vm0, %v3026_v19, -inf }
0x145d   :  { %3031 = vmax.xlane.f32.xlu1 %v3030_v47  ;;  %v3027_v48 = vsel %vm462_vm0, %v3025_v56, -inf }
0x145e   :  { %3028 = vmax.xlane.f32.xlu0 %v3027_v48 }
0x146e   :  { %9835 = vrot.lane.b32.xlu1 %v11070_v44, %s10297_s5 }
0x1472   :  { %3144 = vrot.lane.b32.xlu1 %v11122_v17, %s10281_s21 }
0x1476   :  { %3146 = vrot.lane.b32.xlu1 %v11120_v15, %s10281_s21 }
0x147a   :  { %3154 = vrot.lane.b32.xlu1 %v9028_v24, %s10298_s1 }
0x14ea   :  { %v3032_v51 = vpop.xlane.xlu1 %3031 }
0x14eb   :  { %v3034_v29 = vsub.f32 %v3026_v19, %v3032_v51  ;;  %v3029_v11 = vpop.xlane.xlu0 %3028 }
0x14ec   :  { %v3033_v13 = vsub.f32 %v3025_v56, %v3029_v11 }
0x14ed   :  { %v3037_v18 = vmul.f32 1.442695, %v3034_v29 }
0x14ee   :  { %v3035_v36 = vmul.f32 1.442695, %v3033_v13  ;;  %v9836_v30 = vpop.permute.xlu1 %9835 }
0x14ef   :  { %10024 = vpow2.f32 %v3037_v18  ;;  %v9838_v38 = vunpack.i.h.bf16 %v9836_v30  ;;  %v9837_v31 = vunpack.i.l.bf16 %v9836_v30  ;;  %v8468_v18 = vld [vmem:[#allocation10 + $0x3] ss:$0 sm:$0xff] }
0x14f0   :  { %10026 = vpow2.f32 %v3035_v36  ;;  %v3310_v36 = vcombine.high %v8468_v18, %v8468_v18 }
0x14f1   :  { %v9479_v44 = vpack.c.bf16 %v9838_v38, %v9837_v31 }
0x14f2   :  { %v3145_v24 = vpop.permute.xlu1 %3144  ;;  %v3324_v31 = vrot.slane %v3310_v36, %v10454_v20 }
0x14f3   :  { %9480 = vmatprep.subr.bf16.mxu1 %v9479_v44  ;;  %v3166_v12 = vsel %vm570_vm4, %v11118_v27, %v3145_v24  ;;  %v3317_v27 = vrot.slane %v8468_v18, %v10454_v20 }
0x14f4   :  { %9482 = vmatpush3.bf16.msra.mxu1 %v9479_v44 }
0x14f9   :  { %v10025_v17 = vpop.eup %10024 }
0x14fa   :  { %v3042_v26 = vsel %vm462_vm0, %v10025_v17, 0.0  ;;  %v10027_v15 = vpop.eup %10026 }
0x14fb   :  { %3043 = vadd.xlane.f32.xlu0 %v3042_v26  ;;  %v3039_v8 = vsel %vm462_vm0, %v10027_v15, 0.0 }
0x14ff   :  { %3040 = vadd.xlane.f32.xlu0 %v3039_v8 }
0x1515   :  { %9840 = vrot.lane.b32.xlu0 %v11084_v37, %s10297_s5  ;;  %v342_v37 = vld [vmem:[#allocation8 + $0x60] sm:$0xff] }
0x1516   :  { %v9487_v9 = vpack.c.bf16 %v343_v22, %v342_v37 }
0x1519   :  { %3152 = vrot.lane.b32.xlu0 %v2917_v10, %s10298_s1  ;;  %v3147_v10 = vpop.permute.xlu1 %3146 }
0x151a   :  { %v3167_v47 = vsel %vm570_vm4, %v11116_v49, %v3147_v10 }
0x151d   :  { %v3155_v25 = vpop.permute.xlu1 %3154 }
0x151e   :  { %v3169_v29 = vsel %vm656_vm8, %v3167_v47, %v3155_v25 }
0x1588   :  { %v3044_v7 = vpop.xlane.xlu0 %3043 }
0x1589   :  { %10028 = vrcp.f32 %v3044_v7 }
0x158c   :  { %v3041_v61 = vpop.xlane.xlu0 %3040 }
0x158d   :  { %10030 = vrcp.f32 %v3041_v61  ;;  %v3325_v61 = vcombine.high %v3317_v27, %v3317_v27 }
0x1590   :  { %v9841_v1 = vpop.permute.xlu0 %9840 }
0x1591   :  { %v9843_v57 = vunpack.i.h.bf16 %v9841_v1  ;;  %v9842_v60 = vunpack.i.l.bf16 %v9841_v1 }
0x1593   :  { %v9483_v58 = vpack.c.bf16 %v9843_v57, %v9842_v60  ;;  %v10029_v40 = vpop.eup %10028 }
0x1594   :  { %v3048_v5 = vmul.f32 %v10029_v40, %v10025_v17  ;;  %v3153_v19 = vpop.permute.xlu0 %3152 }
0x1595   :  { %9484 = vmatprep.subr.bf16.mxu1 %v9483_v58  ;;  %v3168_v48 = vsel %vm656_vm8, %v3166_v12, %v3153_v19 }
0x1596   :  { %9486 = vmatpush3.bf16.msra.mxu1 %v9483_v58 }
0x1597   :  { %v10031_v34 = vpop.eup %10030  ;;  %9488 = vmatprep.subr.bf16.mxu1 %v9487_v9 }
0x1598   :  { %v3047_v35 = vmul.f32 %v10031_v34, %v10027_v15 }
0x159a   :  { %9048 = vmatprep.mubr.msk.f32.mxu1 %vm462_vm0, %v3047_v35  ;;  %v3326_v35 = vcombine.high %v3324_v31, %v3324_v31 }
0x159b   :  { %9049 = vmatmul.mubr.msk.f32.vlgmr.msra.gmra.mrb[28].mxu1 %vm462_vm0, %v3048_v5 }
0x159c   :  { %9490 = vmatpush3.bf16.msra.mxu1 %v9487_v9 }
0x159d   :  { %9492 = vmatprep.subr.bf16.mxu1 %v9491_v45 }
0x15a0   :  { %9494 = vmatpush3.bf16.msra.mxu1 %v9491_v45 }
0x166e   :  { %v9050_v46 = vpop.f32.mrb[28].mxu1 }
0x166f   :  { %3162 = vrot.lane.b32.xlu1 %v9050_v46, %s10299_s24  ;;  %v3133_v55 = vpop.f32.mrb[29].mxu1 }
0x1670   :  { %3160 = vrot.lane.b32.xlu0 %v3133_v55, %s10299_s24 }
0x16e1   :  { %v3163_v56 = vpop.permute.xlu1 %3162 }
0x16e2   :  { %v3161_v51 = vpop.permute.xlu0 %3160  ;;  %v3171_v13 = vsel %vm1402_vm9, %v3169_v29, %v3163_v56 }
0x16e3   :  { %v3170_v11 = vsel %vm1402_vm9, %v3168_v48, %v3161_v51 }
0x16e4   :  { %9059 = vmatprep.mubr.msk.f32.mxu1 %vm462_vm0, %v3170_v11 }
0x16e5   :  { %9060 = vmatmul.mubr.msk.f32.vlgmr.msra.gmra.mrb[30].mxu1 %vm462_vm0, %v3171_v13 }
0x17b8   :  { %v9061_v30 = vpop.f32.mrb[30].mxu1 }
0x17b9   :  { %v3272_v38 = vcombine.high %v9061_v30, %v9061_v30  ;;  %v3279_v49 = vrot.slane %v9061_v30, %v10454_v20  ;;  %v3244_v44 = vpop.f32.mrb[31].mxu1 }
0x17ba   :  { %v3255_v17 = vcombine.high %v3244_v44, %v3244_v44  ;;  %v3262_v26 = vrot.slane %v3244_v44, %v10454_v20 }
0x17bb   :  { %v3286_v15 = vrot.slane %v3272_v38, %v10454_v20  ;;  %v3287_v8 = vcombine.high %v3279_v49, %v3279_v49  ;;  %v3301_v7 = vadd.f32 %v3279_v49, %v10900_v2  ;;  %v12089_v38 = vld [vmem:[#allocation19_spill] sm:$0xff] }
0x17bc   :  { %v3269_v1 = vrot.slane %v3255_v17, %v10454_v20  ;;  %v3270_v57 = vcombine.high %v3262_v26, %v3262_v26  ;;  %v3297_v60 = vadd.f32 %v3262_v26, %v10857_v62 }
0x17bd   :  { %v3288_v58 = vcombine.high %v3286_v15, %v3286_v15  ;;  %v3302_v40 = vadd.f32 %v3287_v8, %v10892_v59  ;;  %v3303_v34 = vadd.f32 %v3286_v15, %v10903_v6  ;;  %v3335_v2 = vadd.f32 %v3317_v27, %v3301_v7 }
0x17be   :  { %v3271_v5 = vcombine.high %v3269_v1, %v3269_v1  ;;  %v3298_v37 = vadd.f32 %v3270_v57, %v10859_v28  ;;  %v3299_v22 = vadd.f32 %v3269_v1, %v10862_v42  ;;  %v3331_v45 = vadd.f32 %v3317_v27, %v3297_v60  ;;  %v12088_v27 = vld [vmem:[#allocation18_spill] sm:$0xff] }
0x17bf   :  { %v3304_v23 = vadd.f32 %v3288_v58, %v10894_v0  ;;  %v3336_v9 = vadd.f32 %v3325_v61, %v3302_v40  ;;  %v3337_v62 = vadd.f32 %v3324_v31, %v3303_v34 }
0x17c0   :  { %v3300_v43 = vadd.f32 %v3271_v5, %v10864_v54  ;;  %v3332_v46 = vadd.f32 %v3325_v61, %v3298_v37  ;;  %v3333_v59 = vadd.f32 %v3324_v31, %v3299_v22 }
0x17c1   :  { %v3338_v55 = vadd.f32 %v3326_v35, %v3304_v23  ;;  %v3364_v24 = vcombine.low %v3335_v2, %v3336_v9 }
0x17c2   :  { %v3334_v10 = vadd.f32 %v3326_v35, %v3300_v43  ;;  %v3347_v6 = vcombine.low %v3331_v45, %v3332_v46 }
0x17c3   :  { %v3365_v25 = vcombine.low %v3337_v62, %v3338_v55  ;;  %v3372_v28 = vrot.slane %v3364_v24, %v10454_v20 }
0x17c4   :  { %v3348_v19 = vcombine.low %v3333_v59, %v3334_v10  ;;  %v3355_v0 = vrot.slane %v3347_v6, %v10454_v20 }
0x17c5   :  { %v3379_v42 = vrot.slane %v3365_v25, %v10454_v20 }
0x17c6   :  { %v3362_v12 = vrot.slane %v3348_v19, %v10454_v20 }
0x17c7   :  { %v3380_v56 = vcombine.low %v3372_v28, %v3379_v42  ;;  %v346_v28 = vld [vmem:[#allocation8 + $0x80] sm:$0xff]  ;;  %v347_v42 = vld [vmem:[#allocation8 + $0x88] sm:$0xff] }
0x17c8   :  { %v3363_v54 = vcombine.low %v3355_v0, %v3362_v12  ;;  %v348_v0 = vld [vmem:[#allocation8 + $0x90] sm:$0xff]  ;;  %v9495_v12 = vpack.c.bf16 %v347_v42, %v346_v28 }
0x17c9   :  { %v3386_v47 = vsel %vm462_vm0, %v3380_v56, 0.0  ;;  %v349_v56 = vld [vmem:[#allocation8 + $0x98] sm:$0xff] }
0x17ca   :  { %3387 = vadd.xlane.f32.xlu1 %v3386_v47  ;;  %v3383_v48 = vsel %vm462_vm0, %v3363_v54, 0.0  ;;  %v9499_v54 = vpack.c.bf16 %v349_v56, %v348_v0  ;;  %9496 = vmatprep.subr.bf16.mxu0 %v9495_v12  ;;  %v350_v47 = vld [vmem:[#allocation8 + $0xa0] sm:$0xff] }
0x17cb   :  { %3384 = vadd.xlane.f32.xlu0 %v3383_v48  ;;  %9498 = vmatpush3.bf16.msra.mxu0 %v9495_v12  ;;  %v351_v48 = vld [vmem:[#allocation8 + $0xa8] sm:$0xff] }
0x17cc   :  { %9500 = vmatprep.subr.bf16.mxu0 %v9499_v54 }
0x17cf   :  { %9502 = vmatpush3.bf16.msra.mxu0 %v9499_v54 }
0x1857   :  { %v3388_v51 = vpop.xlane.xlu1 %3387 }
0x1858   :  { %v3390_v29 = vmul.f32 0.03125, %v3388_v51  ;;  %v3385_v11 = vpop.xlane.xlu0 %3384  ;;  %v352_v51 = vld [vmem:[#allocation8 + $0xb0] sm:$0xff] }
0x1859   :  { %v3389_v13 = vmul.f32 0.03125, %v3385_v11  ;;  %v353_v11 = vld [vmem:[#allocation8 + $0xb8] sm:$0xff] }
0x185a   :  { %v3427_v18 = vrot.slane %v3390_v29, %v10695_v39  ;;  %v3434_v36 = vrot.slane %v3390_v29, %v10698_v63  ;;  %v3441_v30 = vrot.slane %v3390_v29, %v12088_v27  ;;  %v3448_v49 = vrot.slane %v3390_v29, %v12089_v38 }
0x185b   :  { %v3399_v31 = vrot.slane %v3389_v13, %v10695_v39  ;;  %v3406_v44 = vrot.slane %v3389_v13, %v10698_v63  ;;  %v3413_v17 = vrot.slane %v3389_v13, %v12088_v27  ;;  %v3420_v26 = vrot.slane %v3389_v13, %v12089_v38 }
0x185c   :  { %v11216_v15 = vsub.f32 %v3335_v2, %v3427_v18  ;;  %v11218_v8 = vsub.f32 %v3336_v9, %v3434_v36  ;;  %v11220_v7 = vsub.f32 %v3337_v62, %v3441_v30  ;;  %v11222_v61 = vsub.f32 %v3338_v55, %v3448_v49  ;;  %v354_v18 = vld [vmem:[#allocation8 + $0xc0] sm:$0xff]  ;;  %v355_v36 = vld [vmem:[#allocation8 + $0xc8] sm:$0xff] }
0x185d   :  { %v11224_v1 = vsub.f32 %v3331_v45, %v3399_v31  ;;  %v11226_v57 = vsub.f32 %v3332_v46, %v3406_v44  ;;  %v11228_v60 = vsub.f32 %v3333_v59, %v3413_v17  ;;  %v11230_v58 = vsub.f32 %v3334_v10, %v3420_v26 }
0x185e   :  { %v3469_v40 = vmul.f32 %v11216_v15, %v11216_v15  ;;  %v3470_v34 = vmul.f32 %v11218_v8, %v11218_v8  ;;  %v3471_v35 = vmul.f32 %v11220_v7, %v11220_v7  ;;  %v3472_v5 = vmul.f32 %v11222_v61, %v11222_v61 }
0x185f   :  { %v3465_v37 = vmul.f32 %v11224_v1, %v11224_v1  ;;  %v3466_v22 = vmul.f32 %v11226_v57, %v11226_v57  ;;  %v3467_v23 = vmul.f32 %v11228_v60, %v11228_v60  ;;  %v3468_v2 = vmul.f32 %v11230_v58, %v11230_v58 }
0x1860   :  { %v3498_v9 = vcombine.low %v3469_v40, %v3470_v34  ;;  %v3499_v43 = vcombine.low %v3471_v35, %v3472_v5  ;;  %v9503_v29 = vpack.c.bf16 %v351_v48, %v350_v47  ;;  %v9507_v13 = vpack.c.bf16 %v353_v11, %v352_v51  ;;  %v8469_v40 = vld [vmem:[#allocation10 + $0x8] ss:$0 sm:$0xff]  ;;  %v8470_v35 = vld [vmem:[#allocation10 + $0x9] ss:$0 sm:$0xff] }
0x1861   :  { %v3481_v45 = vcombine.low %v3465_v37, %v3466_v22  ;;  %v3482_v46 = vcombine.low %v3467_v23, %v3468_v2  ;;  %v9511_v30 = vpack.c.bf16 %v355_v36, %v354_v18  ;;  %v3608_v5 = vcombine.high %v8469_v40, %v8469_v40 }
0x1862   :  { %v3506_v24 = vrot.slane %v3498_v9, %v10454_v20  ;;  %v3513_v59 = vrot.slane %v3499_v43, %v10454_v20  ;;  %9504 = vmatprep.subr.bf16.mxu1 %v9503_v29  ;;  %v3615_v37 = vrot.slane %v8469_v40, %v10454_v20  ;;  %v3642_v22 = vcombine.high %v8470_v35, %v8470_v35 }
0x1863   :  { %v3489_v62 = vrot.slane %v3481_v45, %v10454_v20  ;;  %v3496_v55 = vrot.slane %v3482_v46, %v10454_v20  ;;  %9506 = vmatpush3.bf16.msra.mxu1 %v9503_v29  ;;  %v3622_v23 = vrot.slane %v3608_v5, %v10454_v20  ;;  %v3649_v2 = vrot.slane %v8470_v35, %v10454_v20 }
0x1864   :  { %v3514_v25 = vcombine.low %v3506_v24, %v3513_v59  ;;  %9508 = vmatprep.subr.bf16.mxu1 %v9507_v13  ;;  %v3623_v43 = vcombine.high %v3615_v37, %v3615_v37  ;;  %v3656_v45 = vrot.slane %v3642_v22, %v10454_v20 }
0x1865   :  { %v3497_v10 = vcombine.low %v3489_v62, %v3496_v55  ;;  %v3624_v59 = vcombine.high %v3622_v23, %v3622_v23 }
0x1866   :  { %v3520_v19 = vsel %vm462_vm0, %v3514_v25, 0.0  ;;  %v3658_v0 = vcombine.high %v3656_v45, %v3656_v45 }
0x1867   :  { %v3517_v6 = vsel %vm462_vm0, %v3497_v10, 0.0  ;;  %9510 = vmatpush3.bf16.msra.mxu1 %v9507_v13  ;;  %v3657_v10 = vcombine.high %v3649_v2, %v3649_v2 }
0x1868   :  { %3518 = vadd.xlane.f32.xlu0 %v3517_v6  ;;  %9512 = vmatprep.subr.bf16.mxu1 %v9511_v30 }
0x186b   :  { %9514 = vmatpush3.bf16.msra.mxu1 %v9511_v30 }
0x186c   :  { %3521 = vadd.xlane.f32.xlu0 %v3520_v19 }
0x18f5   :  { %v3519_v49 = vpop.xlane.xlu0 %3518 }
0x18f6   :  { %v3523_v31 = vmul.f32 0.03125, %v3519_v49 }
0x18f8   :  { %v3525_v44 = vadd.f32 1e-05, %v3523_v31 }
0x18f9   :  { %v3522_v17 = vpop.xlane.xlu0 %3521 }
0x18fa   :  { %10032 = vrsqrt.f32 %v3525_v44  ;;  %v3524_v26 = vmul.f32 0.03125, %v3522_v17 }
0x18fc   :  { %v3526_v34 = vadd.f32 1e-05, %v3524_v26 }
0x18fe   :  { %10034 = vrsqrt.f32 %v3526_v34 }
0x1904   :  { %v10033_v9 = vpop.eup %10032 }
0x1905   :  { %v3537_v46 = vrot.slane %v10033_v9, %v10695_v39  ;;  %v3544_v62 = vrot.slane %v10033_v9, %v10698_v63  ;;  %v3551_v55 = vrot.slane %v10033_v9, %v12088_v27  ;;  %v3558_v24 = vrot.slane %v10033_v9, %v12089_v38 }
0x1907   :  { %v3595_v6 = vmul.f32 %v3537_v46, %v11224_v1  ;;  %v3596_v25 = vmul.f32 %v3544_v62, %v11226_v57  ;;  %v3597_v19 = vmul.f32 %v3551_v55, %v11228_v60  ;;  %v3598_v28 = vmul.f32 %v3558_v24, %v11230_v58  ;;  %v8471_v24 = vld [vmem:[#allocation10 + $0x4] ss:$0 sm:$0xff] }
0x1908   :  { %v10035_v42 = vpop.eup %10034 }
0x1909   :  { %v3572_v12 = vrot.slane %v10035_v42, %v10698_v63  ;;  %v3586_v56 = vrot.slane %v10035_v42, %v12089_v38  ;;  %v3629_v54 = vmul.f32 %v3615_v37, %v3595_v6  ;;  %v3630_v47 = vmul.f32 %v3623_v43, %v3596_v25 }
0x190a   :  { %v3631_v48 = vmul.f32 %v3622_v23, %v3597_v19  ;;  %v3632_v51 = vmul.f32 %v3624_v59, %v3598_v28  ;;  %v3565_v29 = vrot.slane %v10035_v42, %v10695_v39  ;;  %v3579_v1 = vrot.slane %v10035_v42, %v12088_v27  ;;  %v8474_v19 = vld [vmem:[#allocation10 + $0x5] ss:$0 sm:$0xff] }
0x190b   :  { %v3600_v57 = vmul.f32 %v3572_v12, %v11218_v8  ;;  %v3602_v60 = vmul.f32 %v3586_v56, %v11222_v61  ;;  %v3663_v11 = vadd.f32 %v3649_v2, %v3629_v54  ;;  %v3664_v58 = vadd.f32 %v3657_v10, %v3630_v47 }
0x190c   :  { %v3665_v13 = vadd.f32 %v3656_v45, %v3631_v48  ;;  %v3666_v18 = vadd.f32 %v3658_v0, %v3632_v51  ;;  %v3599_v36 = vmul.f32 %v3565_v29, %v11216_v15  ;;  %v3601_v30 = vmul.f32 %v3579_v1, %v11220_v7 }
0x190d   :  { %v3634_v49 = vmul.f32 %v3623_v43, %v3600_v57  ;;  %v3636_v31 = vmul.f32 %v3624_v59, %v3602_v60  ;;  %v3683_v44 = vcombine.low %v3663_v11, %v3664_v58 }
0x190e   :  { %v3684_v17 = vcombine.low %v3665_v13, %v3666_v18  ;;  %v3633_v26 = vmul.f32 %v3615_v37, %v3599_v36  ;;  %v3635_v40 = vmul.f32 %v3622_v23, %v3601_v30  ;;  %v356_v37 = vld [vmem:[#allocation8 + $0xd0] sm:$0xff]  ;;  %v357_v23 = vld [vmem:[#allocation8 + $0xd8] sm:$0xff] }
0x190f   :  { %v3668_v34 = vadd.f32 %v3657_v10, %v3634_v49  ;;  %v3670_v35 = vadd.f32 %v3658_v0, %v3636_v31  ;;  %v3691_v8 = vrot.slane %v3683_v44, %v10454_v20  ;;  %v9515_v55 = vpack.c.bf16 %v357_v23, %v356_v37 }
0x1910   :  { %v3698_v61 = vrot.slane %v3684_v17, %v10454_v20  ;;  %v3667_v5 = vadd.f32 %v3649_v2, %v3633_v26  ;;  %v3669_v22 = vadd.f32 %v3656_v45, %v3635_v40 }
0x1911   :  { %9516 = vmatprep.subr.bf16.mxu1 %v9515_v55 }
0x1912   :  { %v3699_v9 = vcombine.low %v3691_v8, %v3698_v61  ;;  %v3700_v46 = vcombine.low %v3667_v5, %v3668_v34  ;;  %v3701_v62 = vcombine.low %v3669_v22, %v3670_v35  ;;  %9518 = vmatpush3.bf16.msra.mxu1 %v9515_v55 }
0x1914   :  { %9070 = vmatprep.mubr.msk.f32.mxu0 %vm462_vm0, %v3699_v9  ;;  %v3708_v15 = vrot.slane %v3700_v46, %v10454_v20  ;;  %v3715_v7 = vrot.slane %v3701_v62, %v10454_v20 }
0x1916   :  { %v3716_v43 = vcombine.low %v3708_v15, %v3715_v7 }
0x1918   :  { %9071 = vmatmul.mubr.msk.f32.vlgmr.msra.gmra.mrb[22].mxu0 %vm462_vm0, %v3716_v43 }
0x19eb   :  { %v9072_v2 = vpop.f32.mrb[22].mxu0 }
0x19ec   :  { %v3793_v45 = vadd.f32 %v9072_v2, %v8471_v24  ;;  %v3787_v59 = vpop.f32.mrb[23].mxu0 }
0x19ed   :  { %v3788_v10 = vadd.f32 %v8471_v24, %v3787_v59 }
0x19ee   :  { %v3797_v25 = vmax.f32 %v3793_v45, 0.0 }
0x19ef   :  { %v3796_v6 = vmax.f32 %v3788_v10, 0.0 }
0x19f1   :  { %9089 = vmatprep.mubr.msk.f32.mxu1 %vm3802_vm12, %v3796_v6 }
0x19f2   :  { %9090 = vmatmul.mubr.msk.f32.vlgmr.msra.gmra.mrb[32].mxu1 %vm3802_vm12, %v3797_v25 }
0x1ac5   :  { %v9091_v28 = vpop.f32.mrb[32].mxu1 }
0x1ac6   :  { %v3881_v42 = vadd.f32 %v9091_v28, %v8474_v19  ;;  %v3875_v0 = vpop.f32.mrb[33].mxu1 }
0x1ac7   :  { %v3876_v12 = vadd.f32 %v8474_v19, %v3875_v0 }
0x1ac8   :  { %v3903_v56 = vcombine.high %v3881_v42, %v3881_v42  ;;  %v3910_v54 = vrot.slane %v3881_v42, %v10454_v20 }
0x1ac9   :  { %v3886_v47 = vcombine.high %v3876_v12, %v3876_v12  ;;  %v3893_v48 = vrot.slane %v3876_v12, %v10454_v20 }
0x1aca   :  { %v3917_v51 = vrot.slane %v3903_v56, %v10454_v20  ;;  %v3918_v29 = vcombine.high %v3910_v54, %v3910_v54  ;;  %v3932_v36 = vadd.f32 %v3910_v54, %v3667_v5 }
0x1acb   :  { %v3900_v1 = vrot.slane %v3886_v47, %v10454_v20  ;;  %v3901_v57 = vcombine.high %v3893_v48, %v3893_v48  ;;  %v3928_v31 = vadd.f32 %v3893_v48, %v3663_v11 }
0x1acc   :  { %v3919_v60 = vcombine.high %v3917_v51, %v3917_v51  ;;  %v3933_v30 = vadd.f32 %v3918_v29, %v3668_v34  ;;  %v3934_v17 = vadd.f32 %v3917_v51, %v3669_v22 }
0x1acd   :  { %v3902_v49 = vcombine.high %v3900_v1, %v3900_v1  ;;  %v3929_v44 = vadd.f32 %v3901_v57, %v3664_v58  ;;  %v3930_v8 = vadd.f32 %v3900_v1, %v3665_v13 }
0x1ace   :  { %v3935_v26 = vadd.f32 %v3919_v60, %v3670_v35  ;;  %v3961_v40 = vcombine.low %v3932_v36, %v3933_v30 }
0x1acf   :  { %v3931_v61 = vadd.f32 %v3902_v49, %v3666_v18  ;;  %v3944_v9 = vcombine.low %v3928_v31, %v3929_v44 }
0x1ad0   :  { %v3962_v46 = vcombine.low %v3934_v17, %v3935_v26  ;;  %v3969_v15 = vrot.slane %v3961_v40, %v10454_v20 }
0x1ad1   :  { %v3945_v62 = vcombine.low %v3930_v8, %v3931_v61  ;;  %v3952_v43 = vrot.slane %v3944_v9, %v10454_v20 }
0x1ad2   :  { %v3976_v7 = vrot.slane %v3962_v46, %v10454_v20 }
0x1ad3   :  { %v3959_v5 = vrot.slane %v3945_v62, %v10454_v20 }
0x1ad4   :  { %v3977_v34 = vcombine.low %v3969_v15, %v3976_v7  ;;  %v4268_v15 = vld [vmem:[#allocation8 + $0xe0] sm:$0xff]  ;;  %v4269_v7 = vld [vmem:[#allocation8 + $0xe8] sm:$0xff] }
0x1ad5   :  { %v3960_v37 = vcombine.low %v3952_v43, %v3959_v5  ;;  %v4270_v43 = vld [vmem:[#allocation8 + $0xf0] sm:$0xff]  ;;  %v9519_v5 = vpack.c.bf16 %v4269_v7, %v4268_v15 }
0x1ad6   :  { %v3983_v11 = vsel %vm462_vm0, %v3977_v34, 0.0  ;;  %v4271_v34 = vld [vmem:[#allocation8 + $0xf8] sm:$0xff] }
0x1ad7   :  { %3984 = vadd.xlane.f32.xlu0 %v3983_v11  ;;  %v3980_v58 = vsel %vm462_vm0, %v3960_v37, 0.0  ;;  %v9523_v37 = vpack.c.bf16 %v4271_v34, %v4270_v43  ;;  %9520 = vmatprep.subr.bf16.mxu0 %v9519_v5 }
0x1ad8   :  { %3981 = vadd.xlane.f32.xlu1 %v3980_v58  ;;  %9522 = vmatpush3.bf16.msra.mxu0 %v9519_v5 }
0x1ad9   :  { %9524 = vmatprep.subr.bf16.mxu0 %v9523_v37 }
0x1adc   :  { %9526 = vmatpush3.bf16.msra.mxu0 %v9523_v37 }
0x1b64   :  { %v3985_v13 = vpop.xlane.xlu0 %3984 }
0x1b65   :  { %v3987_v18 = vmul.f32 0.03125, %v3985_v13  ;;  %v3982_v35 = vpop.xlane.xlu1 %3981 }
0x1b66   :  { %v3986_v22 = vmul.f32 0.03125, %v3982_v35 }
0x1b67   :  { %v4024_v23 = vrot.slane %v3987_v18, %v10695_v39  ;;  %v4031_v55 = vrot.slane %v3987_v18, %v10698_v63  ;;  %v4038_v24 = vrot.slane %v3987_v18, %v12088_v27  ;;  %v4045_v2 = vrot.slane %v3987_v18, %v12089_v38 }
0x1b68   :  { %v3996_v45 = vrot.slane %v3986_v22, %v10695_v39  ;;  %v4003_v59 = vrot.slane %v3986_v22, %v10698_v63  ;;  %v4010_v10 = vrot.slane %v3986_v22, %v12088_v27  ;;  %v4017_v6 = vrot.slane %v3986_v22, %v12089_v38 }
0x1b69   :  { %v11300_v25 = vsub.f32 %v3932_v36, %v4024_v23  ;;  %v11302_v19 = vsub.f32 %v3933_v30, %v4031_v55  ;;  %v11304_v28 = vsub.f32 %v3934_v17, %v4038_v24  ;;  %v11306_v42 = vsub.f32 %v3935_v26, %v4045_v2  ;;  %v8477_v23 = vld [vmem:[#allocation10 + $0xa] ss:$0 sm:$0xff]  ;;  %v8478_v55 = vld [vmem:[#allocation10 + $0xb] ss:$0 sm:$0xff] }
0x1b6a   :  { %v11308_v0 = vsub.f32 %v3928_v31, %v3996_v45  ;;  %v11310_v12 = vsub.f32 %v3929_v44, %v4003_v59  ;;  %v11312_v56 = vsub.f32 %v3930_v8, %v4010_v10  ;;  %v11314_v54 = vsub.f32 %v3931_v61, %v4017_v6 }
0x1b6b   :  { %v4066_v47 = vmul.f32 %v11300_v25, %v11300_v25  ;;  %v4067_v48 = vmul.f32 %v11302_v19, %v11302_v19  ;;  %v4068_v51 = vmul.f32 %v11304_v28, %v11304_v28  ;;  %v4069_v29 = vmul.f32 %v11306_v42, %v11306_v42 }
0x1b6c   :  { %v4062_v1 = vmul.f32 %v11308_v0, %v11308_v0  ;;  %v4063_v57 = vmul.f32 %v11310_v12, %v11310_v12  ;;  %v4064_v60 = vmul.f32 %v11312_v56, %v11312_v56  ;;  %v4065_v36 = vmul.f32 %v11314_v54, %v11314_v54 }
0x1b6d   :  { %v4095_v30 = vcombine.low %v4066_v47, %v4067_v48  ;;  %v4096_v49 = vcombine.low %v4068_v51, %v4069_v29  ;;  %v4205_v24 = vcombine.high %v8477_v23, %v8477_v23  ;;  %v4239_v2 = vcombine.high %v8478_v55, %v8478_v55 }
0x1b6e   :  { %v4078_v31 = vcombine.low %v4062_v1, %v4063_v57  ;;  %v4079_v44 = vcombine.low %v4064_v60, %v4065_v36  ;;  %v4212_v45 = vrot.slane %v8477_v23, %v10454_v20  ;;  %v4246_v10 = vrot.slane %v8478_v55, %v10454_v20  ;;  %v11384_v23 = vld [vmem:[%s12064_s3 + $0xa] sm:$0x3] }
0x1b6f   :  { %v4103_v17 = vrot.slane %v4095_v30, %v10454_v20  ;;  %v4110_v26 = vrot.slane %v4096_v49, %v10454_v20  ;;  %v4219_v59 = vrot.slane %v4205_v24, %v10454_v20  ;;  %v4253_v6 = vrot.slane %v4239_v2, %v10454_v20  ;;  %v11391_v24 = vld [vmem:[%s12064_s3 + $0xc] sm:$0x3] }
0x1b70   :  { %v4086_v40 = vrot.slane %v4078_v31, %v10454_v20  ;;  %v4093_v8 = vrot.slane %v4079_v44, %v10454_v20  ;;  %v4220_v48 = vcombine.high %v4212_v45, %v4212_v45  ;;  %v4254_v29 = vcombine.high %v4246_v10, %v4246_v10 }
0x1b71   :  { %v4111_v61 = vcombine.low %v4103_v17, %v4110_v26  ;;  %v4221_v51 = vcombine.high %v4219_v59, %v4219_v59  ;;  %v4255_v1 = vcombine.high %v4253_v6, %v4253_v6 }
0x1b72   :  { %v4094_v9 = vcombine.low %v4086_v40, %v4093_v8 }
0x1b73   :  { %v4117_v46 = vsel %vm462_vm0, %v4111_v61, 0.0 }
0x1b74   :  { %4118 = vadd.xlane.f32.xlu0 %v4117_v46  ;;  %v4114_v62 = vsel %vm462_vm0, %v4094_v9, 0.0 }
0x1b75   :  { %4115 = vadd.xlane.f32.xlu1 %v4114_v62 }
0x1c01   :  { %v4119_v11 = vpop.xlane.xlu0 %4118 }
0x1c02   :  { %v4121_v58 = vmul.f32 0.03125, %v4119_v11  ;;  %v4116_v13 = vpop.xlane.xlu1 %4115 }
0x1c03   :  { %v4120_v18 = vmul.f32 0.03125, %v4116_v13 }
0x1c04   :  { %v4123_v35 = vadd.f32 1e-05, %v4121_v58 }
0x1c05   :  { %v4122_v22 = vadd.f32 1e-05, %v4120_v18 }
0x1c06   :  { %10036 = vrsqrt.f32 %v4123_v35  ;;  %v11377_v35 = vld [vmem:[%s12064_s3 + $0x8] sm:$0x3] }
0x1c07   :  { %10038 = vrsqrt.f32 %v4122_v22 }
0x1c10   :  { %v10037_v47 = vpop.eup %10036 }
0x1c11   :  { %v10039_v57 = vpop.eup %10038  ;;  %v4169_v60 = vrot.slane %v10037_v47, %v10698_v63  ;;  %v4183_v36 = vrot.slane %v10037_v47, %v12089_v38  ;;  %v4162_v30 = vrot.slane %v10037_v47, %v10695_v39  ;;  %v4176_v49 = vrot.slane %v10037_v47, %v12088_v27  ;;  %v11412_v47 = vld [vmem:[%s12064_s3 + $0x2] sm:$0x3] }
0x1c12   :  { %v4134_v31 = vrot.slane %v10039_v57, %v10695_v39  ;;  %v4141_v44 = vrot.slane %v10039_v57, %v10698_v63  ;;  %v4148_v17 = vrot.slane %v10039_v57, %v12088_v27  ;;  %v4155_v26 = vrot.slane %v10039_v57, %v12089_v38 }
0x1c13   :  { %v4197_v40 = vmul.f32 %v4169_v60, %v11302_v19  ;;  %v4199_v8 = vmul.f32 %v4183_v36, %v11306_v42  ;;  %v4196_v61 = vmul.f32 %v4162_v30, %v11300_v25  ;;  %v4198_v9 = vmul.f32 %v4176_v49, %v11304_v28 }
0x1c14   :  { %v4192_v46 = vmul.f32 %v4134_v31, %v11308_v0  ;;  %v4193_v62 = vmul.f32 %v4141_v44, %v11310_v12  ;;  %v4194_v15 = vmul.f32 %v4148_v17, %v11312_v56  ;;  %v4195_v7 = vmul.f32 %v4155_v26, %v11314_v54 }
0x1c15   :  { %v4231_v43 = vmul.f32 %v4220_v48, %v4197_v40  ;;  %v4233_v5 = vmul.f32 %v4221_v51, %v4199_v8  ;;  %v4230_v34 = vmul.f32 %v4212_v45, %v4196_v61  ;;  %v4232_v37 = vmul.f32 %v4219_v59, %v4198_v9 }
0x1c16   :  { %v4226_v11 = vmul.f32 %v4212_v45, %v4192_v46  ;;  %v4227_v19 = vmul.f32 %v4220_v48, %v4193_v62  ;;  %v4228_v58 = vmul.f32 %v4219_v59, %v4194_v15  ;;  %v4229_v42 = vmul.f32 %v4221_v51, %v4195_v7  ;;  %v11398_v45 = vld [vmem:[%s12064_s3 + $0xe] sm:$0x3]  ;;  %v11419_v51 = vld [vmem:[%s12064_s3 + $0x4] sm:$0x3] }
0x1c17   :  { %v11358_v13 = vadd.f32 %v4254_v29, %v4231_v43  ;;  %v11360_v25 = vadd.f32 %v4255_v1, %v4233_v5  ;;  %v11362_v28 = vadd.f32 %v4246_v10, %v4230_v34  ;;  %v11364_v0 = vadd.f32 %v4253_v6, %v4232_v37 }
0x1c18   :  { %v11366_v12 = vadd.f32 %v4246_v10, %v4226_v11  ;;  %v11368_v56 = vadd.f32 %v4254_v29, %v4227_v19  ;;  %v11370_v54 = vadd.f32 %v4253_v6, %v4228_v58  ;;  %v11372_v18 = vadd.f32 %v4255_v1, %v4229_v42  ;;  %v11405_v10 = vld [vmem:[%s12064_s3] sm:$0x3]  ;;  %v11426_v1 = vld [vmem:[%s12064_s3 + $0x6] sm:$0x3]  ;;  %v8483_v11 = vld [vmem:[#allocation10 + $0xc] ss:$0 sm:$0xff] }
0x1c19   :  { %v4312_v22 = vadd.f32 %v11377_v35, %v11362_v28  ;;  %v4313_v55 = vadd.f32 %v11384_v23, %v11358_v13  ;;  %v4314_v2 = vadd.f32 %v11391_v24, %v11364_v0  ;;  %v4315_v59 = vadd.f32 %v11398_v45, %v11360_v25  ;;  %s10304_s3 = smov [#allocation11]  }
0x1c1a   :  { %v4308_v6 = vadd.f32 %v11405_v10, %v11366_v12  ;;  %v4309_v48 = vadd.f32 %v11412_v47, %v11368_v56  ;;  %v4310_v29 = vadd.f32 %v11419_v51, %v11370_v54  ;;  %v4311_v57 = vadd.f32 %v11426_v1, %v11372_v18 }
0x1c1b   :  { %v4341_v60 = vcombine.low %v4312_v22, %v4313_v55  ;;  %v4342_v36 = vcombine.low %v4314_v2, %v4315_v59  ;;  %v4366_v30 = vcombine.low %v11366_v12, %v11368_v56  ;;  %v4367_v49 = vcombine.low %v11370_v54, %v11372_v18 }
0x1c1c   :  { %v4324_v31 = vcombine.low %v4308_v6, %v4309_v48  ;;  %v4325_v44 = vcombine.low %v4310_v29, %v4311_v57  ;;  %v4383_v40 = vcombine.low %v11362_v28, %v11358_v13  ;;  %v4384_v8 = vcombine.low %v11364_v0, %v11360_v25 }
0x1c1d   :  { %v4349_v17 = vrot.slane %v4341_v60, %v10454_v20  ;;  %v4356_v26 = vrot.slane %v4342_v36, %v10454_v20  ;;  %v4374_v46 = vrot.slane %v4366_v30, %v10454_v20  ;;  %v4381_v62 = vrot.slane %v4367_v49, %v10454_v20 }
0x1c1e   :  { %v4332_v61 = vrot.slane %v4324_v31, %v10454_v20  ;;  %v4339_v9 = vrot.slane %v4325_v44, %v10454_v20  ;;  %v4391_v43 = vrot.slane %v4383_v40, %v10454_v20  ;;  %v4398_v5 = vrot.slane %v4384_v8, %v10454_v20 }
0x1c1f   :  { %v4357_v7 = vcombine.low %v4349_v17, %v4356_v26  ;;  %v4382_v34 = vcombine.low %v4374_v46, %v4381_v62 }
0x1c20   :  { %v4340_v15 = vcombine.low %v4332_v61, %v4339_v9  ;;  %v4399_v37 = vcombine.low %v4391_v43, %v4398_v5 }
0x1c22   :  { %9100 = vmatprep.mubr.msk.f32.mxu0 %vm462_vm0, %v4340_v15 }
0x1c23   :  { %9101 = vmatmul.mubr.msk.f32.vlgmr.msra.gmra.mrb[24].mxu0 %vm462_vm0, %v4357_v7 }
0x1c24   :  { %9103 = vmatprep.mubr.msk.f32.mxu0 %vm462_vm0, %v4382_v34 }
0x1c27   :  { %9104 = vmatmul.mubr.msk.f32.gmra.mrb[26].mxu0 %vm462_vm0, %v4399_v37 }
0x1cf6   :  { %v9102_v19 = vpop.f32.mrb[24].mxu0 }
0x1cf7   :  { %v11450_v58 = vadd.f32 %v9102_v19, %v8483_v11  ;;  %v4474_v42 = vpop.f32.mrb[25].mxu0 }
0x1cf8   :  { %v11452_v22 = vadd.f32 %v8483_v11, %v4474_v42 }
0x1cfa   :  { %v9105_v55 = vpop.f32.mrb[26].mxu0  ;;  %9110 = vmatprep.mubr.msk.f32.mxu0 %vm570_vm4, %v11452_v22  ;;  %v11458_v2 = vpack.i.bf16 %v11450_v58, %v11452_v22 }
0x1cfb   :  { %v4500_v59 = vadd.f32 %v9105_v55, %v8483_v11  ;;  %v4484_v6 = vpop.f32.mrb[27].mxu0 }
0x1cfc   :  { %v4499_v48 = vadd.f32 %v8483_v11, %v4484_v6  ;;  %9850 = vrot.lane.b32.xlu0 %v11458_v2, %s10289_s7  ;;  %9845 = vrot.lane.b32.xlu1 %v11458_v2, %s10287_s29 }
0x1cfe   :  { %v11464_v29 = vpack.i.bf16 %v4500_v59, %v4499_v48 }
0x1d00   :  { %4703 = vrot.lane.b32.xlu1 %v11452_v22, %s10290_s8 }
0x1d04   :  { %4705 = vrot.lane.b32.xlu1 %v11450_v58, %s10290_s8 }
0x1d6e   :  { %v9851_v57 = vpop.permute.xlu0 %9850  ;;  %v9846_v60 = vpop.permute.xlu1 %9845 }
0x1d6f   :  { %v9853_v36 = vunpack.i.h.bf16 %v9851_v57  ;;  %v9852_v30 = vunpack.i.l.bf16 %v9851_v57  ;;  %v9848_v49 = vunpack.i.h.bf16 %v9846_v60  ;;  %v9847_v31 = vunpack.i.l.bf16 %v9846_v60 }
0x1d71   :  { %v9527_v44 = vpack.c.bf16 %v9848_v49, %v9847_v31  ;;  %v9537_v17 = vpack.c.bf16 %v9853_v36, %v9852_v30 }
0x1d72   :  { %v4704_v26 = vpop.permute.xlu1 %4703 }
0x1d73   :  { %9529 = vmatprep.subr.msk.bf16.mxu0 %vm10542_vm5, %v9527_v44 }
0x1d74   :  { %9532 = vmatpush3.bf16.xpose.msk.msra.mxu0 %vm10542_vm5, %v9527_v44 }
0x1d75   :  { %9539 = vmatprep.subr.msk.bf16.mxu0 %vm10542_vm5, %v9537_v17 }
0x1d76   :  { %v4706_v40 = vpop.permute.xlu1 %4705 }
0x1d7b   :  { %9111 = vmatmul.mubr.msk.f32.vlgmr.msra.gmra.mrb[28].mxu0 %vm570_vm4, %v11450_v58 }
0x1d7c   :  { %9542 = vmatpush3.bf16.xpose.msk.msra.mxu0 %vm10542_vm5, %v9537_v17  ;;  %9124 = vmatprep.mubr.msk.f32.mxu0 %vm570_vm4, %v4704_v26 }
0x1d83   :  { %9125 = vmatmul.mubr.msk.f32.vlgmr.msra.gmra.mrb[30].mxu0 %vm570_vm4, %v4706_v40 }
0x1e4e   :  { %v9112_v8 = vpop.f32.mrb[28].mxu0 }
0x1e4f   :  { %v4591_v9 = vsel %vm252_vm6, %v9112_v8, -1e+30  ;;  %v4581_v46 = vpop.f32.mrb[29].mxu0 }
0x1e50   :  { %v4595_v62 = vsel %vm656_vm8, %v4591_v9, -inf  ;;  %v4590_v7 = vsel %vm251_vm7, %v4581_v46, -1e+30 }
0x1e51   :  { %4596 = vmax.xlane.f32.xlu1 %v4595_v62  ;;  %v4592_v43 = vsel %vm656_vm8, %v4590_v7, -inf }
0x1e52   :  { %4593 = vmax.xlane.f32.xlu0 %v4592_v43 }
0x1e56   :  { %v9126_v5 = vpop.f32.mrb[30].mxu0 }
0x1e57   :  { %v4785_v34 = vpop.f32.mrb[31].mxu0  ;;  %v4795_v19 = vsel %vm252_vm6, %v9126_v5, -1e+30 }
0x1e58   :  { %v4794_v37 = vsel %vm251_vm7, %v4785_v34, -1e+30  ;;  %v4799_v42 = vsel %vm656_vm8, %v4795_v19, -inf }
0x1e59   :  { %v4796_v11 = vsel %vm656_vm8, %v4794_v37, -inf }
0x1e5a   :  { %4797 = vmax.xlane.f32.xlu0 %v4796_v11 }
0x1e5e   :  { %4800 = vmax.xlane.f32.xlu0 %v4799_v42 }
0x1e62   :  { %9855 = vrot.lane.b32.xlu1 %v11464_v29, %s10288_s30 }
0x1ede   :  { %v4597_v55 = vpop.xlane.xlu1 %4596 }
0x1edf   :  { %v4599_v59 = vsub.f32 %v4591_v9, %v4597_v55  ;;  %v4594_v6 = vpop.xlane.xlu0 %4593 }
0x1ee0   :  { %v4598_v48 = vsub.f32 %v4590_v7, %v4594_v6 }
0x1ee1   :  { %v4602_v57 = vmul.f32 1.442695, %v4599_v59 }
0x1ee2   :  { %v4600_v60 = vmul.f32 1.442695, %v4598_v48  ;;  %v9856_v36 = vpop.permute.xlu1 %9855 }
0x1ee3   :  { %10040 = vpow2.f32 %v4602_v57  ;;  %v9858_v30 = vunpack.i.h.bf16 %v9856_v36  ;;  %v9857_v49 = vunpack.i.l.bf16 %v9856_v36 }
0x1ee4   :  { %10042 = vpow2.f32 %v4600_v60 }
0x1ee5   :  { %v9533_v31 = vpack.c.bf16 %v9858_v30, %v9857_v49 }
0x1ee7   :  { %v4798_v44 = vpop.xlane.xlu0 %4797  ;;  %9534 = vmatprep.subr.bf16.mxu1 %v9533_v31 }
0x1ee8   :  { %9536 = vmatpush3.bf16.msra.mxu1 %v9533_v31  ;;  %v4802_v5 = vsub.f32 %v4794_v37, %v4798_v44 }
0x1eea   :  { %v4804_v34 = vmul.f32 1.442695, %v4802_v5 }
0x1eeb   :  { %v4801_v17 = vpop.xlane.xlu0 %4800 }
0x1eec   :  { %v4803_v26 = vsub.f32 %v4795_v19, %v4801_v17 }
0x1eed   :  { %v10041_v40 = vpop.eup %10040 }
0x1eee   :  { %v10043_v8 = vpop.eup %10042  ;;  %v4806_v46 = vmul.f32 1.442695, %v4803_v26  ;;  %v4607_v9 = vsel %vm656_vm8, %v10041_v40, 0.0 }
0x1eef   :  { %4608 = vadd.xlane.f32.xlu0 %v4607_v9  ;;  %v4604_v62 = vsel %vm656_vm8, %v10043_v8, 0.0 }
0x1ef0   :  { %10044 = vpow2.f32 %v4806_v46  ;;  %4605 = vadd.xlane.f32.xlu1 %v4604_v62 }
0x1ef1   :  { %10046 = vpow2.f32 %v4804_v34 }
0x1efa   :  { %v10045_v7 = vpop.eup %10044 }
0x1efb   :  { %v4811_v43 = vsel %vm656_vm8, %v10045_v7, 0.0  ;;  %v10047_v11 = vpop.eup %10046 }
0x1efc   :  { %4812 = vadd.xlane.f32.xlu0 %v4811_v43  ;;  %v4808_v19 = vsel %vm656_vm8, %v10047_v11, 0.0 }
0x1f01   :  { %9865 = vrot.lane.b32.xlu1 %v11458_v2, %s10292_s12 }
0x1f12   :  { %9860 = vrot.lane.b32.xlu0 %v11464_v29, %s10291_s11 }
0x1f16   :  { %4907 = vrot.lane.b32.xlu0 %v11450_v58, %s10293_s13 }
0x1f25   :  { %4809 = vadd.xlane.f32.xlu1 %v4808_v19 }
0x1f36   :  { %4905 = vrot.lane.b32.xlu1 %v11452_v22, %s10293_s13 }
0x1f7c   :  { %v4609_v42 = vpop.xlane.xlu0 %4608 }
0x1f7d   :  { %10048 = vrcp.f32 %v4609_v42  ;;  %v4606_v55 = vpop.xlane.xlu1 %4605 }
0x1f7e   :  { %10050 = vrcp.f32 %v4606_v55 }
0x1f81   :  { %v9866_v60 = vpop.permute.xlu1 %9865 }
0x1f82   :  { %v9868_v30 = vunpack.i.h.bf16 %v9866_v60  ;;  %v9867_v49 = vunpack.i.l.bf16 %v9866_v60 }
0x1f84   :  { %v9547_v26 = vpack.c.bf16 %v9868_v30, %v9867_v49 }
0x1f87   :  { %v10049_v37 = vpop.eup %10048 }
0x1f88   :  { %v10051_v59 = vpop.eup %10050  ;;  %v4613_v57 = vmul.f32 %v10049_v37, %v10041_v40 }
0x1f89   :  { %v4813_v6 = vpop.xlane.xlu0 %4812  ;;  %v4612_v48 = vmul.f32 %v10051_v59, %v10043_v8 }
0x1f8a   :  { %10052 = vrcp.f32 %v4813_v6 }
0x1f8b   :  { %9117 = vmatprep.mubr.msk.f32.mxu1 %vm656_vm8, %v4612_v48 }
0x1f8c   :  { %9118 = vmatmul.mubr.msk.f32.vlgmr.msra.gmra.mrb[34].mxu1 %vm656_vm8, %v4613_v57 }
0x1f8d   :  { %v9861_v36 = vpop.permute.xlu0 %9860 }
0x1f8e   :  { %v9863_v31 = vunpack.i.h.bf16 %v9861_v36  ;;  %v9862_v44 = vunpack.i.l.bf16 %v9861_v36 }
0x1f90   :  { %v9543_v17 = vpack.c.bf16 %v9863_v31, %v9862_v44 }
0x1f91   :  { %v4908_v5 = vpop.permute.xlu0 %4907 }
0x1f92   :  { %9544 = vmatprep.subr.bf16.mxu1 %v9543_v17 }
0x1f93   :  { %9546 = vmatpush3.bf16.msra.mxu1 %v9543_v17 }
0x1f94   :  { %9549 = vmatprep.subr.msk.bf16.mxu1 %vm10542_vm5, %v9547_v26  ;;  %v10053_v40 = vpop.eup %10052 }
0x1f95   :  { %v4817_v62 = vmul.f32 %v10053_v40, %v10045_v7 }
0x1fb2   :  { %v4810_v8 = vpop.xlane.xlu1 %4809 }
0x1fb3   :  { %10054 = vrcp.f32 %v4810_v8 }
0x1fb6   :  { %v4906_v43 = vpop.permute.xlu1 %4905 }
0x1fbd   :  { %v10055_v46 = vpop.eup %10054 }
0x1fbe   :  { %v4816_v9 = vmul.f32 %v10055_v46, %v10047_v11 }
0x1fc0   :  { %9131 = vmatprep.mubr.msk.f32.mxu1 %vm656_vm8, %v4816_v9 }
0x1fc1   :  { %9132 = vmatmul.mubr.msk.f32.vlgmr.msra.gmra.mrb[36].mxu1 %vm656_vm8, %v4817_v62 }
0x1fc2   :  { %9552 = vmatpush3.bf16.xpose.msk.msra.mxu1 %vm10542_vm5, %v9547_v26  ;;  %9138 = vmatprep.mubr.msk.f32.mxu1 %vm570_vm4, %v4906_v43 }
0x1fc9   :  { %9139 = vmatmul.mubr.msk.f32.vlgmr.msra.gmra.mrb[38].mxu1 %vm570_vm4, %v4908_v5 }
0x205f   :  { %v11518_v34 = vpop.f32.mrb[34].mxu1 }
0x2060   :  { %v11520_v19 = vpop.f32.mrb[35].mxu1 }
0x2094   :  { %v11522_v42 = vpop.f32.mrb[36].mxu1 }
0x2095   :  { %v11524_v7 = vpop.f32.mrb[37].mxu1 }
0x209c   :  { %v9140_v11 = vpop.f32.mrb[38].mxu1 }
0x209d   :  { %v4997_v55 = vsel %vm252_vm6, %v9140_v11, -1e+30  ;;  %v4987_v37 = vpop.f32.mrb[39].mxu1 }
0x209e   :  { %v5001_v59 = vsel %vm656_vm8, %v4997_v55, -inf  ;;  %v4996_v6 = vsel %vm251_vm7, %v4987_v37, -1e+30 }
0x209f   :  { %v4998_v48 = vsel %vm656_vm8, %v4996_v6, -inf  ;;  %5002 = vmax.xlane.f32.xlu0 %v5001_v59 }
0x20a0   :  { %4999 = vmax.xlane.f32.xlu1 %v4998_v48 }
0x212c   :  { %v5003_v57 = vpop.xlane.xlu0 %5002 }
0x212d   :  { %v5005_v60 = vsub.f32 %v4997_v55, %v5003_v57  ;;  %v5000_v36 = vpop.xlane.xlu1 %4999 }
0x212e   :  { %v5004_v30 = vsub.f32 %v4996_v6, %v5000_v36 }
0x212f   :  { %v5008_v49 = vmul.f32 1.442695, %v5005_v60 }
0x2130   :  { %v5006_v31 = vmul.f32 1.442695, %v5004_v30 }
0x2131   :  { %10056 = vpow2.f32 %v5008_v49 }
0x2132   :  { %10058 = vpow2.f32 %v5006_v31 }
0x213b   :  { %v10057_v44 = vpop.eup %10056 }
0x213c   :  { %v10059_v17 = vpop.eup %10058  ;;  %v5013_v26 = vsel %vm656_vm8, %v10057_v44, 0.0 }
0x213d   :  { %5014 = vadd.xlane.f32.xlu1 %v5013_v26  ;;  %v5010_v8 = vsel %vm656_vm8, %v10059_v17, 0.0 }
0x213e   :  { %5011 = vadd.xlane.f32.xlu0 %v5010_v8 }
0x214e   :  { %9875 = vrot.lane.b32.xlu1 %v11458_v2, %s10294_s4 }
0x2152   :  { %5107 = vrot.lane.b32.xlu1 %v11452_v22, %s10295_s2 }
0x2154   :  { %9870 = vrot.lane.b32.xlu0 %v11464_v29, %s10296_s28 }
0x2158   :  { %5109 = vrot.lane.b32.xlu0 %v11450_v58, %s10295_s2 }
0x21ca   :  { %v5015_v40 = vpop.xlane.xlu1 %5014 }
0x21cb   :  { %10060 = vrcp.f32 %v5015_v40  ;;  %v5012_v46 = vpop.xlane.xlu0 %5011 }
0x21cc   :  { %10062 = vrcp.f32 %v5012_v46 }
0x21ce   :  { %v9876_v9 = vpop.permute.xlu1 %9875 }
0x21cf   :  { %v9871_v62 = vpop.permute.xlu0 %9870  ;;  %v9878_v43 = vunpack.i.h.bf16 %v9876_v9  ;;  %v9877_v5 = vunpack.i.l.bf16 %v9876_v9 }
0x21d0   :  { %v9873_v11 = vunpack.i.h.bf16 %v9871_v62  ;;  %v9872_v55 = vunpack.i.l.bf16 %v9871_v62 }
0x21d1   :  { %v9557_v37 = vpack.c.bf16 %v9878_v43, %v9877_v5 }
0x21d2   :  { %v9553_v2 = vpack.c.bf16 %v9873_v11, %v9872_v55  ;;  %v5108_v48 = vpop.permute.xlu1 %5107 }
0x21d3   :  { %v5110_v57 = vpop.permute.xlu0 %5109 }
0x21d4   :  { %9554 = vmatprep.subr.bf16.mxu0 %v9553_v2 }
0x21d5   :  { %v10061_v22 = vpop.eup %10060  ;;  %9556 = vmatpush3.bf16.msra.mxu0 %v9553_v2 }
0x21d6   :  { %v10063_v59 = vpop.eup %10062  ;;  %9559 = vmatprep.subr.msk.bf16.mxu0 %vm10542_vm5, %v9557_v37  ;;  %v5019_v6 = vmul.f32 %v10061_v22, %v10057_v44 }
0x21d7   :  { %v5018_v58 = vmul.f32 %v10063_v59, %v10059_v17 }
0x21d9   :  { %9145 = vmatprep.mubr.msk.f32.mxu0 %vm656_vm8, %v5018_v58 }
0x21da   :  { %9146 = vmatmul.mubr.msk.f32.vlgmr.msra.gmra.mrb[32].mxu0 %vm656_vm8, %v5019_v6 }
0x21db   :  { %9152 = vmatprep.mubr.msk.f32.mxu0 %vm570_vm4, %v5108_v48 }
0x21de   :  { %9562 = vmatpush3.bf16.xpose.msk.msra.mxu0 %vm10542_vm5, %v9557_v37 }
0x21e5   :  { %9153 = vmatmul.mubr.msk.f32.vlgmr.msra.gmra.mrb[34].mxu0 %vm570_vm4, %v5110_v57  ;;  %v4273_v57 = vld [vmem:[#allocation8 + $0x108] sm:$0xff] }
0x22ad   :  { %v9147_v60 = vpop.f32.mrb[32].mxu0 }
0x22ae   :  { %v5098_v36 = vpop.f32.mrb[33].mxu0 }
0x22b8   :  { %v9154_v30 = vpop.f32.mrb[34].mxu0 }
0x22b9   :  { %v5199_v49 = vsel %vm252_vm6, %v9154_v30, -1e+30  ;;  %v5189_v31 = vpop.f32.mrb[35].mxu0  ;;  %v4275_v30 = vld [vmem:[#allocation8 + $0x118] sm:$0xff] }
0x22ba   :  { %v5203_v44 = vsel %vm656_vm8, %v5199_v49, -inf  ;;  %v5198_v17 = vsel %vm251_vm7, %v5189_v31, -1e+30 }
0x22bb   :  { %v5200_v26 = vsel %vm656_vm8, %v5198_v17, -inf  ;;  %5204 = vmax.xlane.f32.xlu0 %v5203_v44 }
0x22bc   :  { %5201 = vmax.xlane.f32.xlu1 %v5200_v26 }
0x2348   :  { %v5205_v8 = vpop.xlane.xlu0 %5204 }
0x2349   :  { %v5207_v40 = vsub.f32 %v5199_v49, %v5205_v8  ;;  %v5202_v46 = vpop.xlane.xlu1 %5201 }
0x234a   :  { %v5206_v9 = vsub.f32 %v5198_v17, %v5202_v46 }
0x234b   :  { %v5210_v62 = vmul.f32 1.442695, %v5207_v40 }
0x234c   :  { %v5208_v43 = vmul.f32 1.442695, %v5206_v9 }
0x234d   :  { %10064 = vpow2.f32 %v5210_v62 }
0x234e   :  { %10066 = vpow2.f32 %v5208_v43 }
0x2357   :  { %v10065_v61 = vpop.eup %10064 }
0x2358   :  { %v10067_v5 = vpop.eup %10066  ;;  %v5215_v11 = vsel %vm656_vm8, %v10065_v61, 0.0 }
0x2359   :  { %5216 = vadd.xlane.f32.xlu1 %v5215_v11  ;;  %v5212_v15 = vsel %vm656_vm8, %v10067_v5, 0.0 }
0x235a   :  { %5213 = vadd.xlane.f32.xlu0 %v5212_v15 }
0x236a   :  { %5311 = vrot.lane.b32.xlu1 %v11524_v7, %s10281_s21 }
0x236e   :  { %5313 = vrot.lane.b32.xlu1 %v11522_v42, %s10281_s21 }
0x2370   :  { %9880 = vrot.lane.b32.xlu0 %v11464_v29, %s10297_s5  ;;  %v4272_v29 = vld [vmem:[#allocation8 + $0x100] sm:$0xff] }
0x2372   :  { %5321 = vrot.lane.b32.xlu1 %v9147_v60, %s10298_s1  ;;  %v4274_v60 = vld [vmem:[#allocation8 + $0x110] sm:$0xff] }
0x2373   :  { %v9571_v49 = vpack.c.bf16 %v4275_v30, %v4274_v60 }
0x2374   :  { %5319 = vrot.lane.b32.xlu0 %v5098_v36, %s10298_s1  ;;  %v9567_v36 = vpack.c.bf16 %v4273_v57, %v4272_v29 }
0x23e6   :  { %v5217_v55 = vpop.xlane.xlu1 %5216 }
0x23e7   :  { %10068 = vrcp.f32 %v5217_v55  ;;  %v5214_v2 = vpop.xlane.xlu0 %5213  ;;  %v8510_v55 = vld [vmem:[#allocation10 + $0xd] ss:$0 sm:$0xff] }
0x23e8   :  { %10070 = vrcp.f32 %v5214_v2  ;;  %v5477_v2 = vcombine.high %v8510_v55, %v8510_v55 }
0x23ea   :  { %v5312_v17 = vpop.permute.xlu1 %5311 }
0x23eb   :  { %v9881_v37 = vpop.permute.xlu0 %9880  ;;  %v5333_v46 = vsel %vm570_vm4, %v11520_v19, %v5312_v17  ;;  %v5484_v19 = vrot.slane %v8510_v55, %v10454_v20 }
0x23ec   :  { %v9883_v22 = vunpack.i.h.bf16 %v9881_v37  ;;  %v9882_v59 = vunpack.i.l.bf16 %v9881_v37 }
0x23ed   :  { %v5492_v57 = vcombine.high %v5484_v19, %v5484_v19 }
0x23ee   :  { %v9563_v58 = vpack.c.bf16 %v9883_v22, %v9882_v59  ;;  %v5314_v26 = vpop.permute.xlu1 %5313  ;;  %v5491_v59 = vrot.slane %v5477_v2, %v10454_v20 }
0x23ef   :  { %v5320_v40 = vpop.permute.xlu0 %5319  ;;  %v5334_v62 = vsel %vm570_vm4, %v11518_v34, %v5314_v26 }
0x23f0   :  { %9564 = vmatprep.subr.bf16.mxu1 %v9563_v58  ;;  %v5335_v43 = vsel %vm656_vm8, %v5333_v46, %v5320_v40  ;;  %v5493_v17 = vcombine.high %v5491_v59, %v5491_v59 }
0x23f1   :  { %v10069_v7 = vpop.eup %10068  ;;  %9566 = vmatpush3.bf16.msra.mxu1 %v9563_v58 }
0x23f2   :  { %v10071_v6 = vpop.eup %10070  ;;  %v5221_v48 = vmul.f32 %v10069_v7, %v10065_v61  ;;  %9568 = vmatprep.subr.bf16.mxu1 %v9567_v36  ;;  %v5322_v8 = vpop.permute.xlu1 %5321 }
0x23f3   :  { %v5220_v42 = vmul.f32 %v10071_v6, %v10067_v5  ;;  %v5336_v5 = vsel %vm656_vm8, %v5334_v62, %v5322_v8 }
0x23f5   :  { %9159 = vmatprep.mubr.msk.f32.mxu1 %vm656_vm8, %v5220_v42 }
0x23f6   :  { %9160 = vmatmul.mubr.msk.f32.vlgmr.msra.gmra.mrb[40].mxu1 %vm656_vm8, %v5221_v48 }
0x23f7   :  { %9570 = vmatpush3.bf16.msra.mxu1 %v9567_v36 }
0x23f8   :  { %9572 = vmatprep.subr.bf16.mxu1 %v9571_v49 }
0x23fb   :  { %9574 = vmatpush3.bf16.msra.mxu1 %v9571_v49 }
0x24c9   :  { %v9161_v31 = vpop.f32.mrb[40].mxu1 }
0x24ca   :  { %5329 = vrot.lane.b32.xlu1 %v9161_v31, %s10299_s24  ;;  %v5300_v44 = vpop.f32.mrb[41].mxu1 }
0x24cb   :  { %5327 = vrot.lane.b32.xlu0 %v5300_v44, %s10299_s24 }
0x253c   :  { %v5330_v9 = vpop.permute.xlu1 %5329 }
0x253d   :  { %v5328_v61 = vpop.permute.xlu0 %5327  ;;  %v5338_v15 = vsel %vm1402_vm9, %v5336_v5, %v5330_v9 }
0x253e   :  { %v5337_v11 = vsel %vm1402_vm9, %v5335_v43, %v5328_v61 }
0x253f   :  { %9170 = vmatprep.mubr.msk.f32.mxu1 %vm462_vm0, %v5337_v11 }
0x2540   :  { %9171 = vmatmul.mubr.msk.f32.vlgmr.msra.gmra.mrb[42].mxu1 %vm462_vm0, %v5338_v15 }
0x2613   :  { %v9172_v37 = vpop.f32.mrb[42].mxu1 }
0x2614   :  { %v5439_v22 = vcombine.high %v9172_v37, %v9172_v37  ;;  %v5446_v34 = vrot.slane %v9172_v37, %v10454_v20  ;;  %v5411_v58 = vpop.f32.mrb[43].mxu1 }
0x2615   :  { %v5422_v7 = vcombine.high %v5411_v58, %v5411_v58  ;;  %v5429_v6 = vrot.slane %v5411_v58, %v10454_v20 }
0x2616   :  { %v5453_v42 = vrot.slane %v5439_v22, %v10454_v20  ;;  %v5454_v48 = vcombine.high %v5446_v34, %v5446_v34  ;;  %v5468_v29 = vadd.f32 %v5446_v34, %v11362_v28 }
0x2617   :  { %v5436_v60 = vrot.slane %v5422_v7, %v10454_v20  ;;  %v5437_v36 = vcombine.high %v5429_v6, %v5429_v6  ;;  %v5464_v30 = vadd.f32 %v5429_v6, %v11366_v12 }
0x2618   :  { %v5455_v49 = vcombine.high %v5453_v42, %v5453_v42  ;;  %v5469_v31 = vadd.f32 %v5454_v48, %v11358_v13  ;;  %v5470_v44 = vadd.f32 %v5453_v42, %v11364_v0  ;;  %v5502_v28 = vadd.f32 %v5484_v19, %v5468_v29 }
0x2619   :  { %v5438_v26 = vcombine.high %v5436_v60, %v5436_v60  ;;  %v5465_v8 = vadd.f32 %v5437_v36, %v11368_v56  ;;  %v5466_v40 = vadd.f32 %v5436_v60, %v11370_v54  ;;  %v5498_v43 = vadd.f32 %v5484_v19, %v5464_v30 }
0x261a   :  { %v5471_v46 = vadd.f32 %v5455_v49, %v11360_v25  ;;  %v5503_v9 = vadd.f32 %v5492_v57, %v5469_v31  ;;  %v5504_v12 = vadd.f32 %v5491_v59, %v5470_v44 }
0x261b   :  { %v5467_v62 = vadd.f32 %v5438_v26, %v11372_v18  ;;  %v5499_v61 = vadd.f32 %v5492_v57, %v5465_v8  ;;  %v5500_v13 = vadd.f32 %v5491_v59, %v5466_v40 }
0x261c   :  { %v5505_v5 = vadd.f32 %v5493_v17, %v5471_v46  ;;  %v5531_v11 = vcombine.low %v5502_v28, %v5503_v9 }
0x261d   :  { %v5501_v15 = vadd.f32 %v5493_v17, %v5467_v62  ;;  %v5514_v0 = vcombine.low %v5498_v43, %v5499_v61 }
0x261e   :  { %v5532_v55 = vcombine.low %v5504_v12, %v5505_v5  ;;  %v5539_v56 = vrot.slane %v5531_v11, %v10454_v20 }
0x261f   :  { %v5515_v2 = vcombine.low %v5500_v13, %v5501_v15  ;;  %v5522_v25 = vrot.slane %v5514_v0, %v10454_v20 }
0x2620   :  { %v5546_v54 = vrot.slane %v5532_v55, %v10454_v20 }
0x2621   :  { %v5529_v37 = vrot.slane %v5515_v2, %v10454_v20 }
0x2622   :  { %v5547_v22 = vcombine.low %v5539_v56, %v5546_v54 }
0x2623   :  { %v5530_v18 = vcombine.low %v5522_v25, %v5529_v37 }
0x2624   :  { %v5553_v19 = vsel %vm462_vm0, %v5547_v22, 0.0 }
0x2625   :  { %5554 = vadd.xlane.f32.xlu1 %v5553_v19  ;;  %v5550_v34 = vsel %vm462_vm0, %v5530_v18, 0.0 }
0x2626   :  { %5551 = vadd.xlane.f32.xlu0 %v5550_v34 }
0x26b2   :  { %v5555_v59 = vpop.xlane.xlu1 %5554 }
0x26b3   :  { %v5557_v58 = vmul.f32 0.03125, %v5555_v59  ;;  %v5552_v7 = vpop.xlane.xlu0 %5551  ;;  %v4276_v59 = vld [vmem:[#allocation8 + $0x120] sm:$0xff] }
0x26b4   :  { %v5556_v6 = vmul.f32 0.03125, %v5552_v7  ;;  %v4278_v7 = vld [vmem:[#allocation8 + $0x130] sm:$0xff] }
0x26b5   :  { %v5594_v42 = vrot.slane %v5557_v58, %v10695_v39  ;;  %v5601_v48 = vrot.slane %v5557_v58, %v10698_v63  ;;  %v5608_v29 = vrot.slane %v5557_v58, %v12088_v27  ;;  %v5615_v57 = vrot.slane %v5557_v58, %v12089_v38  ;;  %v4277_v58 = vld [vmem:[#allocation8 + $0x128] sm:$0xff] }
0x26b6   :  { %v5566_v60 = vrot.slane %v5556_v6, %v10695_v39  ;;  %v5573_v36 = vrot.slane %v5556_v6, %v10698_v63  ;;  %v5580_v30 = vrot.slane %v5556_v6, %v12088_v27  ;;  %v5587_v49 = vrot.slane %v5556_v6, %v12089_v38 }
0x26b7   :  { %v11608_v31 = vsub.f32 %v5502_v28, %v5594_v42  ;;  %v11610_v44 = vsub.f32 %v5503_v9, %v5601_v48  ;;  %v11612_v17 = vsub.f32 %v5504_v12, %v5608_v29  ;;  %v11614_v26 = vsub.f32 %v5505_v5, %v5615_v57  ;;  %v4279_v42 = vld [vmem:[#allocation8 + $0x138] sm:$0xff] }
0x26b8   :  { %v5624_v8 = vsub.f32 %v5498_v43, %v5566_v60  ;;  %v5625_v40 = vsub.f32 %v5499_v61, %v5573_v36  ;;  %v5626_v46 = vsub.f32 %v5500_v13, %v5580_v30  ;;  %v5627_v62 = vsub.f32 %v5501_v15, %v5587_v49  ;;  %v8511_v49 = vld [vmem:[#allocation10 + $0x12] ss:$0 sm:$0xff] }
0x26b9   :  { %v5636_v11 = vmul.f32 %v11608_v31, %v11608_v31  ;;  %v5637_v0 = vmul.f32 %v11610_v44, %v11610_v44  ;;  %v5638_v28 = vmul.f32 %v11612_v17, %v11612_v17  ;;  %v5639_v9 = vmul.f32 %v11614_v26, %v11614_v26 }
0x26ba   :  { %v5632_v12 = vmul.f32 %v5624_v8, %v5624_v8  ;;  %v5633_v55 = vmul.f32 %v5625_v40, %v5625_v40  ;;  %v5634_v5 = vmul.f32 %v5626_v46, %v5626_v46  ;;  %v5635_v2 = vmul.f32 %v5627_v62, %v5627_v62 }
0x26bb   :  { %v5665_v43 = vcombine.low %v5636_v11, %v5637_v0  ;;  %v5666_v61 = vcombine.low %v5638_v28, %v5639_v9  ;;  %v9575_v6 = vpack.c.bf16 %v4277_v58, %v4276_v59  ;;  %v9579_v48 = vpack.c.bf16 %v4279_v42, %v4278_v7  ;;  %v8512_v0 = vld [vmem:[#allocation10 + $0x13] ss:$0 sm:$0xff] }
0x26bc   :  { %v5648_v13 = vcombine.low %v5632_v12, %v5633_v55  ;;  %v5649_v15 = vcombine.low %v5634_v5, %v5635_v2  ;;  %v5775_v28 = vcombine.high %v8511_v49, %v8511_v49  ;;  %v5782_v9 = vrot.slane %v8511_v49, %v10454_v20 }
0x26bd   :  { %v5673_v25 = vrot.slane %v5665_v43, %v10454_v20  ;;  %v5680_v37 = vrot.slane %v5666_v61, %v10454_v20  ;;  %9576 = vmatprep.subr.bf16.mxu0 %v9575_v6  ;;  %v5809_v12 = vcombine.high %v8512_v0, %v8512_v0  ;;  %v5816_v5 = vrot.slane %v8512_v0, %v10454_v20 }
0x26be   :  { %v5656_v56 = vrot.slane %v5648_v13, %v10454_v20  ;;  %v5663_v54 = vrot.slane %v5649_v15, %v10454_v20  ;;  %9578 = vmatpush3.bf16.msra.mxu0 %v9575_v6  ;;  %v5789_v55 = vrot.slane %v5775_v28, %v10454_v20  ;;  %v5790_v43 = vcombine.high %v5782_v9, %v5782_v9 }
0x26bf   :  { %v5681_v19 = vcombine.low %v5673_v25, %v5680_v37  ;;  %9580 = vmatprep.subr.bf16.mxu0 %v9579_v48  ;;  %v5823_v61 = vrot.slane %v5809_v12, %v10454_v20  ;;  %v5824_v37 = vcombine.high %v5816_v5, %v5816_v5 }
0x26c0   :  { %v5664_v22 = vcombine.low %v5656_v56, %v5663_v54  ;;  %v5791_v25 = vcombine.high %v5789_v55, %v5789_v55 }
0x26c1   :  { %v5687_v34 = vsel %vm462_vm0, %v5681_v19, 0.0  ;;  %v5825_v58 = vcombine.high %v5823_v61, %v5823_v61 }
0x26c2   :  { %v5684_v18 = vsel %vm462_vm0, %v5664_v22, 0.0  ;;  %9582 = vmatpush3.bf16.msra.mxu0 %v9579_v48 }
0x26c3   :  { %5685 = vadd.xlane.f32.xlu0 %v5684_v18 }
0x26c7   :  { %5688 = vadd.xlane.f32.xlu0 %v5687_v34 }
0x2750   :  { %v5686_v29 = vpop.xlane.xlu0 %5685 }
0x2751   :  { %v5690_v57 = vmul.f32 0.03125, %v5686_v29 }
0x2753   :  { %v5692_v60 = vadd.f32 1e-05, %v5690_v57 }
0x2754   :  { %v5689_v36 = vpop.xlane.xlu0 %5688 }
0x2755   :  { %10072 = vrsqrt.f32 %v5692_v60  ;;  %v5691_v30 = vmul.f32 0.03125, %v5689_v36 }
0x2757   :  { %v5693_v11 = vadd.f32 1e-05, %v5691_v30 }
0x2759   :  { %10074 = vrsqrt.f32 %v5693_v11 }
0x275f   :  { %v10073_v2 = vpop.eup %10072 }
0x2760   :  { %v5704_v13 = vrot.slane %v10073_v2, %v10695_v39  ;;  %v5711_v15 = vrot.slane %v10073_v2, %v10698_v63  ;;  %v5718_v56 = vrot.slane %v10073_v2, %v12088_v27  ;;  %v5725_v54 = vrot.slane %v10073_v2, %v12089_v38 }
0x2762   :  { %v5762_v22 = vmul.f32 %v5704_v13, %v5624_v8  ;;  %v5763_v18 = vmul.f32 %v5711_v15, %v5625_v40  ;;  %v5764_v19 = vmul.f32 %v5718_v56, %v5626_v46  ;;  %v5765_v34 = vmul.f32 %v5725_v54, %v5627_v62 }
0x2763   :  { %v10075_v59 = vpop.eup %10074 }
0x2764   :  { %v5739_v7 = vrot.slane %v10075_v59, %v10698_v63  ;;  %v5753_v6 = vrot.slane %v10075_v59, %v12089_v38  ;;  %v5796_v42 = vmul.f32 %v5782_v9, %v5762_v22  ;;  %v5797_v48 = vmul.f32 %v5790_v43, %v5763_v18 }
0x2765   :  { %v5798_v29 = vmul.f32 %v5789_v55, %v5764_v19  ;;  %v5799_v57 = vmul.f32 %v5791_v25, %v5765_v34  ;;  %v5732_v60 = vrot.slane %v10075_v59, %v10695_v39  ;;  %v5746_v36 = vrot.slane %v10075_v59, %v12088_v27 }
0x2766   :  { %v5767_v30 = vmul.f32 %v5739_v7, %v11610_v44  ;;  %v5769_v8 = vmul.f32 %v5753_v6, %v11614_v26  ;;  %v11644_v40 = vadd.f32 %v5816_v5, %v5796_v42  ;;  %v11646_v46 = vadd.f32 %v5824_v37, %v5797_v48 }
0x2767   :  { %v11648_v62 = vadd.f32 %v5823_v61, %v5798_v29  ;;  %v11650_v49 = vadd.f32 %v5825_v58, %v5799_v57  ;;  %v5766_v11 = vmul.f32 %v5732_v60, %v11608_v31  ;;  %v5768_v0 = vmul.f32 %v5746_v36, %v11612_v17 }
0x2768   :  { %v5801_v28 = vmul.f32 %v5790_v43, %v5767_v30  ;;  %v5803_v12 = vmul.f32 %v5791_v25, %v5769_v8  ;;  %v5838_v2 = vadd.f32 %v11405_v10, %v11644_v40  ;;  %v5839_v44 = vadd.f32 %v11412_v47, %v11646_v46 }
0x2769   :  { %v5840_v26 = vadd.f32 %v11419_v51, %v11648_v62  ;;  %v5841_v13 = vadd.f32 %v11426_v1, %v11650_v49  ;;  %v5800_v15 = vmul.f32 %v5782_v9, %v5766_v11  ;;  %v5802_v56 = vmul.f32 %v5789_v55, %v5768_v0 }
0x276a   :  { %v11662_v54 = vadd.f32 %v5824_v37, %v5801_v28  ;;  %v11664_v31 = vadd.f32 %v5825_v58, %v5803_v12  ;;  %v5854_v17 = vcombine.low %v5838_v2, %v5839_v44 }
0x276b   :  { %v5855_v43 = vcombine.low %v5840_v26, %v5841_v13  ;;  %v11666_v25 = vadd.f32 %v5816_v5, %v5800_v15  ;;  %v11668_v10 = vadd.f32 %v5823_v61, %v5802_v56 }
0x276c   :  { %v5862_v47 = vrot.slane %v5854_v17, %v10454_v20  ;;  %v5843_v51 = vadd.f32 %v11384_v23, %v11662_v54  ;;  %v5845_v1 = vadd.f32 %v11398_v45, %v11664_v31 }
0x276d   :  { %v5869_v9 = vrot.slane %v5855_v43, %v10454_v20  ;;  %v5842_v55 = vadd.f32 %v11377_v35, %v11666_v25  ;;  %v5844_v37 = vadd.f32 %v11391_v24, %v11668_v10 }
0x276f   :  { %v5870_v5 = vcombine.low %v5862_v47, %v5869_v9  ;;  %v5871_v22 = vcombine.low %v5842_v55, %v5843_v51  ;;  %v5872_v61 = vcombine.low %v5844_v37, %v5845_v1 }
0x2771   :  { %9181 = vmatprep.mubr.msk.f32.mxu0 %vm462_vm0, %v5870_v5  ;;  %v5879_v18 = vrot.slane %v5871_v22, %v10454_v20  ;;  %v5886_v23 = vrot.slane %v5872_v61, %v10454_v20 }
0x2773   :  { %v5887_v19 = vcombine.low %v5879_v18, %v5886_v23 }
0x2775   :  { %9182 = vmatmul.mubr.msk.f32.vlgmr.msra.gmra.mrb[36].mxu0 %vm462_vm0, %v5887_v19 }
0x2776   :  { %9184 = vmatprep.mubr.msk.f32.mxu0 %vm462_vm0, %v10949_v14  ;;  %v11700_v14 = vld [vmem:[#allocation10 + $0xe] ss:$0 sm:$0xff] }
0x2779   :  { %9185 = vmatmul.mubr.msk.f32.gmra.mrb[38].mxu0 %vm462_vm0, %v10954_v3 }
0x277a   :  { %9187 = vmatprep.mubr.msk.f32.mxu0 %vm462_vm0, %v10960_v41 }
0x277d   :  { %9188 = vmatmul.mubr.msk.f32.gmra.mrb[40].mxu0 %vm462_vm0, %v10964_v50 }
0x277e   :  { %9190 = vmatprep.mubr.msk.f32.mxu0 %vm462_vm0, %v11024_v32 }
0x2781   :  { %9191 = vmatmul.mubr.msk.f32.gmra.mrb[42].mxu0 %vm462_vm0, %v11026_v4 }
0x2782   :  { %9193 = vmatprep.mubr.msk.f32.mxu0 %vm462_vm0, %v11028_v21 }
0x2785   :  { %9194 = vmatmul.mubr.msk.f32.gmra.mrb[44].mxu0 %vm462_vm0, %v11034_v33 }
0x2848   :  { %v9183_v3 = vpop.f32.mrb[36].mxu0 }
0x2849   :  { %v5958_v35 = vpop.f32.mrb[37].mxu0  ;;  %v11726_v7 = vadd.f32 %v9183_v3, %v11700_v14 }
0x284a   :  { %v11703_v41 = vadd.f32 %v11700_v14, %v5958_v35 }
0x284c   :  { %v9186_v50 = vpop.f32.mrb[38].mxu0  ;;  %9204 = vmatprep.mubr.msk.f32.mxu1 %vm570_vm4, %v11703_v41 }
0x284d   :  { %v6014_v32 = vadd.f32 %v9186_v50, %v11700_v14  ;;  %v5968_v4 = vpop.f32.mrb[39].mxu0 }
0x284e   :  { %v6013_v24 = vadd.f32 %v11700_v14, %v5968_v4 }
0x2850   :  { %v9189_v21 = vpop.f32.mrb[40].mxu0  ;;  %v11709_v45 = vpack.i.bf16 %v6014_v32, %v6013_v24 }
0x2851   :  { %v6016_v33 = vadd.f32 %v9189_v21, %v11700_v14  ;;  %v5978_v34 = vpop.f32.mrb[41].mxu0 }
0x2852   :  { %v6015_v59 = vadd.f32 %v11700_v14, %v5978_v34  ;;  %9885 = vrot.lane.b32.xlu1 %v11709_v45, %s10287_s29 }
0x2854   :  { %v11715_v58 = vpack.i.bf16 %v6016_v33, %v6015_v59  ;;  %v9192_v56 = vpop.f32.mrb[42].mxu0 }
0x2855   :  { %v5988_v17 = vpop.f32.mrb[43].mxu0  ;;  %v6018_v37 = vadd.f32 %v9192_v56, %v11700_v14 }
0x2856   :  { %9895 = vrot.lane.b32.xlu1 %v11709_v45, %s10289_s7  ;;  %9890 = vrot.lane.b32.xlu0 %v11715_v58, %s10287_s29  ;;  %v6017_v5 = vadd.f32 %v11700_v14, %v5988_v17 }
0x2858   :  { %v11758_v61 = vpack.i.bf16 %v6018_v37, %v6017_v5  ;;  %v9195_v50 = vpop.f32.mrb[44].mxu0 }
0x2859   :  { %v6020_v32 = vadd.f32 %v9195_v50, %v11700_v14  ;;  %v5998_v4 = vpop.f32.mrb[45].mxu0 }
0x285a   :  { %9900 = vrot.lane.b32.xlu1 %v11715_v58, %s10289_s7  ;;  %6243 = vrot.lane.b32.xlu0 %v11703_v41, %s10290_s8  ;;  %v6019_v24 = vadd.f32 %v11700_v14, %v5998_v4 }
0x285c   :  { %v11772_v21 = vpack.i.bf16 %v6020_v32, %v6019_v24 }
0x285e   :  { %6245 = vrot.lane.b32.xlu1 %v11726_v7, %s10290_s8 }
0x28c4   :  { %v9886_v6 = vpop.permute.xlu1 %9885 }
0x28c5   :  { %v9888_v42 = vunpack.i.h.bf16 %v9886_v6  ;;  %v9887_v48 = vunpack.i.l.bf16 %v9886_v6 }
0x28c7   :  { %v9583_v29 = vpack.c.bf16 %v9888_v42, %v9887_v48 }
0x28c8   :  { %v9891_v57 = vpop.permute.xlu0 %9890  ;;  %v9896_v30 = vpop.permute.xlu1 %9895 }
0x28c9   :  { %v9893_v60 = vunpack.i.h.bf16 %v9891_v57  ;;  %v9892_v36 = vunpack.i.l.bf16 %v9891_v57  ;;  %9585 = vmatprep.subr.msk.bf16.mxu1 %vm10542_vm5, %v9583_v29  ;;  %v9898_v11 = vunpack.i.h.bf16 %v9896_v30  ;;  %v9897_v0 = vunpack.i.l.bf16 %v9896_v30 }
0x28ca   :  { %9588 = vmatpush3.bf16.xpose.msk.msra.mxu1 %vm10542_vm5, %v9583_v29 }
0x28cb   :  { %v9589_v8 = vpack.c.bf16 %v9893_v60, %v9892_v36  ;;  %v9603_v28 = vpack.c.bf16 %v9898_v11, %v9897_v0 }
0x28cc   :  { %v9901_v12 = vpop.permute.xlu1 %9900  ;;  %v6244_v13 = vpop.permute.xlu0 %6243 }
0x28cd   :  { %9591 = vmatprep.subr.msk.bf16.mxu1 %vm10542_vm5, %v9589_v8  ;;  %v9903_v2 = vunpack.i.h.bf16 %v9901_v12  ;;  %v9902_v44 = vunpack.i.l.bf16 %v9901_v12 }
0x28cf   :  { %v9609_v26 = vpack.c.bf16 %v9903_v2, %v9902_v44 }
0x28d0   :  { %v6246_v15 = vpop.permute.xlu1 %6245 }
0x28d2   :  { %9594 = vmatpush3.bf16.xpose.msk.msra.mxu1 %vm10542_vm5, %v9589_v8 }
0x28d3   :  { %9605 = vmatprep.subr.msk.bf16.mxu1 %vm10542_vm5, %v9603_v28 }
0x28d9   :  { %9205 = vmatmul.mubr.msk.f32.vlgmr.msra.gmra.mrb[44].mxu1 %vm570_vm4, %v11726_v7 }
0x28da   :  { %9608 = vmatpush3.bf16.xpose.msk.msra.mxu1 %vm10542_vm5, %v9603_v28  ;;  %9226 = vmatprep.mubr.msk.f32.mxu1 %vm570_vm4, %v6244_v13 }
0x28db   :  { %9611 = vmatprep.subr.msk.bf16.mxu1 %vm10542_vm5, %v9609_v26 }
0x28e2   :  { %9614 = vmatpush3.bf16.xpose.msk.msra.mxu1 %vm10542_vm5, %v9609_v26 }
0x28e9   :  { %9227 = vmatmul.mubr.msk.f32.vlgmr.msra.gmra.mrb[46].mxu1 %vm570_vm4, %v6246_v15 }
0x29ac   :  { %v9206_v43 = vpop.f32.mrb[44].mxu1 }
0x29ad   :  { %v6123_v47 = vsel %vm329_vm10, %v9206_v43, -1e+30  ;;  %v6113_v51 = vpop.f32.mrb[45].mxu1 }
0x29ae   :  { %v6127_v1 = vsel %vm462_vm0, %v6123_v47, -inf  ;;  %v6122_v9 = vsel %vm328_vm11, %v6113_v51, -1e+30 }
0x29af   :  { %v6124_v55 = vsel %vm462_vm0, %v6122_v9, -inf  ;;  %6128 = vmax.xlane.f32.xlu1 %v6127_v1 }
0x29b0   :  { %6125 = vmax.xlane.f32.xlu0 %v6124_v55 }
0x29bc   :  { %v9228_v22 = vpop.f32.mrb[46].mxu1 }
0x29bd   :  { %v6333_v18 = vpop.f32.mrb[47].mxu1  ;;  %v6343_v3 = vsel %vm329_vm10, %v9228_v22, -1e+30 }
0x29be   :  { %v6342_v23 = vsel %vm328_vm11, %v6333_v18, -1e+30  ;;  %v6347_v35 = vsel %vm462_vm0, %v6343_v3, -inf }
0x29bf   :  { %v6344_v19 = vsel %vm462_vm0, %v6342_v23, -inf }
0x29c0   :  { %6345 = vmax.xlane.f32.xlu0 %v6344_v19  ;;  %9905 = vrot.lane.b32.xlu1 %v11758_v61, %s10288_s30 }
0x29c4   :  { %6348 = vmax.xlane.f32.xlu0 %v6347_v35  ;;  %9915 = vrot.lane.b32.xlu1 %v11758_v61, %s10291_s11 }
0x2a3c   :  { %v6129_v33 = vpop.xlane.xlu1 %6128 }
0x2a3d   :  { %v6131_v34 = vsub.f32 %v6123_v47, %v6129_v33  ;;  %v6126_v59 = vpop.xlane.xlu0 %6125 }
0x2a3e   :  { %v6130_v6 = vsub.f32 %v6122_v9, %v6126_v59 }
0x2a3f   :  { %v6134_v42 = vmul.f32 1.442695, %v6131_v34 }
0x2a40   :  { %v6132_v48 = vmul.f32 1.442695, %v6130_v6  ;;  %v9906_v29 = vpop.permute.xlu1 %9905 }
0x2a41   :  { %10076 = vpow2.f32 %v6134_v42  ;;  %v9908_v57 = vunpack.i.h.bf16 %v9906_v29  ;;  %v9907_v60 = vunpack.i.l.bf16 %v9906_v29 }
0x2a42   :  { %10078 = vpow2.f32 %v6132_v48 }
0x2a43   :  { %v9595_v36 = vpack.c.bf16 %v9908_v57, %v9907_v60 }
0x2a44   :  { %v9916_v43 = vpop.permute.xlu1 %9915 }
0x2a45   :  { %9596 = vmatprep.subr.bf16.mxu0 %v9595_v36  ;;  %v9918_v9 = vunpack.i.h.bf16 %v9916_v43  ;;  %v9917_v55 = vunpack.i.l.bf16 %v9916_v43 }
0x2a46   :  { %9598 = vmatpush3.bf16.msra.mxu0 %v9595_v36 }
0x2a47   :  { %v9615_v18 = vpack.c.bf16 %v9918_v9, %v9917_v55 }
0x2a4b   :  { %v10077_v30 = vpop.eup %10076 }
0x2a4c   :  { %v10079_v8 = vpop.eup %10078  ;;  %v6139_v14 = vsel %vm462_vm0, %v10077_v30, 0.0 }
0x2a4d   :  { %6140 = vadd.xlane.f32.xlu0 %v6139_v14  ;;  %v6136_v11 = vsel %vm462_vm0, %v10079_v8, 0.0  ;;  %v6346_v0 = vpop.xlane.xlu0 %6345 }
0x2a4e   :  { %6137 = vadd.xlane.f32.xlu1 %v6136_v11  ;;  %v6350_v2 = vsub.f32 %v6342_v23, %v6346_v0 }
0x2a50   :  { %v6352_v26 = vmul.f32 1.442695, %v6350_v2 }
0x2a51   :  { %v6349_v28 = vpop.xlane.xlu0 %6348 }
0x2a52   :  { %v6351_v12 = vsub.f32 %v6343_v3, %v6349_v28 }
0x2a54   :  { %v6354_v44 = vmul.f32 1.442695, %v6351_v12 }
0x2a56   :  { %10080 = vpow2.f32 %v6354_v44 }
0x2a57   :  { %10082 = vpow2.f32 %v6352_v26 }
0x2a5f   :  { %9920 = vrot.lane.b32.xlu1 %v11772_v21, %s10291_s11 }
0x2a60   :  { %v10081_v13 = vpop.eup %10080 }
0x2a61   :  { %v10083_v15 = vpop.eup %10082  ;;  %v6359_v56 = vsel %vm462_vm0, %v10081_v13, 0.0 }
0x2a62   :  { %v6356_v17 = vsel %vm462_vm0, %v10083_v15, 0.0 }
0x2a63   :  { %9910 = vrot.lane.b32.xlu0 %v11772_v21, %s10288_s30 }
0x2a82   :  { %6360 = vadd.xlane.f32.xlu0 %v6359_v56 }
0x2a83   :  { %6357 = vadd.xlane.f32.xlu1 %v6356_v17 }
0x2a94   :  { %9930 = vrot.lane.b32.xlu1 %v11715_v58, %s10292_s12 }
0x2a98   :  { %6461 = vrot.lane.b32.xlu1 %v11726_v7, %s10293_s13  ;;  %9925 = vrot.lane.b32.xlu0 %v11709_v45, %s10292_s12 }
0x2a9c   :  { %6459 = vrot.lane.b32.xlu0 %v11703_v41, %s10293_s13 }
0x2ada   :  { %v6141_v47 = vpop.xlane.xlu0 %6140 }
0x2adb   :  { %10084 = vrcp.f32 %v6141_v47  ;;  %v6138_v51 = vpop.xlane.xlu1 %6137 }
0x2adc   :  { %10086 = vrcp.f32 %v6138_v51 }
0x2ade   :  { %v9911_v1 = vpop.permute.xlu0 %9910 }
0x2adf   :  { %v9913_v37 = vunpack.i.h.bf16 %v9911_v1  ;;  %v9912_v5 = vunpack.i.l.bf16 %v9911_v1  ;;  %v9921_v23 = vpop.permute.xlu1 %9920 }
0x2ae0   :  { %v9923_v35 = vunpack.i.h.bf16 %v9921_v23  ;;  %v9922_v50 = vunpack.i.l.bf16 %v9921_v23 }
0x2ae1   :  { %v9599_v22 = vpack.c.bf16 %v9913_v37, %v9912_v5 }
0x2ae2   :  { %v9619_v24 = vpack.c.bf16 %v9923_v35, %v9922_v50 }
0x2ae3   :  { %9600 = vmatprep.subr.bf16.mxu0 %v9599_v22 }
0x2ae4   :  { %9602 = vmatpush3.bf16.msra.mxu0 %v9599_v22 }
0x2ae5   :  { %v10085_v19 = vpop.eup %10084  ;;  %9616 = vmatprep.subr.bf16.mxu0 %v9615_v18 }
0x2ae6   :  { %v10087_v3 = vpop.eup %10086  ;;  %v6145_v4 = vmul.f32 %v10085_v19, %v10077_v30 }
0x2ae7   :  { %v6144_v32 = vmul.f32 %v10087_v3, %v10079_v8 }
0x2ae9   :  { %9215 = vmatprep.mubr.msk.f32.mxu0 %vm462_vm0, %v6144_v32 }
0x2aea   :  { %9216 = vmatmul.mubr.msk.f32.vlgmr.msra.gmra.mrb[46].mxu0 %vm462_vm0, %v6145_v4 }
0x2aeb   :  { %9618 = vmatpush3.bf16.msra.mxu0 %v9615_v18 }
0x2aec   :  { %9620 = vmatprep.subr.bf16.mxu0 %v9619_v24 }
0x2aef   :  { %9622 = vmatpush3.bf16.msra.mxu0 %v9619_v24 }
0x2b0f   :  { %v6361_v33 = vpop.xlane.xlu0 %6360 }
0x2b10   :  { %10088 = vrcp.f32 %v6361_v33  ;;  %v6358_v34 = vpop.xlane.xlu1 %6357 }
0x2b11   :  { %10090 = vrcp.f32 %v6358_v34 }
0x2b13   :  { %v9926_v59 = vpop.permute.xlu0 %9925 }
0x2b14   :  { %v9928_v6 = vunpack.i.h.bf16 %v9926_v59  ;;  %v9927_v42 = vunpack.i.l.bf16 %v9926_v59  ;;  %v9931_v29 = vpop.permute.xlu1 %9930 }
0x2b15   :  { %v9933_v36 = vunpack.i.h.bf16 %v9931_v29  ;;  %v9932_v30 = vunpack.i.l.bf16 %v9931_v29 }
0x2b16   :  { %v9623_v48 = vpack.c.bf16 %v9928_v6, %v9927_v42 }
0x2b17   :  { %v9629_v11 = vpack.c.bf16 %v9933_v36, %v9932_v30  ;;  %v6460_v0 = vpop.permute.xlu0 %6459 }
0x2b18   :  { %9625 = vmatprep.subr.msk.bf16.mxu0 %vm10542_vm5, %v9623_v48  ;;  %v6462_v28 = vpop.permute.xlu1 %6461 }
0x2b1a   :  { %v10089_v57 = vpop.eup %10088 }
0x2b1b   :  { %v10091_v60 = vpop.eup %10090  ;;  %v6365_v14 = vmul.f32 %v10089_v57, %v10081_v13 }
0x2b1c   :  { %v6364_v8 = vmul.f32 %v10091_v60, %v10083_v15 }
0x2b1e   :  { %9237 = vmatprep.mubr.msk.f32.mxu0 %vm462_vm0, %v6364_v8 }
0x2b1f   :  { %9238 = vmatmul.mubr.msk.f32.vlgmr.msra.gmra.mrb[48].mxu0 %vm462_vm0, %v6365_v14 }
0x2b20   :  { %9628 = vmatpush3.bf16.xpose.msk.msra.mxu0 %vm10542_vm5, %v9623_v48  ;;  %9248 = vmatprep.mubr.msk.f32.mxu0 %vm570_vm4, %v6460_v0 }
0x2b21   :  { %9631 = vmatprep.subr.msk.bf16.mxu0 %vm10542_vm5, %v9629_v11 }
0x2b28   :  { %9634 = vmatpush3.bf16.xpose.msk.msra.mxu0 %vm10542_vm5, %v9629_v11 }
0x2b2f   :  { %9249 = vmatmul.mubr.msk.f32.vlgmr.msra.gmra.mrb[50].mxu0 %vm570_vm4, %v6462_v28 }
0x2bbd   :  { %v11804_v12 = vpop.f32.mrb[46].mxu0 }
0x2bbe   :  { %v11806_v2 = vpop.f32.mrb[47].mxu0 }
0x2bf2   :  { %v11808_v44 = vpop.f32.mrb[48].mxu0 }
0x2bf3   :  { %v11810_v26 = vpop.f32.mrb[49].mxu0 }
0x2c02   :  { %v9250_v13 = vpop.f32.mrb[50].mxu0 }
0x2c03   :  { %v6559_v15 = vsel %vm329_vm10, %v9250_v13, -1e+30  ;;  %v6549_v56 = vpop.f32.mrb[51].mxu0 }
0x2c04   :  { %v6563_v17 = vsel %vm462_vm0, %v6559_v15, -inf  ;;  %v6558_v43 = vsel %vm328_vm11, %v6549_v56, -1e+30 }
0x2c05   :  { %v6560_v47 = vsel %vm462_vm0, %v6558_v43, -inf  ;;  %6564 = vmax.xlane.f32.xlu1 %v6563_v17 }
0x2c06   :  { %6561 = vmax.xlane.f32.xlu0 %v6560_v47 }
0x2c16   :  { %9935 = vrot.lane.b32.xlu1 %v11758_v61, %s10296_s28 }
0x2c1a   :  { %9945 = vrot.lane.b32.xlu1 %v11709_v45, %s10294_s4 }
0x2c1e   :  { %9950 = vrot.lane.b32.xlu1 %v11715_v58, %s10294_s4 }
0x2c22   :  { %6677 = vrot.lane.b32.xlu1 %v11726_v7, %s10295_s2 }
0x2c92   :  { %v6565_v51 = vpop.xlane.xlu1 %6564 }
0x2c93   :  { %v6567_v1 = vsub.f32 %v6559_v15, %v6565_v51  ;;  %v6562_v9 = vpop.xlane.xlu0 %6561 }
0x2c94   :  { %v6566_v55 = vsub.f32 %v6558_v43, %v6562_v9 }
0x2c95   :  { %v6570_v37 = vmul.f32 1.442695, %v6567_v1 }
0x2c96   :  { %v6568_v5 = vmul.f32 1.442695, %v6566_v55  ;;  %v9936_v22 = vpop.permute.xlu1 %9935 }
0x2c97   :  { %10092 = vpow2.f32 %v6570_v37  ;;  %v9938_v18 = vunpack.i.h.bf16 %v9936_v22  ;;  %v9937_v23 = vunpack.i.l.bf16 %v9936_v22 }
0x2c98   :  { %10094 = vpow2.f32 %v6568_v5 }
0x2c99   :  { %v9635_v19 = vpack.c.bf16 %v9938_v18, %v9937_v23 }
0x2c9a   :  { %v9946_v32 = vpop.permute.xlu1 %9945 }
0x2c9b   :  { %9636 = vmatprep.subr.bf16.mxu1 %v9635_v19  ;;  %v9948_v24 = vunpack.i.h.bf16 %v9946_v32  ;;  %v9947_v33 = vunpack.i.l.bf16 %v9946_v32 }
0x2c9c   :  { %9638 = vmatpush3.bf16.msra.mxu1 %v9635_v19 }
0x2c9d   :  { %v9643_v42 = vpack.c.bf16 %v9948_v24, %v9947_v33  ;;  %v4281_v24 = vld [vmem:[#allocation8 + $0x148] sm:$0xff]  ;;  %v4282_v33 = vld [vmem:[#allocation8 + $0x150] sm:$0xff] }
0x2c9e   :  { %v9951_v57 = vpop.permute.xlu1 %9950 }
0x2c9f   :  { %v9953_v36 = vunpack.i.h.bf16 %v9951_v57  ;;  %v9952_v30 = vunpack.i.l.bf16 %v9951_v57 }
0x2ca1   :  { %v10093_v45 = vpop.eup %10092  ;;  %v9649_v14 = vpack.c.bf16 %v9953_v36, %v9952_v30 }
0x2ca2   :  { %v6575_v58 = vsel %vm462_vm0, %v10093_v45, 0.0  ;;  %v10095_v3 = vpop.eup %10094  ;;  %v6678_v11 = vpop.permute.xlu1 %6677 }
0x2ca3   :  { %6576 = vadd.xlane.f32.xlu0 %v6575_v58  ;;  %v6572_v7 = vsel %vm462_vm0, %v10095_v3, 0.0 }
0x2ca7   :  { %6573 = vadd.xlane.f32.xlu0 %v6572_v7 }
0x2cbd   :  { %9940 = vrot.lane.b32.xlu0 %v11772_v21, %s10296_s28 }
0x2cc1   :  { %6675 = vrot.lane.b32.xlu0 %v11703_v41, %s10295_s2 }
0x2d30   :  { %v6577_v35 = vpop.xlane.xlu0 %6576 }
0x2d31   :  { %10096 = vrcp.f32 %v6577_v35 }
0x2d34   :  { %v6574_v50 = vpop.xlane.xlu0 %6573 }
0x2d35   :  { %10098 = vrcp.f32 %v6574_v50 }
0x2d38   :  { %v9941_v4 = vpop.permute.xlu0 %9940 }
0x2d39   :  { %v9943_v34 = vunpack.i.h.bf16 %v9941_v4  ;;  %v9942_v59 = vunpack.i.l.bf16 %v9941_v4 }
0x2d3b   :  { %v9639_v6 = vpack.c.bf16 %v9943_v34, %v9942_v59  ;;  %v10097_v48 = vpop.eup %10096  ;;  %v4283_v59 = vld [vmem:[#allocation8 + $0x158] sm:$0xff] }
0x2d3c   :  { %v6581_v60 = vmul.f32 %v10097_v48, %v10093_v45  ;;  %v6676_v8 = vpop.permute.xlu0 %6675 }
0x2d3d   :  { %9640 = vmatprep.subr.bf16.mxu1 %v9639_v6 }
0x2d3e   :  { %9642 = vmatpush3.bf16.msra.mxu1 %v9639_v6  ;;  %v9667_v6 = vpack.c.bf16 %v4283_v59, %v4282_v33 }
0x2d3f   :  { %v10099_v29 = vpop.eup %10098  ;;  %9645 = vmatprep.subr.msk.bf16.mxu1 %vm10542_vm5, %v9643_v42 }
0x2d40   :  { %v6580_v41 = vmul.f32 %v10099_v29, %v10095_v3 }
0x2d42   :  { %9259 = vmatprep.mubr.msk.f32.mxu1 %vm462_vm0, %v6580_v41 }
0x2d43   :  { %9260 = vmatmul.mubr.msk.f32.vlgmr.msra.gmra.mrb[48].mxu1 %vm462_vm0, %v6581_v60 }
0x2d44   :  { %9270 = vmatprep.mubr.msk.f32.mxu1 %vm570_vm4, %v6676_v8 }
0x2d47   :  { %9648 = vmatpush3.bf16.xpose.msk.msra.mxu1 %vm10542_vm5, %v9643_v42 }
0x2d48   :  { %9651 = vmatprep.subr.msk.bf16.mxu1 %vm10542_vm5, %v9649_v14 }
0x2d4f   :  { %9654 = vmatpush3.bf16.xpose.msk.msra.mxu1 %vm10542_vm5, %v9649_v14 }
0x2d56   :  { %9271 = vmatmul.mubr.msk.f32.vlgmr.msra.gmra.mrb[50].mxu1 %vm570_vm4, %v6678_v11 }
0x2e16   :  { %v9261_v0 = vpop.f32.mrb[48].mxu1 }
0x2e17   :  { %v6666_v28 = vpop.f32.mrb[49].mxu1 }
0x2e29   :  { %v9272_v13 = vpop.f32.mrb[50].mxu1 }
0x2e2a   :  { %v6775_v15 = vsel %vm329_vm10, %v9272_v13, -1e+30  ;;  %v6765_v56 = vpop.f32.mrb[51].mxu1 }
0x2e2b   :  { %v6779_v17 = vsel %vm462_vm0, %v6775_v15, -inf  ;;  %v6774_v43 = vsel %vm328_vm11, %v6765_v56, -1e+30 }
0x2e2c   :  { %v6776_v47 = vsel %vm462_vm0, %v6774_v43, -inf  ;;  %6780 = vmax.xlane.f32.xlu1 %v6779_v17 }
0x2e2d   :  { %6777 = vmax.xlane.f32.xlu0 %v6776_v47 }
0x2e3d   :  { %9955 = vrot.lane.b32.xlu1 %v11758_v61, %s10297_s5 }
0x2e41   :  { %6893 = vrot.lane.b32.xlu1 %v11810_v26, %s10281_s21 }
0x2e45   :  { %6895 = vrot.lane.b32.xlu1 %v11808_v44, %s10281_s21  ;;  %s8364_s21 = sshll.u32 %s10304_s3, 4  ;;  %s8365_s21 = int_to_ptr.vmem [resolvable:$true] %s8364_s21 }
0x2e46   :  { %s10246_s29 = scalar_lea.vmem %s8365_s21, 256  ;;  %p10251_p13 = scmp.lt.s32.totalorder %s8365_s21, %s8365_s21 }
0x2e47   :  { %p10247_p12 = scmp.ne.s32.totalorder %s8365_s21, %s10246_s29  ;;  %p10252_p0 = scmp.lt.s32.totalorder %s10246_s29, %s10246_s29 }
0x2e49   :  { %6903 = vrot.lane.b32.xlu1 %v9261_v0, %s10298_s1  ;;  %p10253_p1 = por %p10252_p0, %p10251_p13 }
0x2e4b   :  { %p10254_p2 = pnand %p10253_p1, %p10247_p12 }
0x2eb9   :  { %v6781_v16 = vpop.xlane.xlu1 %6780 }
0x2eba   :  { %v6783_v52 = vsub.f32 %v6775_v15, %v6781_v16  ;;  %v6778_v51 = vpop.xlane.xlu0 %6777  ;;  %v8558_v15 = vld [vmem:[#allocation10 + $0xf] ss:$0 sm:$0xff] }
0x2ebb   :  { %v6782_v53 = vsub.f32 %v6774_v43, %v6778_v51  ;;  %v7059_v56 = vcombine.high %v8558_v15, %v8558_v15 }
0x2ebc   :  { %v6786_v1 = vmul.f32 1.442695, %v6783_v52 }
0x2ebd   :  { %v6784_v9 = vmul.f32 1.442695, %v6782_v53  ;;  %v9956_v55 = vpop.permute.xlu1 %9955  ;;  %v7073_v47 = vrot.slane %v7059_v56, %v10454_v20 }
0x2ebe   :  { %10100 = vpow2.f32 %v6786_v1  ;;  %v9958_v37 = vunpack.i.h.bf16 %v9956_v55  ;;  %v9957_v5 = vunpack.i.l.bf16 %v9956_v55 }
0x2ebf   :  { %10102 = vpow2.f32 %v6784_v9 }
0x2ec0   :  { %v9655_v61 = vpack.c.bf16 %v9958_v37, %v9957_v5 }
0x2ec1   :  { %v6894_v29 = vpop.permute.xlu1 %6893 }
0x2ec2   :  { %9656 = vmatprep.subr.bf16.mxu0 %v9655_v61  ;;  %v6915_v36 = vsel %vm570_vm4, %v11806_v2, %v6894_v29  ;;  %v7066_v2 = vrot.slane %v8558_v15, %v10454_v20 }
0x2ec3   :  { %9658 = vmatpush3.bf16.msra.mxu0 %v9655_v61 }
0x2ec4   :  { %v7074_v55 = vcombine.high %v7066_v2, %v7066_v2 }
0x2ec5   :  { %v6896_v57 = vpop.permute.xlu1 %6895 }
0x2ec6   :  { %v6916_v8 = vsel %vm570_vm4, %v11804_v12, %v6896_v57 }
0x2ec8   :  { %v10101_v26 = vpop.eup %10100 }
0x2ec9   :  { %v6791_v22 = vsel %vm462_vm0, %v10101_v26, 0.0  ;;  %v10103_v44 = vpop.eup %10102  ;;  %v6904_v41 = vpop.permute.xlu1 %6903 }
0x2eca   :  { %6792 = vadd.xlane.f32.xlu0 %v6791_v22  ;;  %v6788_v18 = vsel %vm462_vm0, %v10103_v44, 0.0  ;;  %v6918_v0 = vsel %vm656_vm8, %v6916_v8, %v6904_v41 }
0x2ece   :  { %6789 = vadd.xlane.f32.xlu0 %v6788_v18  ;;  %v7075_v18 = vcombine.high %v7073_v47, %v7073_v47 }
0x2ee4   :  { %9960 = vrot.lane.b32.xlu0 %v11772_v21, %s10297_s5  ;;  %v4280_v21 = vld [vmem:[#allocation8 + $0x140] sm:$0xff] }
0x2ee5   :  { %v9663_v34 = vpack.c.bf16 %v4281_v24, %v4280_v21 }
0x2ee8   :  { %6901 = vrot.lane.b32.xlu0 %v6666_v28, %s10298_s1 }
0x2f57   :  { %v6793_v23 = vpop.xlane.xlu0 %6792 }
0x2f58   :  { %10104 = vrcp.f32 %v6793_v23 }
0x2f5b   :  { %v6790_v19 = vpop.xlane.xlu0 %6789 }
0x2f5c   :  { %10106 = vrcp.f32 %v6790_v19 }
0x2f5f   :  { %v9961_v45 = vpop.permute.xlu0 %9960 }
0x2f60   :  { %v9963_v58 = vunpack.i.h.bf16 %v9961_v45  ;;  %v9962_v3 = vunpack.i.l.bf16 %v9961_v45 }
0x2f62   :  { %v9659_v7 = vpack.c.bf16 %v9963_v58, %v9962_v3  ;;  %v10105_v35 = vpop.eup %10104 }
0x2f63   :  { %v6797_v4 = vmul.f32 %v10105_v35, %v10101_v26  ;;  %v6902_v60 = vpop.permute.xlu0 %6901 }
0x2f64   :  { %9660 = vmatprep.subr.bf16.mxu0 %v9659_v7  ;;  %v6917_v14 = vsel %vm656_vm8, %v6915_v36, %v6902_v60 }
0x2f65   :  { %9662 = vmatpush3.bf16.msra.mxu0 %v9659_v7 }
0x2f66   :  { %v10107_v50 = vpop.eup %10106  ;;  %9664 = vmatprep.subr.bf16.mxu0 %v9663_v34 }
0x2f67   :  { %v6796_v32 = vmul.f32 %v10107_v50, %v10103_v44 }
0x2f69   :  { %9281 = vmatprep.mubr.msk.f32.mxu0 %vm462_vm0, %v6796_v32 }
0x2f6a   :  { %9282 = vmatmul.mubr.msk.f32.vlgmr.msra.gmra.mrb[52].mxu0 %vm462_vm0, %v6797_v4 }
0x2f6b   :  { %9666 = vmatpush3.bf16.msra.mxu0 %v9663_v34 }
0x2f6c   :  { %9668 = vmatprep.subr.bf16.mxu0 %v9667_v6 }
0x2f6f   :  { %9670 = vmatpush3.bf16.msra.mxu0 %v9667_v6 }
0x303d   :  { %v9283_v42 = vpop.f32.mrb[52].mxu0 }
0x303e   :  { %6911 = vrot.lane.b32.xlu1 %v9283_v42, %s10299_s24  ;;  %v6882_v48 = vpop.f32.mrb[53].mxu0 }
0x303f   :  { %6909 = vrot.lane.b32.xlu0 %v6882_v48, %s10299_s24 }
0x30b0   :  { %v6912_v30 = vpop.permute.xlu1 %6911 }
0x30b1   :  { %v6910_v11 = vpop.permute.xlu0 %6909  ;;  %v6920_v13 = vsel %vm1402_vm9, %v6918_v0, %v6912_v30 }
0x30b2   :  { %v6919_v28 = vsel %vm1402_vm9, %v6917_v14, %v6910_v11 }
0x30b3   :  { %9292 = vmatprep.mubr.msk.f32.mxu0 %vm462_vm0, %v6919_v28 }
0x30b4   :  { %9293 = vmatmul.mubr.msk.f32.vlgmr.msra.gmra.mrb[54].mxu0 %vm462_vm0, %v6920_v13 }
0x3187   :  { %v9294_v17 = vpop.f32.mrb[54].mxu0 }
0x3188   :  { %v7021_v43 = vcombine.high %v9294_v17, %v9294_v17  ;;  %v7028_v12 = vrot.slane %v9294_v17, %v10454_v20  ;;  %v6993_v16 = vpop.f32.mrb[55].mxu0 }
0x3189   :  { %v7004_v52 = vcombine.high %v6993_v16, %v6993_v16  ;;  %v7011_v51 = vrot.slane %v6993_v16, %v10454_v20 }
0x318a   :  { %v7035_v53 = vrot.slane %v7021_v43, %v10454_v20  ;;  %v7036_v1 = vcombine.high %v7028_v12, %v7028_v12  ;;  %v7050_v9 = vadd.f32 %v7028_v12, %v11666_v25 }
0x318b   :  { %v7018_v37 = vrot.slane %v7004_v52, %v10454_v20  ;;  %v7019_v5 = vcombine.high %v7011_v51, %v7011_v51  ;;  %v7046_v61 = vadd.f32 %v7011_v51, %v11644_v40 }
0x318c   :  { %v7037_v26 = vcombine.high %v7035_v53, %v7035_v53  ;;  %v7051_v22 = vadd.f32 %v7036_v1, %v11662_v54  ;;  %v7052_v44 = vadd.f32 %v7035_v53, %v11668_v10  ;;  %v7084_v25 = vadd.f32 %v7066_v2, %v7050_v9 }
0x318d   :  { %v7020_v23 = vcombine.high %v7018_v37, %v7018_v37  ;;  %v7047_v19 = vadd.f32 %v7019_v5, %v11646_v46  ;;  %v7048_v45 = vadd.f32 %v7018_v37, %v11648_v62  ;;  %v7080_v35 = vadd.f32 %v7066_v2, %v7046_v61 }
0x318e   :  { %v7053_v58 = vadd.f32 %v7037_v26, %v11664_v31  ;;  %v7085_v3 = vadd.f32 %v7074_v55, %v7051_v22  ;;  %v7086_v40 = vadd.f32 %v7073_v47, %v7052_v44 }
0x318f   :  { %v7049_v7 = vadd.f32 %v7020_v23, %v11650_v49  ;;  %v7081_v50 = vadd.f32 %v7074_v55, %v7047_v19  ;;  %v7082_v54 = vadd.f32 %v7073_v47, %v7048_v45 }
0x3190   :  { %v7087_v32 = vadd.f32 %v7075_v18, %v7053_v58  ;;  %v7113_v4 = vcombine.low %v7084_v25, %v7085_v3 }
0x3191   :  { %v7083_v21 = vadd.f32 %v7075_v18, %v7049_v7  ;;  %v7096_v10 = vcombine.low %v7080_v35, %v7081_v50  ;;  %v4284_v7 = vld [vmem:[#allocation8 + $0x160] sm:$0xff] }
0x3192   :  { %v7114_v24 = vcombine.low %v7086_v40, %v7087_v32  ;;  %v7121_v46 = vrot.slane %v7113_v4, %v10454_v20 }
0x3193   :  { %v7097_v33 = vcombine.low %v7082_v54, %v7083_v21  ;;  %v7104_v31 = vrot.slane %v7096_v10, %v10454_v20  ;;  %v4290_v10 = vld [vmem:[#allocation8 + $0x190] sm:$0xff] }
0x3194   :  { %v7128_v62 = vrot.slane %v7114_v24, %v10454_v20 }
0x3195   :  { %v7111_v34 = vrot.slane %v7097_v33, %v10454_v20  ;;  %v4291_v33 = vld [vmem:[#allocation8 + $0x198] sm:$0xff] }
0x3196   :  { %v7129_v59 = vcombine.low %v7121_v46, %v7128_v62  ;;  %v9683_v46 = vpack.c.bf16 %v4291_v33, %v4290_v10  ;;  %v4292_v62 = vld [vmem:[#allocation8 + $0x1a0] sm:$0xff] }
0x3197   :  { %v7112_v49 = vcombine.low %v7104_v31, %v7111_v34  ;;  %v4293_v31 = vld [vmem:[#allocation8 + $0x1a8] sm:$0xff] }
0x3198   :  { %v7135_v6 = vsel %vm462_vm0, %v7129_v59, 0.0  ;;  %v9687_v34 = vpack.c.bf16 %v4293_v31, %v4292_v62 }
0x3199   :  { %7136 = vadd.xlane.f32.xlu1 %v7135_v6  ;;  %v7132_v42 = vsel %vm462_vm0, %v7112_v49, 0.0 }
0x319a   :  { %7133 = vadd.xlane.f32.xlu0 %v7132_v42 }
0x3226   :  { %v7137_v48 = vpop.xlane.xlu1 %7136 }
0x3227   :  { %v7139_v29 = vmul.f32 0.03125, %v7137_v48  ;;  %v7134_v57 = vpop.xlane.xlu0 %7133 }
0x3228   :  { %v7138_v41 = vmul.f32 0.03125, %v7134_v57 }
0x3229   :  { %v7176_v60 = vrot.slane %v7139_v29, %v10695_v39  ;;  %v7183_v36 = vrot.slane %v7139_v29, %v10698_v63  ;;  %v7190_v30 = vrot.slane %v7139_v29, %v12088_v27  ;;  %v7197_v8 = vrot.slane %v7139_v29, %v12089_v38  ;;  %v8559_v29 = vld [vmem:[#allocation10 + $0x14] ss:$0 sm:$0xff] }
0x322a   :  { %v7148_v14 = vrot.slane %v7138_v41, %v10695_v39  ;;  %v7155_v11 = vrot.slane %v7138_v41, %v10698_v63  ;;  %v7162_v0 = vrot.slane %v7138_v41, %v12088_v27  ;;  %v7169_v28 = vrot.slane %v7138_v41, %v12089_v38  ;;  %v8560_v41 = vld [vmem:[#allocation10 + $0x15] ss:$0 sm:$0xff] }
0x322b   :  { %v11904_v13 = vsub.f32 %v7084_v25, %v7176_v60  ;;  %v11906_v15 = vsub.f32 %v7085_v3, %v7183_v36  ;;  %v11908_v56 = vsub.f32 %v7086_v40, %v7190_v30  ;;  %v11910_v2 = vsub.f32 %v7087_v32, %v7197_v8  ;;  %v4287_v32 = vld [vmem:[#allocation8 + $0x178] sm:$0xff] }
0x322c   :  { %v11912_v17 = vsub.f32 %v7080_v35, %v7148_v14  ;;  %v11914_v43 = vsub.f32 %v7081_v50, %v7155_v11  ;;  %v11916_v12 = vsub.f32 %v7082_v54, %v7162_v0  ;;  %v11918_v47 = vsub.f32 %v7083_v21, %v7169_v28  ;;  %v4285_v35 = vld [vmem:[#allocation8 + $0x168] sm:$0xff]  ;;  %v4286_v50 = vld [vmem:[#allocation8 + $0x170] sm:$0xff]  ;;  %v4288_v54 = vld [vmem:[#allocation8 + $0x180] sm:$0xff] }
0x322d   :  { %v7218_v16 = vmul.f32 %v11904_v13, %v11904_v13  ;;  %v7219_v52 = vmul.f32 %v11906_v15, %v11906_v15  ;;  %v7220_v51 = vmul.f32 %v11908_v56, %v11908_v56  ;;  %v7221_v53 = vmul.f32 %v11910_v2, %v11910_v2  ;;  %v4289_v21 = vld [vmem:[#allocation8 + $0x188] sm:$0xff] }
0x322e   :  { %v7214_v1 = vmul.f32 %v11912_v17, %v11912_v17  ;;  %v7215_v9 = vmul.f32 %v11914_v43, %v11914_v43  ;;  %v7216_v55 = vmul.f32 %v11916_v12, %v11916_v12  ;;  %v7217_v37 = vmul.f32 %v11918_v47, %v11918_v47 }
0x322f   :  { %v7247_v5 = vcombine.low %v7218_v16, %v7219_v52  ;;  %v7248_v61 = vcombine.low %v7220_v51, %v7221_v53  ;;  %v9671_v40 = vpack.c.bf16 %v4285_v35, %v4284_v7  ;;  %v9675_v4 = vpack.c.bf16 %v4287_v32, %v4286_v50 }
0x3230   :  { %v7230_v26 = vcombine.low %v7214_v1, %v7215_v9  ;;  %v7231_v22 = vcombine.low %v7216_v55, %v7217_v37  ;;  %v9679_v24 = vpack.c.bf16 %v4289_v21, %v4288_v54  ;;  %v7357_v60 = vcombine.high %v8559_v29, %v8559_v29 }
0x3231   :  { %v7255_v23 = vrot.slane %v7247_v5, %v10454_v20  ;;  %v7262_v19 = vrot.slane %v7248_v61, %v10454_v20  ;;  %9672 = vmatprep.subr.bf16.mxu1 %v9671_v40  ;;  %v7364_v36 = vrot.slane %v8559_v29, %v10454_v20  ;;  %v7391_v30 = vcombine.high %v8560_v41, %v8560_v41 }
0x3232   :  { %v7238_v44 = vrot.slane %v7230_v26, %v10454_v20  ;;  %v7245_v18 = vrot.slane %v7231_v22, %v10454_v20  ;;  %9674 = vmatpush3.bf16.msra.mxu1 %v9671_v40  ;;  %9680 = vmatprep.subr.bf16.mxu0 %v9679_v24  ;;  %v7371_v8 = vrot.slane %v7357_v60, %v10454_v20 }
0x3233   :  { %v7263_v25 = vcombine.low %v7255_v23, %v7262_v19  ;;  %9676 = vmatprep.subr.bf16.mxu1 %v9675_v4  ;;  %9682 = vmatpush3.bf16.msra.mxu0 %v9679_v24  ;;  %v7398_v14 = vrot.slane %v8560_v41, %v10454_v20  ;;  %v7372_v0 = vcombine.high %v7364_v36, %v7364_v36 }
0x3234   :  { %v7246_v45 = vcombine.low %v7238_v44, %v7245_v18  ;;  %9684 = vmatprep.subr.bf16.mxu0 %v9683_v46  ;;  %v7405_v28 = vrot.slane %v7391_v30, %v10454_v20  ;;  %v7373_v1 = vcombine.high %v7371_v8, %v7371_v8 }
0x3235   :  { %v7269_v3 = vsel %vm462_vm0, %v7263_v25, 0.0  ;;  %v7406_v9 = vcombine.high %v7398_v14, %v7398_v14 }
0x3236   :  { %v7266_v58 = vsel %vm462_vm0, %v7246_v45, 0.0  ;;  %9678 = vmatpush3.bf16.msra.mxu1 %v9675_v4  ;;  %v7407_v22 = vcombine.high %v7405_v28, %v7405_v28 }
0x3237   :  { %7267 = vadd.xlane.f32.xlu0 %v7266_v58  ;;  %9686 = vmatpush3.bf16.msra.mxu0 %v9683_v46 }
0x3238   :  { %9688 = vmatprep.subr.bf16.mxu0 %v9687_v34 }
0x323b   :  { %7270 = vadd.xlane.f32.xlu0 %v7269_v3  ;;  %9690 = vmatpush3.bf16.msra.mxu0 %v9687_v34 }
0x32c4   :  { %v7268_v59 = vpop.xlane.xlu0 %7267 }
0x32c5   :  { %v7272_v49 = vmul.f32 0.03125, %v7268_v59 }
0x32c7   :  { %v7274_v6 = vadd.f32 1e-05, %v7272_v49 }
0x32c8   :  { %v7271_v42 = vpop.xlane.xlu0 %7270 }
0x32c9   :  { %10108 = vrsqrt.f32 %v7274_v6  ;;  %v7273_v48 = vmul.f32 0.03125, %v7271_v42  ;;  %v4294_v42 = vld [vmem:[#allocation8 + $0x1b0] sm:$0xff] }
0x32cb   :  { %v7275_v57 = vadd.f32 1e-05, %v7273_v48  ;;  %v4295_v48 = vld [vmem:[#allocation8 + $0x1b8] sm:$0xff] }
0x32cc   :  { %v9691_v29 = vpack.c.bf16 %v4295_v48, %v4294_v42 }
0x32cd   :  { %10110 = vrsqrt.f32 %v7275_v57  ;;  %v8561_v57 = vld [vmem:[#allocation10 + $0x10] ss:$0 sm:$0xff] }
0x32ce   :  { %9692 = vmatprep.subr.bf16.mxu0 %v9691_v29 }
0x32cf   :  { %9694 = vmatpush3.bf16.msra.mxu0 %v9691_v29 }
0x32d3   :  { %v10109_v11 = vpop.eup %10108 }
0x32d4   :  { %v7286_v16 = vrot.slane %v10109_v11, %v10695_v39  ;;  %v7293_v52 = vrot.slane %v10109_v11, %v10698_v63  ;;  %v7300_v51 = vrot.slane %v10109_v11, %v12088_v27  ;;  %v7307_v53 = vrot.slane %v10109_v11, %v12089_v38  ;;  %v8564_v11 = vld [vmem:[#allocation10 + $0x11] ss:$0 sm:$0xff] }
0x32d6   :  { %v7344_v55 = vmul.f32 %v7286_v16, %v11912_v17  ;;  %v7345_v37 = vmul.f32 %v7293_v52, %v11914_v43  ;;  %v7346_v5 = vmul.f32 %v7300_v51, %v11916_v12  ;;  %v7347_v61 = vmul.f32 %v7307_v53, %v11918_v47 }
0x32d7   :  { %v10111_v26 = vpop.eup %10110 }
0x32d8   :  { %v7321_v44 = vrot.slane %v10111_v26, %v10698_v63  ;;  %v7335_v18 = vrot.slane %v10111_v26, %v12089_v38  ;;  %v7378_v23 = vmul.f32 %v7364_v36, %v7344_v55  ;;  %v7379_v19 = vmul.f32 %v7372_v0, %v7345_v37 }
0x32d9   :  { %v7380_v45 = vmul.f32 %v7371_v8, %v7346_v5  ;;  %v7381_v58 = vmul.f32 %v7373_v1, %v7347_v61  ;;  %v7314_v25 = vrot.slane %v10111_v26, %v10695_v39  ;;  %v7328_v17 = vrot.slane %v10111_v26, %v12088_v27 }
0x32da   :  { %v7349_v43 = vmul.f32 %v7321_v44, %v11906_v15  ;;  %v7351_v12 = vmul.f32 %v7335_v18, %v11910_v2  ;;  %v7412_v3 = vadd.f32 %v7398_v14, %v7378_v23  ;;  %v7413_v47 = vadd.f32 %v7406_v9, %v7379_v19 }
0x32db   :  { %v7414_v7 = vadd.f32 %v7405_v28, %v7380_v45  ;;  %v7415_v35 = vadd.f32 %v7407_v22, %v7381_v58  ;;  %v7348_v50 = vmul.f32 %v7314_v25, %v11904_v13  ;;  %v7350_v40 = vmul.f32 %v7328_v17, %v11908_v56 }
0x32dc   :  { %v7383_v32 = vmul.f32 %v7372_v0, %v7349_v43  ;;  %v7385_v4 = vmul.f32 %v7373_v1, %v7351_v12  ;;  %v7432_v54 = vcombine.low %v7412_v3, %v7413_v47 }
0x32dd   :  { %v7433_v21 = vcombine.low %v7414_v7, %v7415_v35  ;;  %v7382_v10 = vmul.f32 %v7364_v36, %v7348_v50  ;;  %v7384_v24 = vmul.f32 %v7371_v8, %v7350_v40 }
0x32de   :  { %v7417_v33 = vadd.f32 %v7406_v9, %v7383_v32  ;;  %v7419_v46 = vadd.f32 %v7407_v22, %v7385_v4  ;;  %v7440_v15 = vrot.slane %v7432_v54, %v10454_v20 }
0x32df   :  { %v7447_v2 = vrot.slane %v7433_v21, %v10454_v20  ;;  %v7416_v62 = vadd.f32 %v7398_v14, %v7382_v10  ;;  %v7418_v31 = vadd.f32 %v7405_v28, %v7384_v24 }
0x32e1   :  { %v7448_v34 = vcombine.low %v7440_v15, %v7447_v2  ;;  %v7449_v59 = vcombine.low %v7416_v62, %v7417_v33  ;;  %v7450_v49 = vcombine.low %v7418_v31, %v7419_v46 }
0x32e3   :  { %9303 = vmatprep.mubr.msk.f32.mxu1 %vm462_vm0, %v7448_v34  ;;  %v7457_v13 = vrot.slane %v7449_v59, %v10454_v20  ;;  %v7464_v56 = vrot.slane %v7450_v49, %v10454_v20 }
0x32e5   :  { %v7465_v6 = vcombine.low %v7457_v13, %v7464_v56 }
0x32e7   :  { %9304 = vmatmul.mubr.msk.f32.vlgmr.msra.gmra.mrb[52].mxu1 %vm462_vm0, %v7465_v6 }
0x33ba   :  { %v9305_v41 = vpop.f32.mrb[52].mxu1 }
0x33bb   :  { %v7542_v60 = vadd.f32 %v9305_v41, %v8561_v57  ;;  %v7536_v36 = vpop.f32.mrb[53].mxu1 }
0x33bc   :  { %v7537_v30 = vadd.f32 %v8561_v57, %v7536_v36 }
0x33bd   :  { %v7546_v14 = vmax.f32 %v7542_v60, 0.0 }
0x33be   :  { %v7545_v8 = vmax.f32 %v7537_v30, 0.0 }
0x33c0   :  { %9322 = vmatprep.mubr.msk.f32.mxu0 %vm3802_vm12, %v7545_v8 }
0x33c1   :  { %9323 = vmatmul.mubr.msk.f32.vlgmr.msra.gmra.mrb[56].mxu0 %vm3802_vm12, %v7546_v14 }
0x3494   :  { %v9324_v0 = vpop.f32.mrb[56].mxu0 }
0x3495   :  { %v7629_v28 = vadd.f32 %v9324_v0, %v8564_v11  ;;  %v7623_v16 = vpop.f32.mrb[57].mxu0 }
0x3496   :  { %v7624_v52 = vadd.f32 %v8564_v11, %v7623_v16 }
0x3497   :  { %v7651_v51 = vcombine.high %v7629_v28, %v7629_v28  ;;  %v7658_v53 = vrot.slane %v7629_v28, %v10454_v20 }
0x3498   :  { %v7634_v1 = vcombine.high %v7624_v52, %v7624_v52  ;;  %v7641_v9 = vrot.slane %v7624_v52, %v10454_v20 }
0x3499   :  { %v7665_v55 = vrot.slane %v7651_v51, %v10454_v20  ;;  %v7666_v37 = vcombine.high %v7658_v53, %v7658_v53  ;;  %v7680_v22 = vadd.f32 %v7658_v53, %v7416_v62 }
0x349a   :  { %v7648_v5 = vrot.slane %v7634_v1, %v10454_v20  ;;  %v7649_v61 = vcombine.high %v7641_v9, %v7641_v9  ;;  %v7676_v23 = vadd.f32 %v7641_v9, %v7412_v3 }
0x349b   :  { %v7667_v26 = vcombine.high %v7665_v55, %v7665_v55  ;;  %v7681_v44 = vadd.f32 %v7666_v37, %v7417_v33  ;;  %v7682_v45 = vadd.f32 %v7665_v55, %v7418_v31 }
0x349c   :  { %v7650_v18 = vcombine.high %v7648_v5, %v7648_v5  ;;  %v7677_v19 = vadd.f32 %v7649_v61, %v7413_v47  ;;  %v7678_v17 = vadd.f32 %v7648_v5, %v7414_v7 }
0x349d   :  { %v7683_v58 = vadd.f32 %v7667_v26, %v7419_v46  ;;  %v7709_v25 = vcombine.low %v7680_v22, %v7681_v44 }
0x349e   :  { %v7679_v43 = vadd.f32 %v7650_v18, %v7415_v35  ;;  %v7692_v12 = vcombine.low %v7676_v23, %v7677_v19 }
0x349f   :  { %v7710_v50 = vcombine.low %v7682_v45, %v7683_v58  ;;  %v7717_v32 = vrot.slane %v7709_v25, %v10454_v20 }
0x34a0   :  { %v7693_v40 = vcombine.low %v7678_v17, %v7679_v43  ;;  %v7700_v54 = vrot.slane %v7692_v12, %v10454_v20 }
0x34a1   :  { %v7724_v4 = vrot.slane %v7710_v50, %v10454_v20 }
0x34a2   :  { %v7707_v21 = vrot.slane %v7693_v40, %v10454_v20 }
0x34a3   :  { %v7725_v10 = vcombine.low %v7717_v32, %v7724_v4 }
0x34a4   :  { %v7708_v24 = vcombine.low %v7700_v54, %v7707_v21 }
0x34a5   :  { %v7731_v3 = vsel %vm462_vm0, %v7725_v10, 0.0 }
0x34a6   :  { %7732 = vadd.xlane.f32.xlu0 %v7731_v3  ;;  %v7728_v47 = vsel %vm462_vm0, %v7708_v24, 0.0 }
0x34a7   :  { %7729 = vadd.xlane.f32.xlu1 %v7728_v47 }
0x3533   :  { %v7733_v7 = vpop.xlane.xlu0 %7732 }
0x3534   :  { %v7735_v35 = vmul.f32 0.03125, %v7733_v7  ;;  %v7730_v33 = vpop.xlane.xlu1 %7729 }
0x3535   :  { %v7734_v46 = vmul.f32 0.03125, %v7730_v33 }
0x3536   :  { %v7772_v15 = vrot.slane %v7735_v35, %v10695_v39  ;;  %v7779_v2 = vrot.slane %v7735_v35, %v10698_v63  ;;  %v7786_v62 = vrot.slane %v7735_v35, %v12088_v27  ;;  %v7793_v31 = vrot.slane %v7735_v35, %v12089_v38 }
0x3537   :  { %v7744_v34 = vrot.slane %v7734_v46, %v10695_v39  ;;  %v7751_v59 = vrot.slane %v7734_v46, %v10698_v63  ;;  %v7758_v49 = vrot.slane %v7734_v46, %v12088_v27  ;;  %v7765_v13 = vrot.slane %v7734_v46, %v12089_v38 }
0x3538   :  { %v7806_v56 = vsub.f32 %v7680_v22, %v7772_v15  ;;  %v7807_v6 = vsub.f32 %v7681_v44, %v7779_v2  ;;  %v7808_v42 = vsub.f32 %v7682_v45, %v7786_v62  ;;  %v7809_v48 = vsub.f32 %v7683_v58, %v7793_v31 }
0x3539   :  { %v7802_v29 = vsub.f32 %v7676_v23, %v7744_v34  ;;  %v7803_v57 = vsub.f32 %v7677_v19, %v7751_v59  ;;  %v7804_v41 = vsub.f32 %v7678_v17, %v7758_v49  ;;  %v7805_v60 = vsub.f32 %v7679_v43, %v7765_v13  ;;  %v8567_v17 = vld [vmem:[#allocation10 + $0x16] ss:$0 sm:$0xff]  ;;  %v8568_v43 = vld [vmem:[#allocation10 + $0x17] ss:$0 sm:$0xff] }
0x353a   :  { %v7814_v36 = vmul.f32 %v7806_v56, %v7806_v56  ;;  %v7815_v30 = vmul.f32 %v7807_v6, %v7807_v6  ;;  %v7816_v8 = vmul.f32 %v7808_v42, %v7808_v42  ;;  %v7817_v14 = vmul.f32 %v7809_v48, %v7809_v48 }
0x353b   :  { %v7810_v11 = vmul.f32 %v7802_v29, %v7802_v29  ;;  %v7811_v0 = vmul.f32 %v7803_v57, %v7803_v57  ;;  %v7812_v28 = vmul.f32 %v7804_v41, %v7804_v41  ;;  %v7813_v16 = vmul.f32 %v7805_v60, %v7805_v60 }
0x353c   :  { %v7843_v52 = vcombine.low %v7814_v36, %v7815_v30  ;;  %v7844_v51 = vcombine.low %v7816_v8, %v7817_v14  ;;  %v7953_v12 = vcombine.high %v8567_v17, %v8567_v17  ;;  %v7987_v50 = vcombine.high %v8568_v43, %v8568_v43 }
0x353d   :  { %v7826_v53 = vcombine.low %v7810_v11, %v7811_v0  ;;  %v7827_v1 = vcombine.low %v7812_v28, %v7813_v16  ;;  %v7960_v40 = vrot.slane %v8567_v17, %v10454_v20  ;;  %v7994_v4 = vrot.slane %v8568_v43, %v10454_v20 }
0x353e   :  { %v7851_v9 = vrot.slane %v7843_v52, %v10454_v20  ;;  %v7858_v55 = vrot.slane %v7844_v51, %v10454_v20  ;;  %v7967_v32 = vrot.slane %v7953_v12, %v10454_v20  ;;  %v8001_v54 = vrot.slane %v7987_v50, %v10454_v20 }
0x353f   :  { %v7834_v37 = vrot.slane %v7826_v53, %v10454_v20  ;;  %v7841_v5 = vrot.slane %v7827_v1, %v10454_v20  ;;  %v7968_v10 = vcombine.high %v7960_v40, %v7960_v40  ;;  %v8002_v3 = vcombine.high %v7994_v4, %v7994_v4 }
0x3540   :  { %v7859_v61 = vcombine.low %v7851_v9, %v7858_v55  ;;  %v7969_v24 = vcombine.high %v7967_v32, %v7967_v32  ;;  %v8003_v47 = vcombine.high %v8001_v54, %v8001_v54 }
0x3541   :  { %v7842_v26 = vcombine.low %v7834_v37, %v7841_v5 }
0x3542   :  { %v7865_v22 = vsel %vm462_vm0, %v7859_v61, 0.0 }
0x3543   :  { %7866 = vadd.xlane.f32.xlu0 %v7865_v22  ;;  %v7862_v44 = vsel %vm462_vm0, %v7842_v26, 0.0 }
0x3544   :  { %7863 = vadd.xlane.f32.xlu1 %v7862_v44 }
0x35d0   :  { %v7867_v18 = vpop.xlane.xlu0 %7866 }
0x35d1   :  { %v7869_v23 = vmul.f32 0.03125, %v7867_v18  ;;  %v7864_v19 = vpop.xlane.xlu1 %7863 }
0x35d2   :  { %v7868_v45 = vmul.f32 0.03125, %v7864_v19 }
0x35d3   :  { %v7871_v58 = vadd.f32 1e-05, %v7869_v23 }
0x35d4   :  { %v7870_v25 = vadd.f32 1e-05, %v7868_v45 }
0x35d5   :  { %10112 = vrsqrt.f32 %v7871_v58 }
0x35d6   :  { %10114 = vrsqrt.f32 %v7870_v25 }
0x35df   :  { %v10113_v21 = vpop.eup %10112 }
0x35e0   :  { %v10115_v7 = vpop.eup %10114  ;;  %v7910_v35 = vrot.slane %v10113_v21, %v10695_v39  ;;  %v7917_v33 = vrot.slane %v10113_v21, %v10698_v63  ;;  %v7924_v46 = vrot.slane %v10113_v21, %v12088_v27  ;;  %v7931_v15 = vrot.slane %v10113_v21, %v12089_v38 }
0x35e1   :  { %v7882_v2 = vrot.slane %v10115_v7, %v10695_v39  ;;  %v7889_v62 = vrot.slane %v10115_v7, %v10698_v63  ;;  %v7896_v31 = vrot.slane %v10115_v7, %v12088_v27  ;;  %v7903_v34 = vrot.slane %v10115_v7, %v12089_v38 }
0x35e2   :  { %v7944_v59 = vmul.f32 %v7910_v35, %v7806_v56  ;;  %v7945_v49 = vmul.f32 %v7917_v33, %v7807_v6  ;;  %v7946_v13 = vmul.f32 %v7924_v46, %v7808_v42  ;;  %v7947_v36 = vmul.f32 %v7931_v15, %v7809_v48 }
0x35e3   :  { %v7940_v30 = vmul.f32 %v7882_v2, %v7802_v29  ;;  %v7941_v8 = vmul.f32 %v7889_v62, %v7803_v57  ;;  %v7942_v14 = vmul.f32 %v7896_v31, %v7804_v41  ;;  %v7943_v11 = vmul.f32 %v7903_v34, %v7805_v60 }
0x35e4   :  { %v7978_v0 = vmul.f32 %v7960_v40, %v7944_v59  ;;  %v7979_v28 = vmul.f32 %v7968_v10, %v7945_v49  ;;  %v7980_v16 = vmul.f32 %v7967_v32, %v7946_v13  ;;  %v7981_v52 = vmul.f32 %v7969_v24, %v7947_v36 }
0x35e5   :  { %v7974_v51 = vmul.f32 %v7960_v40, %v7940_v30  ;;  %v7975_v53 = vmul.f32 %v7968_v10, %v7941_v8  ;;  %v7976_v1 = vmul.f32 %v7967_v32, %v7942_v14  ;;  %v7977_v9 = vmul.f32 %v7969_v24, %v7943_v11 }
0x35e6   :  { %v8012_v55 = vadd.f32 %v7994_v4, %v7978_v0  ;;  %v8013_v37 = vadd.f32 %v8002_v3, %v7979_v28  ;;  %v8014_v5 = vadd.f32 %v8001_v54, %v7980_v16  ;;  %v8015_v61 = vadd.f32 %v8003_v47, %v7981_v52 }
0x35e7   :  { %v8008_v56 = vadd.f32 %v7994_v4, %v7974_v51  ;;  %v8009_v6 = vadd.f32 %v8002_v3, %v7975_v53  ;;  %v8010_v42 = vadd.f32 %v8001_v54, %v7976_v1  ;;  %v8011_v48 = vadd.f32 %v8003_v47, %v7977_v9 }
0x35e8   :  { %v8043_v29 = vcombine.low %v8012_v55, %v8013_v37  ;;  %v8044_v57 = vcombine.low %v8014_v5, %v8015_v61 }
0x35e9   :  { %v8026_v41 = vcombine.low %v8008_v56, %v8009_v6  ;;  %v8027_v60 = vcombine.low %v8010_v42, %v8011_v48 }
0x35ea   :  { %v8051_v26 = vrot.slane %v8043_v29, %v10454_v20  ;;  %v8058_v22 = vrot.slane %v8044_v57, %v10454_v20  ;;  %v8570_v29 = vld [vmem:[#allocation10 + $0x19] ss:$0 sm:$0xff] }
0x35eb   :  { %v8034_v44 = vrot.slane %v8026_v41, %v10454_v20  ;;  %v8041_v18 = vrot.slane %v8027_v60, %v10454_v20  ;;  %v8321_v41 = vcombine.high %v8570_v29, %v8570_v29 }
0x35ec   :  { %v8059_v23 = vcombine.low %v8051_v26, %v8058_v22  ;;  %v8328_v22 = vrot.slane %v8570_v29, %v10454_v20 }
0x35ed   :  { %v8042_v19 = vcombine.low %v8034_v44, %v8041_v18  ;;  %v8335_v44 = vrot.slane %v8321_v41, %v10454_v20 }
0x35ee   :  { %v8065_v45 = vsel %vm462_vm0, %v8059_v23, 0.0 }
0x35ef   :  { %8066 = vadd.xlane.f32.xlu0 %v8065_v45  ;;  %v8062_v58 = vsel %vm462_vm0, %v8042_v19, 0.0  ;;  %v8336_v45 = vcombine.high %v8328_v22, %v8328_v22 }
0x35f0   :  { %8063 = vadd.xlane.f32.xlu1 %v8062_v58  ;;  %v8337_v58 = vcombine.high %v8335_v44, %v8335_v44 }
0x367c   :  { %v8067_v25 = vpop.xlane.xlu0 %8066 }
0x367d   :  { %v8069_v17 = vmul.f32 0.03125, %v8067_v25  ;;  %v8064_v43 = vpop.xlane.xlu1 %8063 }
0x367e   :  { %v8068_v12 = vmul.f32 0.03125, %v8064_v43 }
0x367f   :  { %v8106_v50 = vrot.slane %v8069_v17, %v10695_v39  ;;  %v8113_v40 = vrot.slane %v8069_v17, %v10698_v63  ;;  %v8120_v32 = vrot.slane %v8069_v17, %v12088_v27  ;;  %v8127_v4 = vrot.slane %v8069_v17, %v12089_v38 }
0x3680   :  { %v8078_v54 = vrot.slane %v8068_v12, %v10695_v39  ;;  %v8085_v21 = vrot.slane %v8068_v12, %v10698_v63  ;;  %v8092_v10 = vrot.slane %v8068_v12, %v12088_v27  ;;  %v8099_v24 = vrot.slane %v8068_v12, %v12089_v38 }
0x3681   :  { %v8140_v3 = vsub.f32 %v8012_v55, %v8106_v50  ;;  %v8141_v47 = vsub.f32 %v8013_v37, %v8113_v40  ;;  %v8142_v7 = vsub.f32 %v8014_v5, %v8120_v32  ;;  %v8143_v35 = vsub.f32 %v8015_v61, %v8127_v4 }
0x3682   :  { %v8136_v33 = vsub.f32 %v8008_v56, %v8078_v54  ;;  %v8137_v46 = vsub.f32 %v8009_v6, %v8085_v21  ;;  %v8138_v15 = vsub.f32 %v8010_v42, %v8092_v10  ;;  %v8139_v2 = vsub.f32 %v8011_v48, %v8099_v24  ;;  %v8569_v48 = vld [vmem:[#allocation10 + $0x18] ss:$0 sm:$0xff] }
0x3683   :  { %v8148_v62 = vmul.f32 %v8140_v3, %v8140_v3  ;;  %v8149_v31 = vmul.f32 %v8141_v47, %v8141_v47  ;;  %v8150_v34 = vmul.f32 %v8142_v7, %v8142_v7  ;;  %v8151_v59 = vmul.f32 %v8143_v35, %v8143_v35 }
0x3684   :  { %v8144_v49 = vmul.f32 %v8136_v33, %v8136_v33  ;;  %v8145_v13 = vmul.f32 %v8137_v46, %v8137_v46  ;;  %v8146_v36 = vmul.f32 %v8138_v15, %v8138_v15  ;;  %v8147_v30 = vmul.f32 %v8139_v2, %v8139_v2 }
0x3685   :  { %v8177_v8 = vcombine.low %v8148_v62, %v8149_v31  ;;  %v8178_v14 = vcombine.low %v8150_v34, %v8151_v59  ;;  %v8287_v57 = vcombine.high %v8569_v48, %v8569_v48  ;;  %v8294_v60 = vrot.slane %v8569_v48, %v10454_v20 }
0x3686   :  { %v8160_v11 = vcombine.low %v8144_v49, %v8145_v13  ;;  %v8161_v0 = vcombine.low %v8146_v36, %v8147_v30 }
0x3687   :  { %v8185_v28 = vrot.slane %v8177_v8, %v10454_v20  ;;  %v8192_v16 = vrot.slane %v8178_v14, %v10454_v20  ;;  %v8301_v26 = vrot.slane %v8287_v57, %v10454_v20  ;;  %v8302_v18 = vcombine.high %v8294_v60, %v8294_v60 }
0x3688   :  { %v8168_v52 = vrot.slane %v8160_v11, %v10454_v20  ;;  %v8175_v51 = vrot.slane %v8161_v0, %v10454_v20 }
0x3689   :  { %v8193_v53 = vcombine.low %v8185_v28, %v8192_v16  ;;  %v8303_v19 = vcombine.high %v8301_v26, %v8301_v26 }
0x368a   :  { %v8176_v1 = vcombine.low %v8168_v52, %v8175_v51 }
0x368b   :  { %v8199_v9 = vsel %vm462_vm0, %v8193_v53, 0.0 }
0x368c   :  { %8200 = vadd.xlane.f32.xlu0 %v8199_v9  ;;  %v8196_v55 = vsel %vm462_vm0, %v8176_v1, 0.0 }
0x368d   :  { %8197 = vadd.xlane.f32.xlu1 %v8196_v55 }
0x3719   :  { %v8201_v37 = vpop.xlane.xlu0 %8200 }
0x371a   :  { %v8203_v5 = vmul.f32 0.03125, %v8201_v37  ;;  %v8198_v61 = vpop.xlane.xlu1 %8197 }
0x371b   :  { %v8202_v56 = vmul.f32 0.03125, %v8198_v61 }
0x371c   :  { %v8205_v6 = vadd.f32 1e-05, %v8203_v5 }
0x371d   :  { %v8204_v42 = vadd.f32 1e-05, %v8202_v56 }
0x371e   :  { %10116 = vrsqrt.f32 %v8205_v6 }
0x371f   :  { %10118 = vrsqrt.f32 %v8204_v42 }
0x3728   :  { %v10117_v23 = vpop.eup %10116 }
0x3729   :  { %v10119_v25 = vpop.eup %10118  ;;  %v8244_v17 = vrot.slane %v10117_v23, %v10695_v39  ;;  %v8251_v43 = vrot.slane %v10117_v23, %v10698_v63  ;;  %v8258_v12 = vrot.slane %v10117_v23, %v12088_v27  ;;  %v8265_v50 = vrot.slane %v10117_v23, %v12089_v38 }
0x372a   :  { %v8216_v40 = vrot.slane %v10119_v25, %v10695_v39  ;;  %v8223_v32 = vrot.slane %v10119_v25, %v10698_v63  ;;  %v8230_v20 = vrot.slane %v10119_v25, %v12088_v27  ;;  %v8237_v4 = vrot.slane %v10119_v25, %v12089_v38 }
0x372b   :  { %v8278_v54 = vmul.f32 %v8244_v17, %v8140_v3  ;;  %v8279_v21 = vmul.f32 %v8251_v43, %v8141_v47  ;;  %v8280_v10 = vmul.f32 %v8258_v12, %v8142_v7  ;;  %v8281_v24 = vmul.f32 %v8265_v50, %v8143_v35 }
0x372c   :  { %v8274_v62 = vmul.f32 %v8216_v40, %v8136_v33  ;;  %v8275_v31 = vmul.f32 %v8223_v32, %v8137_v46  ;;  %v8276_v34 = vmul.f32 %v8230_v20, %v8138_v15  ;;  %v8277_v59 = vmul.f32 %v8237_v4, %v8139_v2 }
0x372d   :  { %v8312_v49 = vmul.f32 %v8294_v60, %v8278_v54  ;;  %v8313_v13 = vmul.f32 %v8302_v18, %v8279_v21  ;;  %v8314_v36 = vmul.f32 %v8301_v26, %v8280_v10  ;;  %v8315_v30 = vmul.f32 %v8303_v19, %v8281_v24 }
0x372e   :  { %v8308_v39 = vmul.f32 %v8294_v60, %v8274_v62  ;;  %v8309_v63 = vmul.f32 %v8302_v18, %v8275_v31  ;;  %v8310_v8 = vmul.f32 %v8301_v26, %v8276_v34  ;;  %v8311_v27 = vmul.f32 %v8303_v19, %v8277_v59 }
0x372f   :  { %v8346_v14 = vadd.f32 %v8328_v22, %v8312_v49  ;;  %v8347_v38 = vadd.f32 %v8336_v45, %v8313_v13  ;;  %v8348_v3 = vadd.f32 %v8335_v44, %v8314_v36  ;;  %v8349_v47 = vadd.f32 %v8337_v58, %v8315_v30 }
0x3730   :  { %v8342_v7 = vadd.f32 %v8328_v22, %v8308_v39  ;;  %v8343_v35 = vadd.f32 %v8336_v45, %v8309_v63  ;;  %v8344_v33 = vadd.f32 %v8335_v44, %v8310_v8  ;;  %v8345_v46 = vadd.f32 %v8337_v58, %v8311_v27 }
0x3731   :  { %8355 = vst.msk [vmem:[#allocation11 + $0x8] sm:$0x3] %vm8350_vm13, %v8346_v14  ;;  %8356 = vst.msk [vmem:[#allocation11 + $0xa] sm:$0x3] %vm8350_vm13, %v8347_v38 }
0x3732   :  { %8357 = vst.msk [vmem:[#allocation11 + $0xc] sm:$0x3] %vm8350_vm13, %v8348_v3  ;;  %8358 = vst.msk [vmem:[#allocation11 + $0xe] sm:$0x3] %vm8350_vm13, %v8349_v47 }
0x3733   :  { %8351 = vst.msk [vmem:[#allocation11] sm:$0x3] %vm8350_vm13, %v8342_v7  ;;  %8352 = vst.msk [vmem:[#allocation11 + $0x2] sm:$0x3] %vm8350_vm13, %v8343_v35 }
0x3734   :  { %8353 = vst.msk [vmem:[#allocation11 + $0x4] sm:$0x3] %vm8350_vm13, %v8344_v33  ;;  %8354 = vst.msk [vmem:[#allocation11 + $0x6] sm:$0x3] %vm8350_vm13, %v8345_v46 }
0x3735   :  { %10257 = shalt.err (!%p10254_p2)
}
0x3736   :  { %s10258_s8 = scalar_lea.hbm %s12067_s6, 256 }
0x3737   :  { %p10259_p3 = scmp.ne.s32.totalorder %s12067_s6, %s10258_s8  ;;  %p10262_p4 = scmp.lt.u32.totalorder %s10258_s8, %s12067_s6 }
0x3739   :  { %p10264_p5 = pnand %p10262_p4, %p10259_p3 }
0x373b   :  { %10267 = shalt.err (!%p10264_p5)
}
0x373c   :  { %8370 = dma.vmem_to_hbm [thread:$0]  %s8365_s21, 256, %s12067_s6, [#allocation4], %s10278_s9, %s10278_s9, %s10279_s10  }
0x373d   :  { %10274 = dma.done.wait [#allocation4], 256  }
0x373e   :  { %10275 = vsyncadd [#allocation4], 4294967040 }
0x373f   :  { %8374 = vsyncpa [#allocation3], 1 }
0x3740   :  { %8375 = vsyncpa [#allocation6], 1 }
0x3741   :  { %8376 = vsyncpa [#allocation9], 1 }
0x3742   :  { %8377 = vsyncpa [#allocation4], 1 }

</bundles_post_ra>
